<compile_context>
chip_gen: v7x
topology: tpu7x:2x2x1
jax: 0.10.0
libtpu: 0.0.40
codegen_flags: <defaults>
</compile_context>

<pallas_src>
import jax
import jax.numpy as jnp
from jax.experimental import pallas as pl
from jax.experimental.pallas import tpu as pltpu


def _silu(v):
    return v * (1.0 / (1.0 + jnp.exp(-v)))


def _softplus(v):
    # matches F.softplus(beta=1, threshold=20); the exp argument is clamped so
    # the untaken branch can never produce inf.
    return jnp.where(v > 20.0, v, jnp.log(1.0 + jnp.exp(jnp.minimum(v, 20.0))))


def cobra_block_kernel(
    xw_ref,      # (L, BD)      activations, wide layout: [l, b*D+d] = x[b,l,d]
    xg_ref,      # (D+1, BD)    gate input, transposed: [e, b*D+d] = x[b,d,e]; last row = 1
    wg_ref,      # (D, D+1)     [W | b] for the gate matmul
    wbd_ref,     # (3*BD, BD)   rows: [block-diag W.T ; block-diag Wdelta_eff ; BlockSum]
    bias_ref,    # (3, BD)      rows: [linear bias b, dt bias, SSM skip D] (batch-tiled)
    conv_ref,    # (4*L, BD)    row blocks: [tap(d-1), tap(d), tap(d+1), conv bias]
    ssm_ref,     # (3*N, BD)    rows: [W_B ; W_C ; A.T] (batch-tiled along lanes)
    out_ref,     # (L, BD)
    s_scr,       # VMEM (L, N, BD) per-step scan states
):
    f32 = jnp.float32
    L, BD = xw_ref.shape            # L == dim, BD == batch * dim
    N = ssm_ref.shape[0] // 3

    xw = xw_ref[...]                                       # (L, BD)
    Wt_bd = wbd_ref[0:BD, :]                               # block-diag W.T
    Wdel_bd = wbd_ref[BD:2 * BD, :]                        # block-diag fused delta proj
    BlockSum = wbd_ref[2 * BD:3 * BD, :]                   # block-local lane-sum matrix
    b_row = bias_ref[0:1, :]
    bdt_row = bias_ref[1:2, :]
    dskip_row = bias_ref[2:3, :]
    cwl = conv_ref[0:L, :]
    cwc = conv_ref[L:2 * L, :]
    cwr = conv_ref[2 * L:3 * L, :]
    cbw = conv_ref[3 * L:4 * L, :]
    W_B = ssm_ref[0:N, :]                                  # (N, BD), batch-tiled
    W_C = ssm_ref[N:2 * N, :]
    A_T = ssm_ref[2 * N:3 * N, :]

    # shared linear; block-diagonal weights serve every batch in one matmul.
    lin = jnp.dot(xw, Wt_bd, preferred_element_type=f32) + b_row          # (L, BD)

    # depthwise Conv1d(k=3, pad=1, groups=dim) along d.  Cross-batch leakage at
    # block edges is killed by edge-zeroed taps prepared in the wrapper.
    # TODO(synk): with a lane-multiple D this becomes pltpu.roll(lin, +-1, -1).
    zcol = jnp.zeros_like(lin[:, 0:1])
    left = jnp.concatenate([zcol, lin[:, :BD - 1]], axis=1)               # value at d-1
    right = jnp.concatenate([lin[:, 1:], zcol], axis=1)                   # value at d+1
    conv = cwl * left + cwc * lin + cwr * right + cbw

    u = _silu(conv)                                        # (L, BD)  SSM input

    # fused delta projection: dt = u @ (Wdbc[:R].T @ Wdt.T) + bdt (one matmul).
    dt = jnp.dot(u, Wdel_bd, preferred_element_type=f32) + bdt_row
    delta = _softplus(dt)                                  # (L, BD)
    du = delta * u                                         # (L, BD)

    # SSM tensors in (L, N, B*D) layout (batch packed along lanes), built in
    # bulk so the recurrence loop below carries only the state FMA.
    dA = jnp.exp(delta[:, None, :] * A_T[None, :, :])                     # (L, N, BD)
    WBu = W_B[None, :, :] * u[:, None, :]                                 # (L, N, BD)
    Bp = jnp.dot(WBu.reshape(L * N, BD), BlockSum,
                 preferred_element_type=f32).reshape(L, N, BD)            # B proj, d-bcast
    dBu = Bp * du[:, None, :]                                             # (L, N, BD)

    # selective scan: only the state recurrence stays serial; per-step states
    # go to VMEM scratch; the C-contraction happens in bulk afterwards.
    state = jnp.zeros((N, BD), f32)
    for i in range(L):               # L == 16, static unroll
        state = dA[i] * state + dBu[i]
        s_scr[i] = state

    WCu = W_C[None, :, :] * u[:, None, :]
    Cp = jnp.dot(WCu.reshape(L * N, BD), BlockSum,
                 preferred_element_type=f32).reshape(L, N, BD)            # C proj, d-bcast
    y = jnp.sum(s_scr[...] * Cp, axis=1) + u * dskip_row                  # (L, BD)

    # gate: x_two.T computed directly in transposed orientation from the
    # wrapper-transposed input (replaces the identity-matmul transpose; the
    # gate bias rides along as the last matmul row).
    gate = _silu(jnp.dot(wg_ref[...], xg_ref[...], preferred_element_type=f32))

    out = y * gate + xw                                                    # gate + residual
    out_ref[...] = (jnp.dot(out, Wt_bd, preferred_element_type=f32)
                    + b_row).astype(out_ref.dtype)


def cobra_block_forward(x, params):
    """x: (B, L, D) with L == D == dim. Returns (B, L, D) float32."""
    W, b, cw3, cb, Wdbc, Wdt, bdt, A_log, Dp = params
    B, L, Dm = x.shape
    assert L == Dm, "module is only shape-consistent when seq_len == dim"
    R = Wdt.shape[1]
    N = (Wdbc.shape[0] - R) // 2
    BD = B * Dm
    f32 = jnp.float32

    Wt = W.T.astype(f32)                                             # (D, D)
    eyeB = jnp.eye(B, dtype=f32)
    Wdelta_eff = (Wdbc[:R, :].T @ Wdt.T).astype(f32)                 # fused delta proj (D, D)
    wbd_slab = jnp.concatenate(
        [jnp.kron(eyeB, Wt),                                         # block-diag W.T
         jnp.kron(eyeB, Wdelta_eff),                                 # block-diag delta proj
         jnp.kron(eyeB, jnp.ones((Dm, Dm), f32))], axis=0)           # block lane-sum (3BD, BD)

    bias_slab = jnp.stack([jnp.tile(b.astype(f32), B),
                           jnp.tile(bdt.astype(f32), B),
                           jnp.tile(Dp.astype(f32), B)], axis=0)     # (3, BD)

    # conv taps pre-broadcast to (L, BD); block-edge zeroing folded into taps.
    cw = cw3[:, 0, :].astype(f32)                                    # (L, 3) per-channel taps
    d_idx = jnp.arange(BD) % Dm
    ones_bd = jnp.ones((1, BD), f32)
    left_mask = (d_idx != 0).astype(f32)[None, :]
    right_mask = (d_idx != Dm - 1).astype(f32)[None, :]
    conv_slab = jnp.concatenate(
        [cw[:, 0:1] * left_mask, cw[:, 1:2] * ones_bd,
         cw[:, 2:3] * right_mask, cb.astype(f32)[:, None] * ones_bd],
        axis=0)                                                      # (4L, BD)

    A_T = (-jnp.exp(A_log)).T.astype(f32)                            # (N, D)
    ssm_slab = jnp.concatenate(
        [jnp.tile(Wdbc[R:R + N, :].astype(f32), (1, B)),
         jnp.tile(Wdbc[R + N:, :].astype(f32), (1, B)),
         jnp.tile(A_T, (1, B))], axis=0)                             # (3N, BD)

    # wide activations (batch packed along lanes) + transposed gate input.
    xw = jnp.transpose(x, (1, 0, 2)).reshape(L, BD).astype(f32)      # [l, b*D+d] = x[b,l,d]
    xg = jnp.transpose(x, (2, 0, 1)).reshape(Dm, BD).astype(f32)     # [e, b*D+d] = x[b,d,e]
    xg_aug = jnp.concatenate([xg, jnp.ones((1, BD), f32)], axis=0)   # ones row -> gate bias
    wg_slab = jnp.concatenate([W.astype(f32),
                               b.astype(f32)[:, None]], axis=1)      # (D, D+1)

    out_w = pl.pallas_call(
        cobra_block_kernel,
        out_shape=jax.ShapeDtypeStruct((L, BD), f32),
        scratch_shapes=[pltpu.VMEM((L, N, BD), f32)],
        # Grid-less call: the whole (tiny) problem lives in VMEM as full-array
        # blocks, so there is no per-step grid / DMA-descriptor overhead.
    )(xw, xg_aug, wg_slab, wbd_slab, bias_slab, conv_slab, ssm_slab)

    return jnp.transpose(out_w.reshape(L, B, Dm), (1, 0, 2))         # (B, L, D)


def cobra_block_reference(x, params):
    """Pure-JAX mirror of the (interpreted) PyTorch forward, for checking."""
    W, b, cw3, cb, Wdbc, Wdt, bdt, A_log, Dp = params
    B, L, Dm = x.shape
    R = Wdt.shape[1]
    N = (Wdbc.shape[0] - R) // 2
    lin = jnp.einsum("bld,ed->ble", x, W) + b
    cw = cw3[:, 0, :]
    pad = jnp.pad(lin, ((0, 0), (0, 0), (1, 1)))
    conv = (cw[None, :, 0:1] * pad[:, :, 0:-2]
            + cw[None, :, 1:2] * pad[:, :, 1:-1]
            + cw[None, :, 2:3] * pad[:, :, 2:]) + cb[None, :, None]
    u = _silu(conv)
    x_two = _silu(lin)
    dbc = jnp.einsum("bld,ed->ble", u, Wdbc)
    delta_raw = dbc[..., :R]
    Bm = dbc[..., R:R + N]
    Cm = dbc[..., R + N:]
    dt = jnp.einsum("blr,er->ble", delta_raw, Wdt) + bdt
    delta = _softplus(dt)
    A = -jnp.exp(A_log)
    state = jnp.zeros((B, Dm, N), jnp.float32)
    ys = []
    for i in range(L):
        dA = jnp.exp(delta[:, i, :, None] * A[None])
        dBu = delta[:, i, :, None] * Bm[:, i, None, :] * u[:, i, :, None]
        state = dA * state + dBu
        ys.append(jnp.einsum("bdn,bn->bd", state, Cm[:, i]))
    y = jnp.stack(ys, axis=1) + u * Dp[None, None, :]
    out = y * jnp.swapaxes(x_two, 1, 2) + x
    return jnp.einsum("bld,ed->ble", out, W) + b


if __name__ == "__main__":
    # small, self-consistent shapes: dim == dim_inner == seq_len
    dim = 16
    dt_rank = 4
    dim_inner = dim
    d_state = 32
    batch = 2
    seq = dim

    key = jax.random.PRNGKey(0)
    k = jax.random.split(key, 8)
    f32 = jnp.float32
    lin_bnd = 1.0 / jnp.sqrt(dim)
    W = jax.random.uniform(k[0], (dim, dim), f32, -lin_bnd, lin_bnd)
    b = jax.random.uniform(k[1], (dim,), f32, -lin_bnd, lin_bnd)
    conv_bnd = 1.0 / jnp.sqrt(3.0)
    cw3 = jax.random.uniform(k[2], (dim, 1, 3), f32, -conv_bnd, conv_bnd)
    cb = jax.random.uniform(k[3], (dim,), f32, -conv_bnd, conv_bnd)
    Wdbc = jax.random.uniform(k[4], (dt_rank + 2 * d_state, dim), f32, -lin_bnd, lin_bnd)
    dt_bnd = 1.0 / jnp.sqrt(dt_rank)
    Wdt = jax.random.uniform(k[5], (dim_inner, dt_rank), f32, -dt_bnd, dt_bnd)
    bdt = jax.random.uniform(k[6], (dim_inner,), f32, -dt_bnd, dt_bnd)
    A_log = jnp.log(jnp.tile(jnp.arange(1, d_state + 1, dtype=f32), (dim_inner, 1)))
    Dp = jnp.ones((dim_inner,), f32)
    params = (W, b, cw3, cb, Wdbc, Wdt, bdt, A_log, Dp)

    x = jax.random.normal(k[7], (batch, seq, dim), f32)

    out = cobra_block_forward(x, params)
    out = jax.block_until_ready(out)

    ref = cobra_block_reference(x, params)
    assert out.shape == (batch, seq, dim)
    assert bool(jnp.all(jnp.isfinite(out)))
    assert bool(jnp.allclose(out, ref, rtol=1e-2, atol=1e-2))
    print("KERNEL_OK")
</pallas_src>

<mosaic_0001>
module attributes {stable_mosaic.version = 11 : i64} {
  func.func @cobra_block_kernel(%arg0: memref<16x32xf32, #tpu.memory_space<vmem>>, %arg1: memref<17x32xf32, #tpu.memory_space<vmem>>, %arg2: memref<16x17xf32, #tpu.memory_space<vmem>>, %arg3: memref<96x32xf32, #tpu.memory_space<vmem>>, %arg4: memref<3x32xf32, #tpu.memory_space<vmem>>, %arg5: memref<64x32xf32, #tpu.memory_space<vmem>>, %arg6: memref<96x32xf32, #tpu.memory_space<vmem>>, %arg7: memref<16x32xf32, #tpu.memory_space<vmem>>, %arg8: memref<16x32x32xf32, #tpu.memory_space<vmem>>) attributes {dimension_semantics = [], scalar_prefetch = 0 : i64, scratch_operands = 1 : i64, tpu.core_type = #tpu.core_type<tc>} {
    %c0 = arith.constant 0 : index
    %c0_0 = arith.constant 0 : index
    %0 = vector.load %arg0[%c0, %c0_0] : memref<16x32xf32, #tpu.memory_space<vmem>>, vector<16x32xf32>
    %c0_1 = arith.constant 0 : index
    %c0_2 = arith.constant 0 : index
    %1 = vector.load %arg3[%c0_1, %c0_2] : memref<96x32xf32, #tpu.memory_space<vmem>>, vector<32x32xf32>
    %c32 = arith.constant 32 : index
    %c0_3 = arith.constant 0 : index
    %2 = vector.load %arg3[%c32, %c0_3] : memref<96x32xf32, #tpu.memory_space<vmem>>, vector<32x32xf32>
    %c64 = arith.constant 64 : index
    %c0_4 = arith.constant 0 : index
    %3 = vector.load %arg3[%c64, %c0_4] : memref<96x32xf32, #tpu.memory_space<vmem>>, vector<32x32xf32>
    %c0_5 = arith.constant 0 : index
    %c0_6 = arith.constant 0 : index
    %4 = vector.load %arg4[%c0_5, %c0_6] : memref<3x32xf32, #tpu.memory_space<vmem>>, vector<1x32xf32>
    %c1 = arith.constant 1 : index
    %c0_7 = arith.constant 0 : index
    %5 = vector.load %arg4[%c1, %c0_7] : memref<3x32xf32, #tpu.memory_space<vmem>>, vector<1x32xf32>
    %c2 = arith.constant 2 : index
    %c0_8 = arith.constant 0 : index
    %6 = vector.load %arg4[%c2, %c0_8] : memref<3x32xf32, #tpu.memory_space<vmem>>, vector<1x32xf32>
    %c0_9 = arith.constant 0 : index
    %c0_10 = arith.constant 0 : index
    %7 = vector.load %arg5[%c0_9, %c0_10] : memref<64x32xf32, #tpu.memory_space<vmem>>, vector<16x32xf32>
    %c16 = arith.constant 16 : index
    %c0_11 = arith.constant 0 : index
    %8 = vector.load %arg5[%c16, %c0_11] : memref<64x32xf32, #tpu.memory_space<vmem>>, vector<16x32xf32>
    %c32_12 = arith.constant 32 : index
    %c0_13 = arith.constant 0 : index
    %9 = vector.load %arg5[%c32_12, %c0_13] : memref<64x32xf32, #tpu.memory_space<vmem>>, vector<16x32xf32>
    %c48 = arith.constant 48 : index
    %c0_14 = arith.constant 0 : index
    %10 = vector.load %arg5[%c48, %c0_14] : memref<64x32xf32, #tpu.memory_space<vmem>>, vector<16x32xf32>
    %c0_15 = arith.constant 0 : index
    %c0_16 = arith.constant 0 : index
    %11 = vector.load %arg6[%c0_15, %c0_16] : memref<96x32xf32, #tpu.memory_space<vmem>>, vector<32x32xf32>
    %c32_17 = arith.constant 32 : index
    %c0_18 = arith.constant 0 : index
    %12 = vector.load %arg6[%c32_17, %c0_18] : memref<96x32xf32, #tpu.memory_space<vmem>>, vector<32x32xf32>
    %c64_19 = arith.constant 64 : index
    %c0_20 = arith.constant 0 : index
    %13 = vector.load %arg6[%c64_19, %c0_20] : memref<96x32xf32, #tpu.memory_space<vmem>>, vector<32x32xf32>
    %cst = arith.constant dense<0.000000e+00> : vector<16x32xf32>
    %14 = tpu.matmul %0, %1, %cst {dimension_numbers = #tpu.dot_dimension_numbers<[1], [0], [0], [1], [0, 0, 1, 1], [], []>} : vector<16x32xf32>, vector<32x32xf32>, vector<16x32xf32> -> vector<16x32xf32>
    %15 = vector.broadcast %4 : vector<1x32xf32> to vector<16x32xf32>
    %16 = arith.addf %14, %15 : vector<16x32xf32>
    %cst_21 = arith.constant 0.000000e+00 : f32
    %17 = vector.broadcast %cst_21 : f32 to vector<16x1xf32>
    %18 = vector.extract_strided_slice %16 {offsets = [0, 0], sizes = [16, 31], strides = [1, 1]} : vector<16x32xf32> to vector<16x31xf32>
    %19 = tpu.concatenate %17, %18 in 1 : vector<16x1xf32>, vector<16x31xf32> -> vector<16x32xf32>
    %20 = vector.extract_strided_slice %16 {offsets = [0, 1], sizes = [16, 31], strides = [1, 1]} : vector<16x32xf32> to vector<16x31xf32>
    %21 = tpu.concatenate %20, %17 in 1 : vector<16x31xf32>, vector<16x1xf32> -> vector<16x32xf32>
    %22 = arith.mulf %7, %19 : vector<16x32xf32>
    %23 = arith.mulf %8, %16 : vector<16x32xf32>
    %24 = arith.addf %22, %23 : vector<16x32xf32>
    %25 = arith.mulf %9, %21 : vector<16x32xf32>
    %26 = arith.addf %24, %25 : vector<16x32xf32>
    %27 = arith.addf %26, %10 : vector<16x32xf32>
    %cst_22 = arith.constant 0.000000e+00 : f32
    %28 = vector.broadcast %cst_22 : f32 to vector<16x32xf32>
    %29 = arith.subf %28, %27 : vector<16x32xf32>
    %30 = math.exp %29 : vector<16x32xf32>
    %cst_23 = arith.constant 1.000000e+00 : f32
    %31 = vector.broadcast %cst_23 : f32 to vector<16x32xf32>
    %32 = arith.addf %31, %30 : vector<16x32xf32>
    %cst_24 = arith.constant 1.000000e+00 : f32
    %33 = vector.broadcast %cst_24 : f32 to vector<16x32xf32>
    %34 = arith.divf %33, %32 : vector<16x32xf32>
    %35 = arith.mulf %27, %34 : vector<16x32xf32>
    %cst_25 = arith.constant dense<0.000000e+00> : vector<16x32xf32>
    %36 = tpu.matmul %35, %2, %cst_25 {dimension_numbers = #tpu.dot_dimension_numbers<[1], [0], [0], [1], [0, 0, 1, 1], [], []>} : vector<16x32xf32>, vector<32x32xf32>, vector<16x32xf32> -> vector<16x32xf32>
    %37 = vector.broadcast %5 : vector<1x32xf32> to vector<16x32xf32>
    %38 = arith.addf %36, %37 : vector<16x32xf32>
    %cst_26 = arith.constant 2.000000e+01 : f32
    %39 = vector.broadcast %cst_26 : f32 to vector<16x32xf32>
    %40 = arith.cmpf ogt, %38, %39 : vector<16x32xf32>
    %cst_27 = arith.constant 2.000000e+01 : f32
    %41 = vector.broadcast %cst_27 : f32 to vector<16x32xf32>
    %42 = arith.minimumf %38, %41 : vector<16x32xf32>
    %43 = math.exp %42 : vector<16x32xf32>
    %cst_28 = arith.constant 1.000000e+00 : f32
    %44 = vector.broadcast %cst_28 : f32 to vector<16x32xf32>
    %45 = arith.addf %44, %43 : vector<16x32xf32>
    %46 = math.log %45 : vector<16x32xf32>
    %47 = arith.select %40, %38, %46 : vector<16x32xi1>, vector<16x32xf32>
    %48 = arith.mulf %47, %35 : vector<16x32xf32>
    %49 = vector.shape_cast %47 : vector<16x32xf32> to vector<16x1x32xf32>
    %50 = vector.shape_cast %13 : vector<32x32xf32> to vector<1x32x32xf32>
    %51 = vector.broadcast %49 : vector<16x1x32xf32> to vector<16x32x32xf32>
    %52 = vector.broadcast %50 : vector<1x32x32xf32> to vector<16x32x32xf32>
    %53 = arith.mulf %51, %52 : vector<16x32x32xf32>
    %54 = math.exp %53 : vector<16x32x32xf32>
    %55 = vector.shape_cast %11 : vector<32x32xf32> to vector<1x32x32xf32>
    %56 = vector.shape_cast %35 : vector<16x32xf32> to vector<16x1x32xf32>
    %57 = vector.broadcast %55 : vector<1x32x32xf32> to vector<16x32x32xf32>
    %58 = vector.broadcast %56 : vector<16x1x32xf32> to vector<16x32x32xf32>
    %59 = arith.mulf %57, %58 : vector<16x32x32xf32>
    %60 = vector.shape_cast %59 : vector<16x32x32xf32> to vector<512x32xf32>
    %cst_29 = arith.constant dense<0.000000e+00> : vector<512x32xf32>
    %61 = tpu.matmul %60, %3, %cst_29 {dimension_numbers = #tpu.dot_dimension_numbers<[1], [0], [0], [1], [0, 0, 1, 1], [], []>} : vector<512x32xf32>, vector<32x32xf32>, vector<512x32xf32> -> vector<512x32xf32>
    %62 = vector.shape_cast %61 : vector<512x32xf32> to vector<16x32x32xf32>
    %63 = vector.shape_cast %48 : vector<16x32xf32> to vector<16x1x32xf32>
    %64 = vector.broadcast %63 : vector<16x1x32xf32> to vector<16x32x32xf32>
    %65 = arith.mulf %62, %64 : vector<16x32x32xf32>
    %cst_30 = arith.constant 0.000000e+00 : f32
    %66 = vector.broadcast %cst_30 : f32 to vector<32x32xf32>
    %67 = vector.extract_strided_slice %54 {offsets = [0, 0, 0], sizes = [1, 32, 32], strides = [1, 1, 1]} : vector<16x32x32xf32> to vector<1x32x32xf32>
    %68 = vector.shape_cast %67 : vector<1x32x32xf32> to vector<32x32xf32>
    %69 = arith.mulf %68, %66 : vector<32x32xf32>
    %70 = vector.extract_strided_slice %65 {offsets = [0, 0, 0], sizes = [1, 32, 32], strides = [1, 1, 1]} : vector<16x32x32xf32> to vector<1x32x32xf32>
    %71 = vector.shape_cast %70 : vector<1x32x32xf32> to vector<32x32xf32>
    %72 = arith.addf %69, %71 : vector<32x32xf32>
    %c0_31 = arith.constant 0 : index
    %c0_32 = arith.constant 0 : index
    %c0_33 = arith.constant 0 : index
    %73 = vector.load %arg8[%c0_31, %c0_32, %c0_33] : memref<16x32x32xf32, #tpu.memory_space<vmem>>, vector<1x32x32xf32>
    %74 = vector.shape_cast %73 : vector<1x32x32xf32> to vector<32x32xf32>
    %75 = vector.shape_cast %72 : vector<32x32xf32> to vector<1x32x32xf32>
    tpu.vector_store %arg8[%c0_31, %c0_32, %c0_33], %75 {strides = array<i32>} : memref<16x32x32xf32, #tpu.memory_space<vmem>>, vector<1x32x32xf32>,
    %76 = vector.extract_strided_slice %54 {offsets = [1, 0, 0], sizes = [1, 32, 32], strides = [1, 1, 1]} : vector<16x32x32xf32> to vector<1x32x32xf32>
    %77 = vector.shape_cast %76 : vector<1x32x32xf32> to vector<32x32xf32>
    %78 = arith.mulf %77, %72 : vector<32x32xf32>
    %79 = vector.extract_strided_slice %65 {offsets = [1, 0, 0], sizes = [1, 32, 32], strides = [1, 1, 1]} : vector<16x32x32xf32> to vector<1x32x32xf32>
    %80 = vector.shape_cast %79 : vector<1x32x32xf32> to vector<32x32xf32>
    %81 = arith.addf %78, %80 : vector<32x32xf32>
    %c1_34 = arith.constant 1 : index
    %c0_35 = arith.constant 0 : index
    %c0_36 = arith.constant 0 : index
    %82 = vector.load %arg8[%c1_34, %c0_35, %c0_36] : memref<16x32x32xf32, #tpu.memory_space<vmem>>, vector<1x32x32xf32>
    %83 = vector.shape_cast %82 : vector<1x32x32xf32> to vector<32x32xf32>
    %84 = vector.shape_cast %81 : vector<32x32xf32> to vector<1x32x32xf32>
    tpu.vector_store %arg8[%c1_34, %c0_35, %c0_36], %84 {strides = array<i32>} : memref<16x32x32xf32, #tpu.memory_space<vmem>>, vector<1x32x32xf32>,
    %85 = vector.extract_strided_slice %54 {offsets = [2, 0, 0], sizes = [1, 32, 32], strides = [1, 1, 1]} : vector<16x32x32xf32> to vector<1x32x32xf32>
    %86 = vector.shape_cast %85 : vector<1x32x32xf32> to vector<32x32xf32>
    %87 = arith.mulf %86, %81 : vector<32x32xf32>
    %88 = vector.extract_strided_slice %65 {offsets = [2, 0, 0], sizes = [1, 32, 32], strides = [1, 1, 1]} : vector<16x32x32xf32> to vector<1x32x32xf32>
    %89 = vector.shape_cast %88 : vector<1x32x32xf32> to vector<32x32xf32>
    %90 = arith.addf %87, %89 : vector<32x32xf32>
    %c2_37 = arith.constant 2 : index
    %c0_38 = arith.constant 0 : index
    %c0_39 = arith.constant 0 : index
    %91 = vector.load %arg8[%c2_37, %c0_38, %c0_39] : memref<16x32x32xf32, #tpu.memory_space<vmem>>, vector<1x32x32xf32>
    %92 = vector.shape_cast %91 : vector<1x32x32xf32> to vector<32x32xf32>
    %93 = vector.shape_cast %90 : vector<32x32xf32> to vector<1x32x32xf32>
    tpu.vector_store %arg8[%c2_37, %c0_38, %c0_39], %93 {strides = array<i32>} : memref<16x32x32xf32, #tpu.memory_space<vmem>>, vector<1x32x32xf32>,
    %94 = vector.extract_strided_slice %54 {offsets = [3, 0, 0], sizes = [1, 32, 32], strides = [1, 1, 1]} : vector<16x32x32xf32> to vector<1x32x32xf32>
    %95 = vector.shape_cast %94 : vector<1x32x32xf32> to vector<32x32xf32>
    %96 = arith.mulf %95, %90 : vector<32x32xf32>
    %97 = vector.extract_strided_slice %65 {offsets = [3, 0, 0], sizes = [1, 32, 32], strides = [1, 1, 1]} : vector<16x32x32xf32> to vector<1x32x32xf32>
    %98 = vector.shape_cast %97 : vector<1x32x32xf32> to vector<32x32xf32>
    %99 = arith.addf %96, %98 : vector<32x32xf32>
    %c3 = arith.constant 3 : index
    %c0_40 = arith.constant 0 : index
    %c0_41 = arith.constant 0 : index
    %100 = vector.load %arg8[%c3, %c0_40, %c0_41] : memref<16x32x32xf32, #tpu.memory_space<vmem>>, vector<1x32x32xf32>
    %101 = vector.shape_cast %100 : vector<1x32x32xf32> to vector<32x32xf32>
    %102 = vector.shape_cast %99 : vector<32x32xf32> to vector<1x32x32xf32>
    tpu.vector_store %arg8[%c3, %c0_40, %c0_41], %102 {strides = array<i32>} : memref<16x32x32xf32, #tpu.memory_space<vmem>>, vector<1x32x32xf32>,
    %103 = vector.extract_strided_slice %54 {offsets = [4, 0, 0], sizes = [1, 32, 32], strides = [1, 1, 1]} : vector<16x32x32xf32> to vector<1x32x32xf32>
    %104 = vector.shape_cast %103 : vector<1x32x32xf32> to vector<32x32xf32>
    %105 = arith.mulf %104, %99 : vector<32x32xf32>
    %106 = vector.extract_strided_slice %65 {offsets = [4, 0, 0], sizes = [1, 32, 32], strides = [1, 1, 1]} : vector<16x32x32xf32> to vector<1x32x32xf32>
    %107 = vector.shape_cast %106 : vector<1x32x32xf32> to vector<32x32xf32>
    %108 = arith.addf %105, %107 : vector<32x32xf32>
    %c4 = arith.constant 4 : index
    %c0_42 = arith.constant 0 : index
    %c0_43 = arith.constant 0 : index
    %109 = vector.load %arg8[%c4, %c0_42, %c0_43] : memref<16x32x32xf32, #tpu.memory_space<vmem>>, vector<1x32x32xf32>
    %110 = vector.shape_cast %109 : vector<1x32x32xf32> to vector<32x32xf32>
    %111 = vector.shape_cast %108 : vector<32x32xf32> to vector<1x32x32xf32>
    tpu.vector_store %arg8[%c4, %c0_42, %c0_43], %111 {strides = array<i32>} : memref<16x32x32xf32, #tpu.memory_space<vmem>>, vector<1x32x32xf32>,
    %112 = vector.extract_strided_slice %54 {offsets = [5, 0, 0], sizes = [1, 32, 32], strides = [1, 1, 1]} : vector<16x32x32xf32> to vector<1x32x32xf32>
    %113 = vector.shape_cast %112 : vector<1x32x32xf32> to vector<32x32xf32>
    %114 = arith.mulf %113, %108 : vector<32x32xf32>
    %115 = vector.extract_strided_slice %65 {offsets = [5, 0, 0], sizes = [1, 32, 32], strides = [1, 1, 1]} : vector<16x32x32xf32> to vector<1x32x32xf32>
    %116 = vector.shape_cast %115 : vector<1x32x32xf32> to vector<32x32xf32>
    %117 = arith.addf %114, %116 : vector<32x32xf32>
    %c5 = arith.constant 5 : index
    %c0_44 = arith.constant 0 : index
    %c0_45 = arith.constant 0 : index
    %118 = vector.load %arg8[%c5, %c0_44, %c0_45] : memref<16x32x32xf32, #tpu.memory_space<vmem>>, vector<1x32x32xf32>
    %119 = vector.shape_cast %118 : vector<1x32x32xf32> to vector<32x32xf32>
    %120 = vector.shape_cast %117 : vector<32x32xf32> to vector<1x32x32xf32>
    tpu.vector_store %arg8[%c5, %c0_44, %c0_45], %120 {strides = array<i32>} : memref<16x32x32xf32, #tpu.memory_space<vmem>>, vector<1x32x32xf32>,
    %121 = vector.extract_strided_slice %54 {offsets = [6, 0, 0], sizes = [1, 32, 32], strides = [1, 1, 1]} : vector<16x32x32xf32> to vector<1x32x32xf32>
    %122 = vector.shape_cast %121 : vector<1x32x32xf32> to vector<32x32xf32>
    %123 = arith.mulf %122, %117 : vector<32x32xf32>
    %124 = vector.extract_strided_slice %65 {offsets = [6, 0, 0], sizes = [1, 32, 32], strides = [1, 1, 1]} : vector<16x32x32xf32> to vector<1x32x32xf32>
    %125 = vector.shape_cast %124 : vector<1x32x32xf32> to vector<32x32xf32>
    %126 = arith.addf %123, %125 : vector<32x32xf32>
    %c6 = arith.constant 6 : index
    %c0_46 = arith.constant 0 : index
    %c0_47 = arith.constant 0 : index
    %127 = vector.load %arg8[%c6, %c0_46, %c0_47] : memref<16x32x32xf32, #tpu.memory_space<vmem>>, vector<1x32x32xf32>
    %128 = vector.shape_cast %127 : vector<1x32x32xf32> to vector<32x32xf32>
    %129 = vector.shape_cast %126 : vector<32x32xf32> to vector<1x32x32xf32>
    tpu.vector_store %arg8[%c6, %c0_46, %c0_47], %129 {strides = array<i32>} : memref<16x32x32xf32, #tpu.memory_space<vmem>>, vector<1x32x32xf32>,
    %130 = vector.extract_strided_slice %54 {offsets = [7, 0, 0], sizes = [1, 32, 32], strides = [1, 1, 1]} : vector<16x32x32xf32> to vector<1x32x32xf32>
    %131 = vector.shape_cast %130 : vector<1x32x32xf32> to vector<32x32xf32>
    %132 = arith.mulf %131, %126 : vector<32x32xf32>
    %133 = vector.extract_strided_slice %65 {offsets = [7, 0, 0], sizes = [1, 32, 32], strides = [1, 1, 1]} : vector<16x32x32xf32> to vector<1x32x32xf32>
    %134 = vector.shape_cast %133 : vector<1x32x32xf32> to vector<32x32xf32>
    %135 = arith.addf %132, %134 : vector<32x32xf32>
    %c7 = arith.constant 7 : index
    %c0_48 = arith.constant 0 : index
    %c0_49 = arith.constant 0 : index
    %136 = vector.load %arg8[%c7, %c0_48, %c0_49] : memref<16x32x32xf32, #tpu.memory_space<vmem>>, vector<1x32x32xf32>
    %137 = vector.shape_cast %136 : vector<1x32x32xf32> to vector<32x32xf32>
    %138 = vector.shape_cast %135 : vector<32x32xf32> to vector<1x32x32xf32>
    tpu.vector_store %arg8[%c7, %c0_48, %c0_49], %138 {strides = array<i32>} : memref<16x32x32xf32, #tpu.memory_space<vmem>>, vector<1x32x32xf32>,
    %139 = vector.extract_strided_slice %54 {offsets = [8, 0, 0], sizes = [1, 32, 32], strides = [1, 1, 1]} : vector<16x32x32xf32> to vector<1x32x32xf32>
    %140 = vector.shape_cast %139 : vector<1x32x32xf32> to vector<32x32xf32>
    %141 = arith.mulf %140, %135 : vector<32x32xf32>
    %142 = vector.extract_strided_slice %65 {offsets = [8, 0, 0], sizes = [1, 32, 32], strides = [1, 1, 1]} : vector<16x32x32xf32> to vector<1x32x32xf32>
    %143 = vector.shape_cast %142 : vector<1x32x32xf32> to vector<32x32xf32>
    %144 = arith.addf %141, %143 : vector<32x32xf32>
    %c8 = arith.constant 8 : index
    %c0_50 = arith.constant 0 : index
    %c0_51 = arith.constant 0 : index
    %145 = vector.load %arg8[%c8, %c0_50, %c0_51] : memref<16x32x32xf32, #tpu.memory_space<vmem>>, vector<1x32x32xf32>
    %146 = vector.shape_cast %145 : vector<1x32x32xf32> to vector<32x32xf32>
    %147 = vector.shape_cast %144 : vector<32x32xf32> to vector<1x32x32xf32>
    tpu.vector_store %arg8[%c8, %c0_50, %c0_51], %147 {strides = array<i32>} : memref<16x32x32xf32, #tpu.memory_space<vmem>>, vector<1x32x32xf32>,
    %148 = vector.extract_strided_slice %54 {offsets = [9, 0, 0], sizes = [1, 32, 32], strides = [1, 1, 1]} : vector<16x32x32xf32> to vector<1x32x32xf32>
    %149 = vector.shape_cast %148 : vector<1x32x32xf32> to vector<32x32xf32>
    %150 = arith.mulf %149, %144 : vector<32x32xf32>
    %151 = vector.extract_strided_slice %65 {offsets = [9, 0, 0], sizes = [1, 32, 32], strides = [1, 1, 1]} : vector<16x32x32xf32> to vector<1x32x32xf32>
    %152 = vector.shape_cast %151 : vector<1x32x32xf32> to vector<32x32xf32>
    %153 = arith.addf %150, %152 : vector<32x32xf32>
    %c9 = arith.constant 9 : index
    %c0_52 = arith.constant 0 : index
    %c0_53 = arith.constant 0 : index
    %154 = vector.load %arg8[%c9, %c0_52, %c0_53] : memref<16x32x32xf32, #tpu.memory_space<vmem>>, vector<1x32x32xf32>
    %155 = vector.shape_cast %154 : vector<1x32x32xf32> to vector<32x32xf32>
    %156 = vector.shape_cast %153 : vector<32x32xf32> to vector<1x32x32xf32>
    tpu.vector_store %arg8[%c9, %c0_52, %c0_53], %156 {strides = array<i32>} : memref<16x32x32xf32, #tpu.memory_space<vmem>>, vector<1x32x32xf32>,
    %157 = vector.extract_strided_slice %54 {offsets = [10, 0, 0], sizes = [1, 32, 32], strides = [1, 1, 1]} : vector<16x32x32xf32> to vector<1x32x32xf32>
    %158 = vector.shape_cast %157 : vector<1x32x32xf32> to vector<32x32xf32>
    %159 = arith.mulf %158, %153 : vector<32x32xf32>
    %160 = vector.extract_strided_slice %65 {offsets = [10, 0, 0], sizes = [1, 32, 32], strides = [1, 1, 1]} : vector<16x32x32xf32> to vector<1x32x32xf32>
    %161 = vector.shape_cast %160 : vector<1x32x32xf32> to vector<32x32xf32>
    %162 = arith.addf %159, %161 : vector<32x32xf32>
    %c10 = arith.constant 10 : index
    %c0_54 = arith.constant 0 : index
    %c0_55 = arith.constant 0 : index
    %163 = vector.load %arg8[%c10, %c0_54, %c0_55] : memref<16x32x32xf32, #tpu.memory_space<vmem>>, vector<1x32x32xf32>
    %164 = vector.shape_cast %163 : vector<1x32x32xf32> to vector<32x32xf32>
    %165 = vector.shape_cast %162 : vector<32x32xf32> to vector<1x32x32xf32>
    tpu.vector_store %arg8[%c10, %c0_54, %c0_55], %165 {strides = array<i32>} : memref<16x32x32xf32, #tpu.memory_space<vmem>>, vector<1x32x32xf32>,
    %166 = vector.extract_strided_slice %54 {offsets = [11, 0, 0], sizes = [1, 32, 32], strides = [1, 1, 1]} : vector<16x32x32xf32> to vector<1x32x32xf32>
    %167 = vector.shape_cast %166 : vector<1x32x32xf32> to vector<32x32xf32>
    %168 = arith.mulf %167, %162 : vector<32x32xf32>
    %169 = vector.extract_strided_slice %65 {offsets = [11, 0, 0], sizes = [1, 32, 32], strides = [1, 1, 1]} : vector<16x32x32xf32> to vector<1x32x32xf32>
    %170 = vector.shape_cast %169 : vector<1x32x32xf32> to vector<32x32xf32>
    %171 = arith.addf %168, %170 : vector<32x32xf32>
    %c11 = arith.constant 11 : index
    %c0_56 = arith.constant 0 : index
    %c0_57 = arith.constant 0 : index
    %172 = vector.load %arg8[%c11, %c0_56, %c0_57] : memref<16x32x32xf32, #tpu.memory_space<vmem>>, vector<1x32x32xf32>
    %173 = vector.shape_cast %172 : vector<1x32x32xf32> to vector<32x32xf32>
    %174 = vector.shape_cast %171 : vector<32x32xf32> to vector<1x32x32xf32>
    tpu.vector_store %arg8[%c11, %c0_56, %c0_57], %174 {strides = array<i32>} : memref<16x32x32xf32, #tpu.memory_space<vmem>>, vector<1x32x32xf32>,
    %175 = vector.extract_strided_slice %54 {offsets = [12, 0, 0], sizes = [1, 32, 32], strides = [1, 1, 1]} : vector<16x32x32xf32> to vector<1x32x32xf32>
    %176 = vector.shape_cast %175 : vector<1x32x32xf32> to vector<32x32xf32>
    %177 = arith.mulf %176, %171 : vector<32x32xf32>
    %178 = vector.extract_strided_slice %65 {offsets = [12, 0, 0], sizes = [1, 32, 32], strides = [1, 1, 1]} : vector<16x32x32xf32> to vector<1x32x32xf32>
    %179 = vector.shape_cast %178 : vector<1x32x32xf32> to vector<32x32xf32>
    %180 = arith.addf %177, %179 : vector<32x32xf32>
    %c12 = arith.constant 12 : index
    %c0_58 = arith.constant 0 : index
    %c0_59 = arith.constant 0 : index
    %181 = vector.load %arg8[%c12, %c0_58, %c0_59] : memref<16x32x32xf32, #tpu.memory_space<vmem>>, vector<1x32x32xf32>
    %182 = vector.shape_cast %181 : vector<1x32x32xf32> to vector<32x32xf32>
    %183 = vector.shape_cast %180 : vector<32x32xf32> to vector<1x32x32xf32>
    tpu.vector_store %arg8[%c12, %c0_58, %c0_59], %183 {strides = array<i32>} : memref<16x32x32xf32, #tpu.memory_space<vmem>>, vector<1x32x32xf32>,
    %184 = vector.extract_strided_slice %54 {offsets = [13, 0, 0], sizes = [1, 32, 32], strides = [1, 1, 1]} : vector<16x32x32xf32> to vector<1x32x32xf32>
    %185 = vector.shape_cast %184 : vector<1x32x32xf32> to vector<32x32xf32>
    %186 = arith.mulf %185, %180 : vector<32x32xf32>
    %187 = vector.extract_strided_slice %65 {offsets = [13, 0, 0], sizes = [1, 32, 32], strides = [1, 1, 1]} : vector<16x32x32xf32> to vector<1x32x32xf32>
    %188 = vector.shape_cast %187 : vector<1x32x32xf32> to vector<32x32xf32>
    %189 = arith.addf %186, %188 : vector<32x32xf32>
    %c13 = arith.constant 13 : index
    %c0_60 = arith.constant 0 : index
    %c0_61 = arith.constant 0 : index
    %190 = vector.load %arg8[%c13, %c0_60, %c0_61] : memref<16x32x32xf32, #tpu.memory_space<vmem>>, vector<1x32x32xf32>
    %191 = vector.shape_cast %190 : vector<1x32x32xf32> to vector<32x32xf32>
    %192 = vector.shape_cast %189 : vector<32x32xf32> to vector<1x32x32xf32>
    tpu.vector_store %arg8[%c13, %c0_60, %c0_61], %192 {strides = array<i32>} : memref<16x32x32xf32, #tpu.memory_space<vmem>>, vector<1x32x32xf32>,
    %193 = vector.extract_strided_slice %54 {offsets = [14, 0, 0], sizes = [1, 32, 32], strides = [1, 1, 1]} : vector<16x32x32xf32> to vector<1x32x32xf32>
    %194 = vector.shape_cast %193 : vector<1x32x32xf32> to vector<32x32xf32>
    %195 = arith.mulf %194, %189 : vector<32x32xf32>
    %196 = vector.extract_strided_slice %65 {offsets = [14, 0, 0], sizes = [1, 32, 32], strides = [1, 1, 1]} : vector<16x32x32xf32> to vector<1x32x32xf32>
    %197 = vector.shape_cast %196 : vector<1x32x32xf32> to vector<32x32xf32>
    %198 = arith.addf %195, %197 : vector<32x32xf32>
    %c14 = arith.constant 14 : index
    %c0_62 = arith.constant 0 : index
    %c0_63 = arith.constant 0 : index
    %199 = vector.load %arg8[%c14, %c0_62, %c0_63] : memref<16x32x32xf32, #tpu.memory_space<vmem>>, vector<1x32x32xf32>
    %200 = vector.shape_cast %199 : vector<1x32x32xf32> to vector<32x32xf32>
    %201 = vector.shape_cast %198 : vector<32x32xf32> to vector<1x32x32xf32>
    tpu.vector_store %arg8[%c14, %c0_62, %c0_63], %201 {strides = array<i32>} : memref<16x32x32xf32, #tpu.memory_space<vmem>>, vector<1x32x32xf32>,
    %202 = vector.extract_strided_slice %54 {offsets = [15, 0, 0], sizes = [1, 32, 32], strides = [1, 1, 1]} : vector<16x32x32xf32> to vector<1x32x32xf32>
    %203 = vector.shape_cast %202 : vector<1x32x32xf32> to vector<32x32xf32>
    %204 = arith.mulf %203, %198 : vector<32x32xf32>
    %205 = vector.extract_strided_slice %65 {offsets = [15, 0, 0], sizes = [1, 32, 32], strides = [1, 1, 1]} : vector<16x32x32xf32> to vector<1x32x32xf32>
    %206 = vector.shape_cast %205 : vector<1x32x32xf32> to vector<32x32xf32>
    %207 = arith.addf %204, %206 : vector<32x32xf32>
    %c15 = arith.constant 15 : index
    %c0_64 = arith.constant 0 : index
    %c0_65 = arith.constant 0 : index
    %208 = vector.load %arg8[%c15, %c0_64, %c0_65] : memref<16x32x32xf32, #tpu.memory_space<vmem>>, vector<1x32x32xf32>
    %209 = vector.shape_cast %208 : vector<1x32x32xf32> to vector<32x32xf32>
    %210 = vector.shape_cast %207 : vector<32x32xf32> to vector<1x32x32xf32>
    tpu.vector_store %arg8[%c15, %c0_64, %c0_65], %210 {strides = array<i32>} : memref<16x32x32xf32, #tpu.memory_space<vmem>>, vector<1x32x32xf32>,
    %211 = vector.shape_cast %12 : vector<32x32xf32> to vector<1x32x32xf32>
    %212 = vector.shape_cast %35 : vector<16x32xf32> to vector<16x1x32xf32>
    %213 = vector.broadcast %211 : vector<1x32x32xf32> to vector<16x32x32xf32>
    %214 = vector.broadcast %212 : vector<16x1x32xf32> to vector<16x32x32xf32>
    %215 = arith.mulf %213, %214 : vector<16x32x32xf32>
    %216 = vector.shape_cast %215 : vector<16x32x32xf32> to vector<512x32xf32>
    %cst_66 = arith.constant dense<0.000000e+00> : vector<512x32xf32>
    %217 = tpu.matmul %216, %3, %cst_66 {dimension_numbers = #tpu.dot_dimension_numbers<[1], [0], [0], [1], [0, 0, 1, 1], [], []>} : vector<512x32xf32>, vector<32x32xf32>, vector<512x32xf32> -> vector<512x32xf32>
    %218 = vector.shape_cast %217 : vector<512x32xf32> to vector<16x32x32xf32>
    %c0_67 = arith.constant 0 : index
    %c0_68 = arith.constant 0 : index
    %c0_69 = arith.constant 0 : index
    %219 = vector.load %arg8[%c0_67, %c0_68, %c0_69] : memref<16x32x32xf32, #tpu.memory_space<vmem>>, vector<16x32x32xf32>
    %220 = arith.mulf %219, %218 : vector<16x32x32xf32>
    %cst_70 = arith.constant dense<0.000000e+00> : vector<16x32xf32>
    %221 = vector.multi_reduction <add>, %220, %cst_70 [1] : vector<16x32x32xf32> to vector<16x32xf32>
    %222 = vector.broadcast %6 : vector<1x32xf32> to vector<16x32xf32>
    %223 = arith.mulf %35, %222 : vector<16x32xf32>
    %224 = arith.addf %221, %223 : vector<16x32xf32>
    %c0_71 = arith.constant 0 : index
    %c0_72 = arith.constant 0 : index
    %225 = vector.load %arg2[%c0_71, %c0_72] : memref<16x17xf32, #tpu.memory_space<vmem>>, vector<16x17xf32>
    %c0_73 = arith.constant 0 : index
    %c0_74 = arith.constant 0 : index
    %226 = vector.load %arg1[%c0_73, %c0_74] : memref<17x32xf32, #tpu.memory_space<vmem>>, vector<17x32xf32>
    %cst_75 = arith.constant dense<0.000000e+00> : vector<16x32xf32>
    %227 = tpu.matmul %225, %226, %cst_75 {dimension_numbers = #tpu.dot_dimension_numbers<[1], [0], [0], [1], [0, 0, 1, 1], [], []>} : vector<16x17xf32>, vector<17x32xf32>, vector<16x32xf32> -> vector<16x32xf32>
    %cst_76 = arith.constant 0.000000e+00 : f32
    %228 = vector.broadcast %cst_76 : f32 to vector<16x32xf32>
    %229 = arith.subf %228, %227 : vector<16x32xf32>
    %230 = math.exp %229 : vector<16x32xf32>
    %cst_77 = arith.constant 1.000000e+00 : f32
    %231 = vector.broadcast %cst_77 : f32 to vector<16x32xf32>
    %232 = arith.addf %231, %230 : vector<16x32xf32>
    %cst_78 = arith.constant 1.000000e+00 : f32
    %233 = vector.broadcast %cst_78 : f32 to vector<16x32xf32>
    %234 = arith.divf %233, %232 : vector<16x32xf32>
    %235 = arith.mulf %227, %234 : vector<16x32xf32>
    %236 = arith.mulf %224, %235 : vector<16x32xf32>
    %237 = arith.addf %236, %0 : vector<16x32xf32>
    %cst_79 = arith.constant dense<0.000000e+00> : vector<16x32xf32>
    %238 = tpu.matmul %237, %1, %cst_79 {dimension_numbers = #tpu.dot_dimension_numbers<[1], [0], [0], [1], [0, 0, 1, 1], [], []>} : vector<16x32xf32>, vector<32x32xf32>, vector<16x32xf32> -> vector<16x32xf32>
    %239 = vector.broadcast %4 : vector<1x32xf32> to vector<16x32xf32>
    %240 = arith.addf %238, %239 : vector<16x32xf32>
    %c0_80 = arith.constant 0 : index
    %c0_81 = arith.constant 0 : index
    %241 = vector.load %arg7[%c0_80, %c0_81] : memref<16x32xf32, #tpu.memory_space<vmem>>, vector<16x32xf32>
    tpu.vector_store %arg7[%c0_80, %c0_81], %240 {strides = array<i32>} : memref<16x32xf32, #tpu.memory_space<vmem>>, vector<16x32xf32>,
    return
  }
}

</mosaic_0001>

<bundles_post_ra>
// kernel: tpu_custom_call.1
= control target key start
LH: loop header
LB: loop body
LE: loop exit
PB: predicated region body
PF: predicated region fallthrough
CT: control target
= control target key end

     0   :  { %vm68_vm0 = vcmask 261120   ;;  %s5973_s0 = inlined_call_operand.vmem [shape: f32[16,32], index: 0, kind: input, shape index: {}]   ;;  %s5974_s1 = inlined_call_operand.vmem [shape: f32[17,32], index: 1, kind: input, shape index: {}]   ;;  %s5975_s2 = inlined_call_operand.vmem [shape: f32[16,17], index: 2, kind: input, shape index: {}]   ;;  %s5976_s3 = inlined_call_operand.vmem [shape: f32[96,32], index: 3, kind: input, shape index: {}]   ;;  %s5977_s4 = inlined_call_operand.vmem [shape: f32[3,32], index: 4, kind: input, shape index: {}]   ;;  %s5978_s5 = inlined_call_operand.vmem [shape: f32[64,32], index: 5, kind: input, shape index: {}]   ;;  %s5979_s6 = inlined_call_operand.vmem [shape: f32[96,32], index: 6, kind: input, shape index: {}]   ;;  %s5980_s7 = inlined_call_operand.hbm [shape: f32[16,32], index: 7, kind: output, shape index: {}]  }
   0x1   :  { %v29_v0 = vld [vmem:[%s5976_s3] sm:$0xff]  ;;  %v30_v1 = vld [vmem:[%s5976_s3 + $0x8] sm:$0xff]  ;;  %v31_v2 = vld [vmem:[%s5976_s3 + $0x10] sm:$0xff] }
   0x2   :  { %v4156_v3 = vpack.c.bf16 %v30_v1, %v29_v0  ;;  %v32_v4 = vld [vmem:[%s5976_s3 + $0x18] sm:$0xff]  ;;  %v27_v5 = vld [vmem:[%s5973_s0] sm:$0xff] }
   0x3   :  { %v4164_v6 = vpack.c.bf16 %v32_v4, %v31_v2  ;;  %3626 = vmatprep.mubr.msk.f32.mxu0 %vm68_vm0, %v27_v5 }
   0x4   :  { %12 = vsyncpa [#allocation4], 0  ;;  %3869 = vmatprep.subr.bf16.mxu0 %v4156_v3  ;;  %v28_v7 = vld [vmem:[%s5973_s0 + $0x8] sm:$0xff]  ;;  %v3319_v8 = vld [vmem:[%s5977_s4] ss:$0 sm:$0xff]  ;;  %s4101_s15 = smov 1   ;;  %v305_v2 = vlaneseq }
   0x5   :  { %3871 = vmatpush3.bf16.msra.mxu0 %v4156_v3  ;;  %s4102_s16 = smov 127   ;;  %v33_v13 = vld [vmem:[%s5976_s3 + $0x20] sm:$0xff]  ;;  %v34_v14 = vld [vmem:[%s5976_s3 + $0x28] sm:$0xff]  ;;  %v35_v16 = vld [vmem:[%s5976_s3 + $0x30] sm:$0xff]  ;;  %vm158_vm1 = vcmask 7168   ;;  %vm167_vm2 = vcmask 252928  }
   0x6   :  { %3873 = vmatprep.subr.bf16.mxu0 %v4164_v6  ;;  %v3876_v15 = vpack.c.bf16 %v34_v14, %v33_v13  ;;  %v36_v17 = vld [vmem:[%s5976_s3 + $0x38] sm:$0xff]  ;;  %v37_v19 = vld [vmem:[%s5976_s3 + $0x40] sm:$0xff]  ;;  %v38_v20 = vld [vmem:[%s5976_s3 + $0x48] sm:$0xff]  ;;  %v4103_v0 = vmov 1966171168   ;;  %v306_v5 = vshrl.u32 %v305_v2, 7 }
   0x7   :  { %v3880_v18 = vpack.c.bf16 %v36_v17, %v35_v16  ;;  %v4196_v21 = vpack.c.bf16 %v38_v20, %v37_v19  ;;  %v39_v22 = vld [vmem:[%s5976_s3 + $0x50] sm:$0xff]  ;;  %v40_v23 = vld [vmem:[%s5976_s3 + $0x58] sm:$0xff]  ;;  %v2974_v25 = vld [vmem:[%s5974_s1] sm:$0xff]  ;;  %v303_v1 = vunpack.c.l.s4 %v4103_v0  ;;  %vm2984_vm3 = vcmask 1040384  }
   0x8   :  { %3877 = vmatprep.subr.bf16.mxu1 %v3876_v15  ;;  %v4207_v24 = vpack.c.bf16 %v40_v23, %v39_v22  ;;  %v2975_v26 = vld [vmem:[%s5974_s1 + $0x8] sm:$0xff]  ;;  %v44_v30 = vld [vmem:[%s5978_s5] sm:$0xff]  ;;  %v47_v31 = vld [vmem:[%s5978_s5 + $0x18] sm:$0xff]  ;;  %v4258_v13 = vsub.s32 0, %v306_v5  ;;  %vm2977_vm4 = vcmask 138240   ;;  %vm3188_vm7 = vcmask 1041409  }
   0x9   :  { %3875 = vmatpush3.bf16.msra.mxu0 %v4164_v6  ;;  %3879 = vmatpush3.bf16.msra.mxu1 %v3876_v15  ;;  %v4217_v27 = vpack.c.bf16 %v2975_v26, %v2974_v25  ;;  %v45_v28 = vld [vmem:[%s5978_s5 + $0x8] sm:$0xff]  ;;  %v46_v34 = vld [vmem:[%s5978_s5 + $0x10] sm:$0xff]  ;;  %v48_v41 = vld [vmem:[%s5978_s5 + $0x20] sm:$0xff]  ;;  %v304_v4 = vunpack.c.0.s8 %v303_v1  ;;  %vm3191_vm8 = vcmask 1042434   ;;  %vm3194_vm9 = vcmask 1043459  }
   0xa   :  { %3881 = vmatprep.subr.bf16.mxu1 %v3880_v18  ;;  %3885 = vmatprep.subr.bf16.mxu0 %v4196_v21  ;;  %v49_v38 = vld [vmem:[%s5978_s5 + $0x28] sm:$0xff]  ;;  %v51_v49 = vld [vmem:[%s5978_s5 + $0x38] sm:$0xff]  ;;  %v50_v52 = vld [vmem:[%s5978_s5 + $0x30] sm:$0xff]  ;;  %vm3197_vm10 = vcmask 1044484   ;;  %vm3200_vm11 = vcmask 1045509   ;;  %vm3203_vm12 = vcmask 1046534  }
   0xb   :  { %v4265_v16 = vld [vmem:[%s5979_s6] sm:$0xff]  ;;  %v4277_v19 = vld [vmem:[%s5979_s6 + $0x8] sm:$0xff]  ;;  %v4288_v22 = vld [vmem:[%s5979_s6 + $0x10] sm:$0xff]  ;;  %vm3206_vm13 = vcmask 1047559  }
   0xc   :  { %3627 = vmatmul.mubr.msk.f32.vlgmr.msra.gmra.mrb[0].mxu0 %vm68_vm0, %v28_v7  ;;  %v4282_v20 = vld [vmem:[%s5979_s6 + $0x28] sm:$0xff] }
   0xd   :  { %3883 = vmatpush3.bf16.msra.mxu1 %v3880_v18  ;;  %3887 = vmatpush3.bf16.msra.mxu0 %v4196_v21  ;;  %v4272_v18 = vld [vmem:[%s5979_s6 + $0x20] sm:$0xff] }
   0xe   :  { %3893 = vmatprep.subr.bf16.mxu1 %v4196_v21  ;;  %3889 = vmatprep.subr.bf16.mxu0 %v4207_v24 }
  0x11   :  { %3891 = vmatpush3.bf16.msra.mxu0 %v4207_v24 }
  0x12   :  { %3901 = vmatprep.subr.bf16.mxu0 %v4217_v27 }
  0xdf   :  { %v3628_v9 = vpop.f32.mrb[0].mxu0 }
  0xe0   :  { %v147_v10 = vadd.f32 %v3628_v9, %v3319_v8  ;;  %v141_v11 = vpop.f32.mrb[1].mxu0 }
  0xe1   :  { %v142_v12 = vadd.f32 %v3319_v8, %v141_v11  ;;  %v4244_v8 = vsub.s32 %v304_v4, %v306_v5 }
  0xe2   :  { %154 = vrot.lane.b32.xlu1 %v147_v10, %s4101_s15  ;;  %v173_v39 = vmul.f32 %v147_v10, %v47_v31  ;;  %v4306_v31 = vld [vmem:[%s5979_s6 + $0x18] sm:$0xff] }
  0xe3   :  { %152 = vrot.lane.b32.xlu0 %v142_v12, %s4101_s15  ;;  %v172_v42 = vmul.f32 %v142_v12, %v46_v34  ;;  %5994 = vst [vmem:[#allocation6_spill] sm:$0xff] %v4244_v8  ;;  %v2976_v34 = vld [vmem:[%s5974_s1 + $0x10] sm:$0x1] }
  0xe6   :  { %163 = vrot.lane.b32.xlu1 %v147_v10, %s4102_s16 }
  0xe7   :  { %161 = vrot.lane.b32.xlu0 %v142_v12, %s4102_s16 }
 0x154   :  { %v155_v29 = vpop.permute.xlu1 %154 }
 0x155   :  { %v160_v32 = vsel %vm158_vm1, 0.0, %v155_v29  ;;  %v153_v33 = vpop.permute.xlu0 %152 }
 0x156   :  { %v171_v35 = vmul.f32 %v160_v32, %v45_v28  ;;  %v159_v36 = vsel %vm158_vm1, 0.0, %v153_v33  ;;  %v4297_v28 = vld [vmem:[%s5979_s6 + $0x30] sm:$0xff]  ;;  %v4311_v32 = vld [vmem:[%s5979_s6 + $0x38] sm:$0xff] }
 0x157   :  { %v170_v37 = vmul.f32 %v159_v36, %v44_v30 }
 0x158   :  { %v164_v40 = vpop.permute.xlu1 %163  ;;  %v175_v45 = vadd.f32 %v173_v39, %v171_v35 }
 0x159   :  { %v169_v43 = vsel %vm167_vm2, %v164_v40, 0.0  ;;  %v162_v44 = vpop.permute.xlu0 %161  ;;  %v174_v48 = vadd.f32 %v172_v42, %v170_v37 }
 0x15a   :  { %v177_v46 = vmul.f32 %v169_v43, %v49_v38  ;;  %v168_v47 = vsel %vm167_vm2, %v162_v44, 0.0 }
 0x15b   :  { %v176_v50 = vmul.f32 %v168_v47, %v48_v41 }
 0x15c   :  { %v179_v51 = vadd.f32 %v177_v46, %v175_v45 }
 0x15d   :  { %v178_v53 = vadd.f32 %v176_v50, %v174_v48 }
 0x15e   :  { %v181_v54 = vadd.f32 %v179_v51, %v51_v49 }
 0x15f   :  { %v180_v55 = vadd.f32 %v178_v53, %v50_v52 }
 0x160   :  { %v183_v56 = vsub.f32 0.0, %v181_v54 }
 0x161   :  { %v182_v57 = vsub.f32 0.0, %v180_v55 }
 0x162   :  { %v186_v58 = vmul.f32 1.442695, %v183_v56 }
 0x163   :  { %v184_v59 = vmul.f32 1.442695, %v182_v57 }
 0x164   :  { %3918 = vpow2.f32 %v186_v58 }
 0x165   :  { %3920 = vpow2.f32 %v184_v59 }
 0x16e   :  { %v3919_v60 = vpop.eup %3918 }
 0x16f   :  { %v3921_v61 = vpop.eup %3920  ;;  %v189_v62 = vadd.f32 1.0, %v3919_v60 }
 0x170   :  { %v188_v63 = vadd.f32 1.0, %v3921_v61 }
 0x171   :  { %3922 = vrcp.f32 %v189_v62 }
 0x172   :  { %3924 = vrcp.f32 %v188_v63 }
 0x17b   :  { %v3923_v7 = vpop.eup %3922 }
 0x17c   :  { %v3925_v9 = vpop.eup %3924  ;;  %v4248_v11 = vmul.f32 %v3923_v7, %v181_v54 }
 0x17d   :  { %v4246_v10 = vmul.f32 %v3925_v9, %v180_v55 }
 0x17e   :  { %5995 = vst [vmem:[#allocation7_spill] sm:$0xff] %v4248_v11 }
 0x17f   :  { %v678_v12 = vrot.slane %v4246_v10, %v4244_v8  ;;  %3637 = vmatprep.mubr.msk.f32.mxu1 %vm68_vm0, %v4246_v10  ;;  %v671_v46 = vcombine.high %v4246_v10, %v4246_v10 }
 0x180   :  { %3638 = vmatmul.mubr.msk.f32.vlgmr.msra.gmra.mrb[0].mxu1 %vm68_vm0, %v4248_v11 }
 0x181   :  { %3895 = vmatpush3.bf16.msra.mxu1 %v4196_v21  ;;  %v694_v14 = vrot.slane %v678_v12, %v4244_v8  ;;  %v686_v15 = vcombine.high %v678_v12, %v678_v12  ;;  %v685_v51 = vrot.slane %v671_v46, %v4244_v8 }
 0x182   :  { %3897 = vmatprep.subr.bf16.mxu1 %v4207_v24 }
 0x183   :  { %v772_v17 = vrot.slane %v694_v14, %v4258_v13  ;;  %v708_v21 = vrot.slane %v686_v15, %v4244_v8  ;;  %v716_v37 = vcombine.high %v694_v14, %v694_v14  ;;  %v701_v56 = vrot.slane %v685_v51, %v4244_v8 }
 0x184   :  { %v687_v61 = vcombine.high %v685_v51, %v685_v51 }
 0x185   :  { %3899 = vmatpush3.bf16.msra.mxu1 %v4207_v24  ;;  %v849_v23 = vmul.f32 %v772_v17, %v4265_v16  ;;  %v1941_v24 = vmul.f32 %v772_v17, %v4272_v18  ;;  %v850_v25 = vmul.f32 %v772_v17, %v4277_v19  ;;  %v1942_v26 = vmul.f32 %v772_v17, %v4282_v20 }
 0x186   :  { %3905 = vmatprep.subr.bf16.mxu1 %v4156_v3  ;;  %v776_v29 = vrot.slane %v708_v21, %v4258_v13  ;;  %v851_v30 = vmul.f32 %v772_v17, %v4288_v22  ;;  %v1943_v33 = vmul.f32 %v772_v17, %v4297_v28  ;;  %v852_v35 = vmul.f32 %v772_v17, %v4306_v31 }
 0x187   :  { %3648 = vmatprep.mubr.msk.f32.mxu0 %vm68_vm0, %v849_v23  ;;  %3752 = vmatprep.mubr.msk.f32.mxu1 %vm68_vm0, %v1941_v24  ;;  %v1944_v36 = vmul.f32 %v772_v17, %v4311_v32  ;;  %v780_v41 = vrot.slane %v716_v37, %v4258_v13  ;;  %v718_v47 = vcombine.high %v708_v21, %v708_v21 }
 0x188   :  { %3649 = vmatmul.mubr.msk.f32.vlgmr.msra.gmra.mrb[2].mxu0 %vm68_vm0, %v850_v25  ;;  %3753 = vmatmul.mubr.msk.f32.vlgmr.msra.gmra.mrb[2].mxu1 %vm68_vm0, %v1942_v26  ;;  %v853_v38 = vmul.f32 %v776_v29, %v4265_v16  ;;  %v1945_v39 = vmul.f32 %v776_v29, %v4272_v18  ;;  %v1946_v40 = vmul.f32 %v776_v29, %v4282_v20 }
 0x189   :  { %3903 = vmatpush3.bf16.msra.mxu0 %v4217_v27  ;;  %3651 = vmatprep.mubr.msk.f32.mxu0 %vm68_vm0, %v851_v30  ;;  %v854_v27 = vmul.f32 %v776_v29, %v4277_v19  ;;  %v855_v42 = vmul.f32 %v776_v29, %v4288_v22  ;;  %v1947_v43 = vmul.f32 %v776_v29, %v4297_v28 }
 0x18a   :  { %3755 = vmatprep.mubr.msk.f32.mxu1 %vm68_vm0, %v1943_v33  ;;  %3852 = vmatprep.subr.msk.mxu0 %vm2984_vm3, %v2976_v34  ;;  %v856_v44 = vmul.f32 %v776_v29, %v4306_v31  ;;  %v1948_v45 = vmul.f32 %v776_v29, %v4311_v32  ;;  %v1949_v48 = vmul.f32 %v780_v41, %v4272_v18 }
 0x18b   :  { %3907 = vmatpush3.bf16.msra.mxu1 %v4156_v3  ;;  %v857_v3 = vmul.f32 %v780_v41, %v4265_v16  ;;  %v858_v49 = vmul.f32 %v780_v41, %v4277_v19  ;;  %v1950_v50 = vmul.f32 %v780_v41, %v4282_v20  ;;  %v784_v52 = vrot.slane %v718_v47, %v4258_v13 }
 0x18c   :  { %3652 = vmatmul.mubr.msk.f32.gmra.mrb[4].mxu0 %vm68_vm0, %v852_v35  ;;  %3756 = vmatmul.mubr.msk.f32.gmra.mrb[4].mxu1 %vm68_vm0, %v1944_v36  ;;  %v859_v53 = vmul.f32 %v780_v41, %v4288_v22  ;;  %v860_v54 = vmul.f32 %v780_v41, %v4306_v31  ;;  %v1952_v55 = vmul.f32 %v780_v41, %v4311_v32 }
 0x18d   :  { %3654 = vmatprep.mubr.msk.f32.mxu0 %vm68_vm0, %v853_v38  ;;  %3758 = vmatprep.mubr.msk.f32.mxu1 %vm68_vm0, %v1945_v39  ;;  %v861_v57 = vmul.f32 %v784_v52, %v4265_v16  ;;  %v1953_v58 = vmul.f32 %v784_v52, %v4272_v18  ;;  %v862_v59 = vmul.f32 %v784_v52, %v4277_v19 }
 0x18e   :  { %3853 = vmatpush3.msk.msra.mxu0 %vm2984_vm3, %v2976_v34  ;;  %3909 = vmatprep.subr.bf16.mxu1 %v4164_v6  ;;  %v1954_v60 = vmul.f32 %v784_v52, %v4282_v20  ;;  %v788_v62 = vrot.slane %v701_v56, %v4258_v13  ;;  %v863_v63 = vmul.f32 %v784_v52, %v4288_v22 }
 0x18f   :  { %3911 = vmatpush3.bf16.msra.mxu1 %v4164_v6  ;;  %v1951_v6 = vmul.f32 %v780_v41, %v4297_v28  ;;  %v1955_v0 = vmul.f32 %v784_v52, %v4297_v28  ;;  %v864_v1 = vmul.f32 %v784_v52, %v4306_v31  ;;  %v1956_v2 = vmul.f32 %v784_v52, %v4311_v32 }
 0x190   :  { %3655 = vmatmul.mubr.msk.f32.gmra.mrb[6].mxu0 %vm68_vm0, %v854_v27  ;;  %3759 = vmatmul.mubr.msk.f32.gmra.mrb[6].mxu1 %vm68_vm0, %v1946_v40  ;;  %v715_v4 = vrot.slane %v687_v61, %v4244_v8  ;;  %v865_v5 = vmul.f32 %v788_v62, %v4265_v16  ;;  %v1957_v7 = vmul.f32 %v788_v62, %v4272_v18 }
 0x191   :  { %3657 = vmatprep.mubr.msk.f32.mxu0 %vm68_vm0, %v855_v42  ;;  %3761 = vmatprep.mubr.msk.f32.mxu1 %vm68_vm0, %v1947_v43  ;;  %v866_v9 = vmul.f32 %v788_v62, %v4277_v19  ;;  %v1958_v12 = vmul.f32 %v788_v62, %v4282_v20  ;;  %v867_v15 = vmul.f32 %v788_v62, %v4288_v22 }
 0x192   :  { %v792_v14 = vrot.slane %v715_v4, %v4258_v13  ;;  %v1959_v17 = vmul.f32 %v788_v62, %v4297_v28  ;;  %v868_v21 = vmul.f32 %v788_v62, %v4306_v31  ;;  %v1960_v23 = vmul.f32 %v788_v62, %v4311_v32 }
 0x193   :  { %v717_v24 = vcombine.high %v701_v56, %v701_v56  ;;  %v719_v38 = vcombine.high %v715_v4, %v715_v4  ;;  %v727_v42 = vrot.slane %v4248_v11, %v4244_v8 }
 0x194   :  { %3658 = vmatmul.mubr.msk.f32.gmra.mrb[8].mxu0 %vm68_vm0, %v856_v44  ;;  %3762 = vmatmul.mubr.msk.f32.gmra.mrb[8].mxu1 %vm68_vm0, %v1948_v45  ;;  %v869_v25 = vmul.f32 %v792_v14, %v4265_v16  ;;  %v1961_v26 = vmul.f32 %v792_v14, %v4272_v18  ;;  %v870_v29 = vmul.f32 %v792_v14, %v4277_v19 }
 0x195   :  { %3660 = vmatprep.mubr.msk.f32.mxu0 %vm68_vm0, %v857_v3  ;;  %3764 = vmatprep.mubr.msk.f32.mxu1 %vm68_vm0, %v1949_v48  ;;  %v1962_v30 = vmul.f32 %v792_v14, %v4282_v20  ;;  %v796_v33 = vrot.slane %v717_v24, %v4258_v13  ;;  %v871_v34 = vmul.f32 %v792_v14, %v4288_v22 }
 0x196   :  { %v1963_v35 = vmul.f32 %v792_v14, %v4297_v28  ;;  %v872_v36 = vmul.f32 %v792_v14, %v4306_v31  ;;  %v1964_v37 = vmul.f32 %v792_v14, %v4311_v32  ;;  %v800_v43 = vrot.slane %v719_v38, %v4258_v13 }
 0x197   :  { %v873_v39 = vmul.f32 %v796_v33, %v4265_v16  ;;  %v1965_v27 = vmul.f32 %v796_v33, %v4272_v18  ;;  %v874_v40 = vmul.f32 %v796_v33, %v4277_v19  ;;  %v1966_v41 = vmul.f32 %v796_v33, %v4282_v20 }
 0x198   :  { %3661 = vmatmul.mubr.msk.f32.gmra.mrb[10].mxu0 %vm68_vm0, %v858_v49  ;;  %3765 = vmatmul.mubr.msk.f32.gmra.mrb[10].mxu1 %vm68_vm0, %v1950_v50  ;;  %v875_v44 = vmul.f32 %v796_v33, %v4288_v22  ;;  %v1967_v45 = vmul.f32 %v796_v33, %v4297_v28  ;;  %v876_v46 = vmul.f32 %v796_v33, %v4306_v31 }
 0x199   :  { %3663 = vmatprep.mubr.msk.f32.mxu0 %vm68_vm0, %v859_v53  ;;  %3767 = vmatprep.mubr.msk.f32.mxu1 %vm68_vm0, %v1951_v6  ;;  %v1968_v47 = vmul.f32 %v796_v33, %v4311_v32  ;;  %v743_v3 = vrot.slane %v727_v42, %v4244_v8  ;;  %v877_v48 = vmul.f32 %v800_v43, %v4265_v16 }
 0x19a   :  { %v1969_v49 = vmul.f32 %v800_v43, %v4272_v18  ;;  %v878_v50 = vmul.f32 %v800_v43, %v4277_v19  ;;  %v1970_v51 = vmul.f32 %v800_v43, %v4282_v20  ;;  %v735_v52 = vcombine.high %v727_v42, %v727_v42 }
 0x19b   :  { %v804_v53 = vrot.slane %v743_v3, %v4258_v13  ;;  %v879_v6 = vmul.f32 %v800_v43, %v4288_v22  ;;  %v1972_v56 = vmul.f32 %v800_v43, %v4311_v32  ;;  %v765_v4 = vcombine.high %v743_v3, %v743_v3 }
 0x19c   :  { %3664 = vmatmul.mubr.msk.f32.gmra.mrb[12].mxu0 %vm68_vm0, %v860_v54  ;;  %3768 = vmatmul.mubr.msk.f32.gmra.mrb[12].mxu1 %vm68_vm0, %v1952_v55  ;;  %v1971_v54 = vmul.f32 %v800_v43, %v4297_v28  ;;  %v880_v55 = vmul.f32 %v800_v43, %v4306_v31  ;;  %v720_v24 = vcombine.high %v4248_v11, %v4248_v11 }
 0x19d   :  { %3666 = vmatprep.mubr.msk.f32.mxu0 %vm68_vm0, %v861_v57  ;;  %3770 = vmatprep.mubr.msk.f32.mxu1 %vm68_vm0, %v1953_v58  ;;  %v757_v57 = vrot.slane %v735_v52, %v4244_v8  ;;  %v881_v58 = vmul.f32 %v804_v53, %v4265_v16  ;;  %v1974_v61 = vmul.f32 %v804_v53, %v4282_v20 }
 0x19e   :  { %v812_v14 = vrot.slane %v765_v4, %v4258_v13 }
 0x19f   :  { %v808_v62 = vrot.slane %v757_v57, %v4258_v13 }
 0x1a0   :  { %3667 = vmatmul.mubr.msk.f32.gmra.mrb[14].mxu0 %vm68_vm0, %v862_v59  ;;  %3771 = vmatmul.mubr.msk.f32.gmra.mrb[14].mxu1 %vm68_vm0, %v1954_v60  ;;  %v1973_v59 = vmul.f32 %v804_v53, %v4272_v18  ;;  %v882_v60 = vmul.f32 %v804_v53, %v4277_v19  ;;  %v1982_v33 = vmul.f32 %v812_v14, %v4282_v20 }
 0x1a1   :  { %3669 = vmatprep.mubr.msk.f32.mxu0 %vm68_vm0, %v863_v63  ;;  %3773 = vmatprep.mubr.msk.f32.mxu1 %vm68_vm0, %v1955_v0  ;;  %v883_v63 = vmul.f32 %v804_v53, %v4288_v22  ;;  %v1975_v0 = vmul.f32 %v804_v53, %v4297_v28  ;;  %v892_v38 = vmul.f32 %v812_v14, %v4306_v31 }
 0x1a4   :  { %3670 = vmatmul.mubr.msk.f32.gmra.mrb[16].mxu0 %vm68_vm0, %v864_v1  ;;  %3774 = vmatmul.mubr.msk.f32.gmra.mrb[16].mxu1 %vm68_vm0, %v1956_v2  ;;  %v884_v1 = vmul.f32 %v804_v53, %v4306_v31  ;;  %v1976_v2 = vmul.f32 %v804_v53, %v4311_v32 }
 0x1a5   :  { %3672 = vmatprep.mubr.msk.f32.mxu0 %vm68_vm0, %v865_v5  ;;  %3776 = vmatprep.mubr.msk.f32.mxu1 %vm68_vm0, %v1957_v7  ;;  %v885_v5 = vmul.f32 %v808_v62, %v4265_v16  ;;  %v1977_v7 = vmul.f32 %v808_v62, %v4272_v18 }
 0x1a8   :  { %3673 = vmatmul.mubr.msk.f32.gmra.mrb[18].mxu0 %vm68_vm0, %v866_v9  ;;  %3777 = vmatmul.mubr.msk.f32.gmra.mrb[18].mxu1 %vm68_vm0, %v1958_v12  ;;  %v886_v9 = vmul.f32 %v808_v62, %v4277_v19  ;;  %v1978_v12 = vmul.f32 %v808_v62, %v4282_v20 }
 0x1a9   :  { %3675 = vmatprep.mubr.msk.f32.mxu0 %vm68_vm0, %v867_v15  ;;  %3779 = vmatprep.mubr.msk.f32.mxu1 %vm68_vm0, %v1959_v17  ;;  %v887_v15 = vmul.f32 %v808_v62, %v4288_v22  ;;  %v1979_v17 = vmul.f32 %v808_v62, %v4297_v28 }
 0x1ac   :  { %3676 = vmatmul.mubr.msk.f32.gmra.mrb[20].mxu0 %vm68_vm0, %v868_v21  ;;  %3780 = vmatmul.mubr.msk.f32.gmra.mrb[20].mxu1 %vm68_vm0, %v1960_v23  ;;  %v888_v21 = vmul.f32 %v808_v62, %v4306_v31  ;;  %v1980_v23 = vmul.f32 %v808_v62, %v4311_v32 }
 0x1ad   :  { %3678 = vmatprep.mubr.msk.f32.mxu0 %vm68_vm0, %v869_v25  ;;  %3782 = vmatprep.mubr.msk.f32.mxu1 %vm68_vm0, %v1961_v26  ;;  %v767_v25 = vcombine.high %v757_v57, %v757_v57  ;;  %v889_v26 = vmul.f32 %v812_v14, %v4265_v16 }
 0x1b0   :  { %3679 = vmatmul.mubr.msk.f32.gmra.mrb[22].mxu0 %vm68_vm0, %v870_v29  ;;  %3783 = vmatmul.mubr.msk.f32.gmra.mrb[22].mxu1 %vm68_vm0, %v1962_v30  ;;  %v1981_v29 = vmul.f32 %v812_v14, %v4272_v18  ;;  %v890_v30 = vmul.f32 %v812_v14, %v4277_v19 }
 0x1b1   :  { %3681 = vmatprep.mubr.msk.f32.mxu0 %vm68_vm0, %v871_v34  ;;  %3785 = vmatprep.mubr.msk.f32.mxu1 %vm68_vm0, %v1963_v35  ;;  %v734_v34 = vrot.slane %v720_v24, %v4244_v8  ;;  %v816_v35 = vrot.slane %v767_v25, %v4258_v13 }
 0x1b3   :  { %v894_v42 = vmul.f32 %v816_v35, %v4277_v19  ;;  %v1986_v43 = vmul.f32 %v816_v35, %v4282_v20  ;;  %v896_v3 = vmul.f32 %v816_v35, %v4306_v31 }
 0x1b4   :  { %3682 = vmatmul.mubr.msk.f32.gmra.mrb[24].mxu0 %vm68_vm0, %v872_v36  ;;  %3786 = vmatmul.mubr.msk.f32.gmra.mrb[24].mxu1 %vm68_vm0, %v1964_v37  ;;  %v891_v36 = vmul.f32 %v812_v14, %v4288_v22  ;;  %v1983_v37 = vmul.f32 %v812_v14, %v4297_v28 }
 0x1b5   :  { %3684 = vmatprep.mubr.msk.f32.mxu0 %vm68_vm0, %v873_v39  ;;  %3788 = vmatprep.mubr.msk.f32.mxu1 %vm68_vm0, %v1965_v27  ;;  %v1984_v39 = vmul.f32 %v812_v14, %v4311_v32  ;;  %v750_v27 = vrot.slane %v734_v34, %v4244_v8 }
 0x1b8   :  { %3685 = vmatmul.mubr.msk.f32.gmra.mrb[26].mxu0 %vm68_vm0, %v874_v40  ;;  %3789 = vmatmul.mubr.msk.f32.gmra.mrb[26].mxu1 %vm68_vm0, %v1966_v41  ;;  %v893_v40 = vmul.f32 %v816_v35, %v4265_v16  ;;  %v1985_v41 = vmul.f32 %v816_v35, %v4272_v18 }
 0x1b9   :  { %3687 = vmatprep.mubr.msk.f32.mxu0 %vm68_vm0, %v875_v44  ;;  %3791 = vmatprep.mubr.msk.f32.mxu1 %vm68_vm0, %v1967_v45  ;;  %v736_v44 = vcombine.high %v734_v34, %v734_v34  ;;  %v820_v45 = vrot.slane %v750_v27, %v4258_v13 }
 0x1bb   :  { %v898_v52 = vmul.f32 %v820_v45, %v4277_v19  ;;  %v1990_v53 = vmul.f32 %v820_v45, %v4282_v20  ;;  %v1992_v57 = vmul.f32 %v820_v45, %v4311_v32 }
 0x1bc   :  { %3688 = vmatmul.mubr.msk.f32.gmra.mrb[28].mxu0 %vm68_vm0, %v876_v46  ;;  %3792 = vmatmul.mubr.msk.f32.gmra.mrb[28].mxu1 %vm68_vm0, %v1968_v47  ;;  %v895_v46 = vmul.f32 %v816_v35, %v4288_v22  ;;  %v1987_v47 = vmul.f32 %v816_v35, %v4297_v28 }
 0x1bd   :  { %3690 = vmatprep.mubr.msk.f32.mxu0 %vm68_vm0, %v877_v48  ;;  %3794 = vmatprep.mubr.msk.f32.mxu1 %vm68_vm0, %v1969_v49  ;;  %v1988_v48 = vmul.f32 %v816_v35, %v4311_v32  ;;  %v764_v49 = vrot.slane %v736_v44, %v4244_v8 }
 0x1c0   :  { %3691 = vmatmul.mubr.msk.f32.gmra.mrb[30].mxu0 %vm68_vm0, %v878_v50  ;;  %3795 = vmatmul.mubr.msk.f32.gmra.mrb[30].mxu1 %vm68_vm0, %v1970_v51  ;;  %v897_v50 = vmul.f32 %v820_v45, %v4265_v16  ;;  %v1989_v51 = vmul.f32 %v820_v45, %v4272_v18 }
 0x1c1   :  { %3693 = vmatprep.mubr.msk.f32.mxu0 %vm68_vm0, %v879_v6  ;;  %3797 = vmatprep.mubr.msk.f32.mxu1 %vm68_vm0, %v1971_v54  ;;  %v824_v6 = vrot.slane %v764_v49, %v4258_v13  ;;  %v899_v54 = vmul.f32 %v820_v45, %v4288_v22 }
 0x1c3   :  { %v1994_v62 = vmul.f32 %v824_v6, %v4282_v20  ;;  %v1996_v4 = vmul.f32 %v824_v6, %v4311_v32 }
 0x1c4   :  { %3694 = vmatmul.mubr.msk.f32.gmra.mrb[32].mxu0 %vm68_vm0, %v880_v55  ;;  %3798 = vmatmul.mubr.msk.f32.gmra.mrb[32].mxu1 %vm68_vm0, %v1972_v56  ;;  %v1991_v55 = vmul.f32 %v820_v45, %v4297_v28  ;;  %v900_v56 = vmul.f32 %v820_v45, %v4306_v31 }
 0x1c5   :  { %3696 = vmatprep.mubr.msk.f32.mxu0 %vm68_vm0, %v881_v58  ;;  %3800 = vmatprep.mubr.msk.f32.mxu1 %vm68_vm0, %v1973_v59  ;;  %v766_v58 = vcombine.high %v750_v27, %v750_v27  ;;  %v901_v59 = vmul.f32 %v824_v6, %v4265_v16 }
 0x1c8   :  { %3697 = vmatmul.mubr.msk.f32.gmra.mrb[34].mxu0 %vm68_vm0, %v882_v60  ;;  %3801 = vmatmul.mubr.msk.f32.gmra.mrb[34].mxu1 %vm68_vm0, %v1974_v61  ;;  %v1993_v60 = vmul.f32 %v824_v6, %v4272_v18  ;;  %v902_v61 = vmul.f32 %v824_v6, %v4277_v19 }
 0x1c9   :  { %3699 = vmatprep.mubr.msk.f32.mxu0 %vm68_vm0, %v883_v63  ;;  %3803 = vmatprep.mubr.msk.f32.mxu1 %vm68_vm0, %v1975_v0  ;;  %v828_v63 = vrot.slane %v766_v58, %v4258_v13  ;;  %v903_v0 = vmul.f32 %v824_v6, %v4288_v22 }
 0x1cb   :  { %v1998_v14 = vmul.f32 %v828_v63, %v4282_v20  ;;  %v2000_v24 = vmul.f32 %v828_v63, %v4311_v32 }
 0x1cc   :  { %3700 = vmatmul.mubr.msk.f32.gmra.mrb[36].mxu0 %vm68_vm0, %v884_v1  ;;  %3804 = vmatmul.mubr.msk.f32.gmra.mrb[36].mxu1 %vm68_vm0, %v1976_v2  ;;  %v1995_v1 = vmul.f32 %v824_v6, %v4297_v28  ;;  %v904_v2 = vmul.f32 %v824_v6, %v4306_v31 }
 0x1cd   :  { %3702 = vmatprep.mubr.msk.f32.mxu0 %vm68_vm0, %v885_v5  ;;  %3806 = vmatprep.mubr.msk.f32.mxu1 %vm68_vm0, %v1977_v7  ;;  %v768_v5 = vcombine.high %v764_v49, %v764_v49  ;;  %v905_v7 = vmul.f32 %v828_v63, %v4265_v16 }
 0x1d0   :  { %3703 = vmatmul.mubr.msk.f32.gmra.mrb[38].mxu0 %vm68_vm0, %v886_v9  ;;  %3807 = vmatmul.mubr.msk.f32.gmra.mrb[38].mxu1 %vm68_vm0, %v1978_v12  ;;  %v1997_v9 = vmul.f32 %v828_v63, %v4272_v18  ;;  %v906_v12 = vmul.f32 %v828_v63, %v4277_v19 }
 0x1d1   :  { %3705 = vmatprep.mubr.msk.f32.mxu0 %vm68_vm0, %v887_v15  ;;  %3809 = vmatprep.mubr.msk.f32.mxu1 %vm68_vm0, %v1979_v17  ;;  %v832_v15 = vrot.slane %v768_v5, %v4258_v13  ;;  %v907_v17 = vmul.f32 %v828_v63, %v4288_v22 }
 0x1d3   :  { %v909_v25 = vmul.f32 %v832_v15, %v4265_v16  ;;  %v2003_v34 = vmul.f32 %v832_v15, %v4297_v28  ;;  %v912_v16 = vmul.f32 %v832_v15, %v4306_v31 }
 0x1d4   :  { %3706 = vmatmul.mubr.msk.f32.gmra.mrb[40].mxu0 %vm68_vm0, %v888_v21  ;;  %3810 = vmatmul.mubr.msk.f32.gmra.mrb[40].mxu1 %vm68_vm0, %v1980_v23  ;;  %v1999_v21 = vmul.f32 %v828_v63, %v4297_v28  ;;  %v908_v23 = vmul.f32 %v828_v63, %v4306_v31  ;;  %v3453_v63 = vld [vmem:[%s5977_s4 + $0x2] ss:$0 sm:$0xff] }
 0x1d5   :  { %3708 = vmatprep.mubr.msk.f32.mxu0 %vm68_vm0, %v889_v26  ;;  %3812 = vmatprep.mubr.msk.f32.mxu1 %vm68_vm0, %v1981_v29  ;;  %v2001_v26 = vmul.f32 %v832_v15, %v4272_v18  ;;  %v910_v29 = vmul.f32 %v832_v15, %v4277_v19  ;;  %v2004_v18 = vmul.f32 %v832_v15, %v4311_v32  ;;  %v2972_v19 = vld [vmem:[%s5975_s2] sm:$0xff] }
 0x1d8   :  { %3709 = vmatmul.mubr.msk.f32.gmra.mrb[42].mxu0 %vm68_vm0, %v890_v30  ;;  %3813 = vmatmul.mubr.msk.f32.gmra.mrb[42].mxu1 %vm68_vm0, %v1982_v33  ;;  %v2002_v30 = vmul.f32 %v832_v15, %v4282_v20  ;;  %v911_v33 = vmul.f32 %v832_v15, %v4288_v22  ;;  %v2973_v20 = vld [vmem:[%s5975_s2 + $0x8] sm:$0xff]  ;;  %v3322_v22 = vld [vmem:[%s5977_s4 + $0x1] ss:$0 sm:$0xff] }
 0x1d9   :  { %3711 = vmatprep.mubr.msk.f32.mxu0 %vm68_vm0, %v891_v36  ;;  %3815 = vmatprep.mubr.msk.f32.mxu1 %vm68_vm0, %v1983_v37 }
 0x1dc   :  { %3712 = vmatmul.mubr.msk.f32.gmra.mrb[44].mxu0 %vm68_vm0, %v892_v38  ;;  %3816 = vmatmul.mubr.msk.f32.gmra.mrb[44].mxu1 %vm68_vm0, %v1984_v39 }
 0x1dd   :  { %3714 = vmatprep.mubr.msk.f32.mxu0 %vm68_vm0, %v893_v40  ;;  %3818 = vmatprep.mubr.msk.f32.mxu1 %vm68_vm0, %v1985_v41 }
 0x1e0   :  { %3715 = vmatmul.mubr.msk.f32.gmra.mrb[46].mxu0 %vm68_vm0, %v894_v42  ;;  %3819 = vmatmul.mubr.msk.f32.gmra.mrb[46].mxu1 %vm68_vm0, %v1986_v43 }
 0x1e1   :  { %3717 = vmatprep.mubr.msk.f32.mxu0 %vm68_vm0, %v895_v46  ;;  %3821 = vmatprep.mubr.msk.f32.mxu1 %vm68_vm0, %v1987_v47 }
 0x1e4   :  { %3718 = vmatmul.mubr.msk.f32.gmra.mrb[48].mxu0 %vm68_vm0, %v896_v3  ;;  %3822 = vmatmul.mubr.msk.f32.gmra.mrb[48].mxu1 %vm68_vm0, %v1988_v48 }
 0x1e5   :  { %3720 = vmatprep.mubr.msk.f32.mxu0 %vm68_vm0, %v897_v50  ;;  %3824 = vmatprep.mubr.msk.f32.mxu1 %vm68_vm0, %v1989_v51 }
 0x1e8   :  { %3721 = vmatmul.mubr.msk.f32.gmra.mrb[50].mxu0 %vm68_vm0, %v898_v52  ;;  %3825 = vmatmul.mubr.msk.f32.gmra.mrb[50].mxu1 %vm68_vm0, %v1990_v53 }
 0x1e9   :  { %3723 = vmatprep.mubr.msk.f32.mxu0 %vm68_vm0, %v899_v54  ;;  %3827 = vmatprep.mubr.msk.f32.mxu1 %vm68_vm0, %v1991_v55 }
 0x1ec   :  { %3724 = vmatmul.mubr.msk.f32.gmra.mrb[52].mxu0 %vm68_vm0, %v900_v56  ;;  %3828 = vmatmul.mubr.msk.f32.gmra.mrb[52].mxu1 %vm68_vm0, %v1992_v57 }
 0x1ed   :  { %3726 = vmatprep.mubr.msk.f32.mxu0 %vm68_vm0, %v901_v59  ;;  %3830 = vmatprep.mubr.msk.f32.mxu1 %vm68_vm0, %v1993_v60 }
 0x1f0   :  { %3727 = vmatmul.mubr.msk.f32.gmra.mrb[54].mxu0 %vm68_vm0, %v902_v61  ;;  %3831 = vmatmul.mubr.msk.f32.gmra.mrb[54].mxu1 %vm68_vm0, %v1994_v62 }
 0x1f1   :  { %3729 = vmatprep.mubr.msk.f32.mxu0 %vm68_vm0, %v903_v0  ;;  %3833 = vmatprep.mubr.msk.f32.mxu1 %vm68_vm0, %v1995_v1 }
 0x1f4   :  { %3730 = vmatmul.mubr.msk.f32.gmra.mrb[56].mxu0 %vm68_vm0, %v904_v2  ;;  %3834 = vmatmul.mubr.msk.f32.gmra.mrb[56].mxu1 %vm68_vm0, %v1996_v4 }
 0x1f5   :  { %3732 = vmatprep.mubr.msk.f32.mxu0 %vm68_vm0, %v905_v7  ;;  %3836 = vmatprep.mubr.msk.f32.mxu1 %vm68_vm0, %v1997_v9  ;;  %v4664_v7 = vmul.f32 %v3453_v63, %v4248_v11  ;;  %v4667_v9 = vmul.f32 %v3453_v63, %v4246_v10 }
 0x1f7   :  { %5997 = vst [vmem:[#allocation9_spill] sm:$0xff] %v4664_v7  ;;  %5998 = vst [vmem:[#allocation10_spill] sm:$0xff] %v4667_v9 }
 0x1f8   :  { %3733 = vmatmul.mubr.msk.f32.gmra.mrb[58].mxu0 %vm68_vm0, %v906_v12  ;;  %3837 = vmatmul.mubr.msk.f32.gmra.mrb[58].mxu1 %vm68_vm0, %v1998_v14 }
 0x1f9   :  { %3735 = vmatprep.mubr.msk.f32.mxu0 %vm68_vm0, %v907_v17  ;;  %3839 = vmatprep.mubr.msk.f32.mxu1 %vm68_vm0, %v1999_v21 }
 0x1fc   :  { %3736 = vmatmul.mubr.msk.f32.gmra.mrb[60].mxu0 %vm68_vm0, %v908_v23  ;;  %3840 = vmatmul.mubr.msk.f32.gmra.mrb[60].mxu1 %vm68_vm0, %v2000_v24 }
 0x1fd   :  { %3738 = vmatprep.mubr.msk.f32.mxu0 %vm68_vm0, %v909_v25  ;;  %3842 = vmatprep.mubr.msk.f32.mxu1 %vm68_vm0, %v2001_v26 }
 0x200   :  { %3739 = vmatmul.mubr.msk.f32.gmra.mrb[62].mxu0 %vm68_vm0, %v910_v29  ;;  %3843 = vmatmul.mubr.msk.f32.gmra.mrb[62].mxu1 %vm68_vm0, %v2002_v30 }
 0x201   :  { %3741 = vmatprep.mubr.msk.f32.mxu0 %vm68_vm0, %v911_v33  ;;  %3845 = vmatprep.mubr.msk.f32.mxu1 %vm68_vm0, %v2003_v34 }
 0x204   :  { %3742 = vmatmul.mubr.msk.f32.gmra.mrb[64].mxu0 %vm68_vm0, %v912_v16  ;;  %3846 = vmatmul.mubr.msk.f32.gmra.mrb[64].mxu1 %vm68_vm0, %v2004_v18 }
 0x205   :  { %3854 = vmatprep.mubr.msk.f32.mxu0 %vm2977_vm4, %v2972_v19 }
 0x208   :  { %3855 = vmatmul.mubr.msk.f32.vlgmr.msra.gmra.mrb[66].mxu0 %vm2977_vm4, %v2973_v20 }
 0x253   :  { %v3639_v28 = vpop.f32.mrb[0].mxu1 }
 0x254   :  { %v4608_v31 = vadd.f32 %v3639_v28, %v3322_v22  ;;  %v272_v32 = vpop.f32.mrb[1].mxu1 }
 0x255   :  { %v273_v35 = vadd.f32 %v3322_v22, %v272_v32 }
 0x256   :  { %v284_v47 = vmin.f32 %v4608_v31, 20.0  ;;  %vm282_vm6 = vcmp.gt.f32.partialorder %v4608_v31, 20.0 }
 0x257   :  { %v283_v36 = vmin.f32 %v273_v35, 20.0  ;;  %vm281_vm5 = vcmp.gt.f32.partialorder %v273_v35, 20.0 }
 0x258   :  { %v287_v51 = vmul.f32 1.442695, %v284_v47 }
 0x259   :  { %v285_v37 = vmul.f32 1.442695, %v283_v36 }
 0x25b   :  { %3926 = vpow2.f32 %v285_v37  ;;  %v4610_v38 = vpop.f32.mrb[2].mxu0  ;;  %v4612_v39 = vpop.f32.mrb[2].mxu1 }
 0x25c   :  { %v4614_v27 = vpop.f32.mrb[3].mxu0  ;;  %v4616_v40 = vpop.f32.mrb[3].mxu1 }
 0x25f   :  { %v4618_v41 = vpop.f32.mrb[4].mxu0  ;;  %v4620_v42 = vpop.f32.mrb[4].mxu1 }
 0x260   :  { %v4622_v44 = vpop.f32.mrb[5].mxu0  ;;  %v4624_v45 = vpop.f32.mrb[5].mxu1 }
 0x263   :  { %v4627_v3 = vpop.f32.mrb[6].mxu0  ;;  %v4629_v48 = vpop.f32.mrb[6].mxu1 }
 0x264   :  { %v4631_v49 = vpop.f32.mrb[7].mxu0  ;;  %v4633_v50 = vpop.f32.mrb[7].mxu1 }
 0x265   :  { %v3927_v43 = vpop.eup %3926 }
 0x266   :  { %v289_v46 = vadd.f32 1.0, %v3927_v43 }
 0x267   :  { %v4635_v52 = vpop.f32.mrb[8].mxu0  ;;  %v4637_v53 = vpop.f32.mrb[8].mxu1 }
 0x268   :  { %3928 = vlog2.f32 %v289_v46  ;;  %v4639_v6 = vpop.f32.mrb[9].mxu0  ;;  %v4641_v54 = vpop.f32.mrb[9].mxu1 }
 0x269   :  { %3930 = vpow2.f32 %v287_v51  ;;  %v4703_v51 = vld [vmem:[%s5979_s6 + $0x48] sm:$0xff] }
 0x26b   :  { %v4643_v55 = vpop.f32.mrb[10].mxu0  ;;  %v4645_v56 = vpop.f32.mrb[10].mxu1 }
 0x26c   :  { %v4647_v57 = vpop.f32.mrb[11].mxu0  ;;  %v4649_v58 = vpop.f32.mrb[11].mxu1 }
 0x26f   :  { %v4651_v61 = vpop.f32.mrb[12].mxu0  ;;  %v4653_v62 = vpop.f32.mrb[12].mxu1 }
 0x270   :  { %v4658_v1 = vpop.f32.mrb[13].mxu0  ;;  %v4660_v2 = vpop.f32.mrb[13].mxu1 }
 0x271   :  { %5996 = vst [vmem:[#allocation8_spill] sm:$0xff] %v4660_v2 }
 0x272   :  { %v3929_v59 = vpop.eup %3928 }
 0x273   :  { %v292_v60 = vmul.f32 0.6931472, %v3929_v59  ;;  %v4669_v12 = vpop.f32.mrb[14].mxu0  ;;  %v4671_v14 = vpop.f32.mrb[14].mxu1 }
 0x274   :  { %5999 = vst [vmem:[#allocation11_spill] sm:$0xff] %v4671_v14  ;;  %v4673_v15 = vpop.f32.mrb[15].mxu0  ;;  %v4675_v17 = vpop.f32.mrb[15].mxu1 }
 0x275   :  { %v295_v0 = vsel %vm281_vm5, %v273_v35, %v292_v60  ;;  %6000 = vst [vmem:[#allocation12_spill] sm:$0xff] %v4675_v17  ;;  %v3931_v21 = vpop.eup %3930 }
 0x276   :  { %v301_v4 = vcombine.high %v295_v0, %v295_v0  ;;  %v308_v5 = vrot.slane %v295_v0, %v4244_v8  ;;  %v297_v26 = vmul.f32 %v295_v0, %v4246_v10  ;;  %v290_v16 = vadd.f32 1.0, %v3931_v21 }
 0x277   :  { %v4681_v30 = vpop.f32.mrb[16].mxu0  ;;  %v4683_v33 = vpop.f32.mrb[16].mxu1 }
 0x278   :  { %v315_v23 = vrot.slane %v301_v4, %v4244_v8  ;;  %v316_v24 = vcombine.high %v308_v5, %v308_v5  ;;  %v324_v25 = vrot.slane %v308_v5, %v4244_v8  ;;  %6001 = vst [vmem:[#allocation13_spill] sm:$0xff] %v4683_v33  ;;  %v4687_v19 = vpop.f32.mrb[17].mxu0  ;;  %v4689_v20 = vpop.f32.mrb[17].mxu1  ;;  %v1492_v46 = vcombine.high %v297_v26, %v297_v26 }
 0x279   :  { %6002 = vst [vmem:[#allocation14_spill] sm:$0xff] %v4689_v20  ;;  %v1499_v47 = vrot.slane %v297_v26, %v4244_v8  ;;  %3932 = vlog2.f32 %v290_v16 }
 0x27a   :  { %v317_v10 = vcombine.high %v315_v23, %v315_v23  ;;  %v338_v32 = vrot.slane %v316_v24, %v4244_v8  ;;  %v346_v35 = vcombine.high %v324_v25, %v324_v25  ;;  %v4696_v37 = vrot.slane %v315_v23, %v4244_v8  ;;  %v4716_v23 = vld [vmem:[%s5979_s6 + $0x40] sm:$0xff]  ;;  %v4721_v24 = vld [vmem:[%s5979_s6 + $0x58] sm:$0xff] }
 0x27b   :  { %v402_v43 = vrot.slane %v324_v25, %v4258_v13  ;;  %v4705_v59 = vpop.f32.mrb[18].mxu0  ;;  %v4707_v60 = vpop.f32.mrb[18].mxu1  ;;  %v1506_v21 = vrot.slane %v1492_v46, %v4244_v8  ;;  %v4726_v25 = vld [vmem:[%s5979_s6 + $0x50] sm:$0xff]  ;;  %v1507_v63 = vcombine.high %v1499_v47, %v1499_v47  ;;  %v1515_v22 = vrot.slane %v1499_v47, %v4244_v8 }
 0x27c   :  { %6003 = vst [vmem:[#allocation15_spill] sm:$0xff] %v4696_v37  ;;  %6004 = vst [vmem:[#allocation16_spill] sm:$0xff] %v4707_v60  ;;  %v348_v5 = vcombine.high %v338_v32, %v338_v32  ;;  %v4728_v26 = vpop.f32.mrb[19].mxu0  ;;  %v4730_v16 = vpop.f32.mrb[19].mxu1  ;;  %v4734_v4 = vrot.slane %v317_v10, %v4244_v8  ;;  %v406_v0 = vrot.slane %v338_v32, %v4258_v13 }
 0x27d   :  { %6005 = vst [vmem:[#allocation17_spill] sm:$0xff] %v4730_v16  ;;  %v410_v34 = vrot.slane %v346_v35, %v4258_v13  ;;  %v4740_v36 = vrot.slane %v4696_v37, %v4258_v13  ;;  %v1508_v28 = vcombine.high %v1506_v21, %v1506_v21  ;;  %v480_v18 = vmul.f32 %v402_v43, %v4703_v51 }
 0x27e   :  { %v1529_v29 = vrot.slane %v1507_v63, %v4244_v8  ;;  %v479_v46 = vmul.f32 %v402_v43, %v4716_v23  ;;  %v482_v10 = vmul.f32 %v402_v43, %v4721_v24  ;;  %v481_v32 = vmul.f32 %v402_v43, %v4726_v25 }
 0x27f   :  { %v4748_v16 = vpop.f32.mrb[20].mxu0  ;;  %v4750_v35 = vpop.f32.mrb[20].mxu1  ;;  %v4753_v60 = vrot.slane %v348_v5, %v4258_v13  ;;  %v4756_v20 = vrot.slane %v1506_v21, %v4244_v8  ;;  %v4759_v47 = vrot.slane %v1508_v28, %v4244_v8  ;;  %v545_v63 = vmul.f32 1.442695, %v480_v18 }
 0x280   :  { %6006 = vst [vmem:[#allocation18_spill] sm:$0xff] %v4750_v35  ;;  %v4761_v9 = vpop.f32.mrb[21].mxu0  ;;  %v4763_v33 = vpop.f32.mrb[21].mxu1  ;;  %v1537_v11 = vcombine.high %v1515_v22, %v1515_v22  ;;  %v1593_v43 = vrot.slane %v1515_v22, %v4258_v13  ;;  %v543_v7 = vmul.f32 1.442695, %v479_v46  ;;  %v1539_v35 = vcombine.high %v1529_v29, %v1529_v29 }
 0x281   :  { %6007 = vst [vmem:[#allocation19_spill] sm:$0xff] %v4763_v33  ;;  %v549_v37 = vmul.f32 1.442695, %v482_v10  ;;  %3934 = vpow2.f32 %v545_v63  ;;  %v547_v5 = vmul.f32 1.442695, %v481_v32  ;;  %v484_v17 = vmul.f32 %v406_v0, %v4703_v51 }
 0x282   :  { %v4768_v21 = vmul.f32 %v4610_v38, %v1593_v43  ;;  %3936 = vpow2.f32 %v543_v7  ;;  %v4771_v18 = vmul.f32 %v1593_v43, %v4614_v27  ;;  %v4774_v28 = vmul.f32 %v4618_v41, %v1593_v43 }
 0x283   :  { %v4776_v33 = vpop.f32.mrb[22].mxu0  ;;  %v4778_v22 = vpop.f32.mrb[22].mxu1  ;;  %3938 = vpow2.f32 %v549_v37  ;;  %v4781_v46 = vmul.f32 %v1593_v43, %v4622_v44  ;;  %v553_v10 = vmul.f32 1.442695, %v484_v17  ;;  %v1597_v32 = vrot.slane %v1529_v29, %v4258_v13 }
 0x284   :  { %6008 = vst [vmem:[#allocation20_spill] sm:$0xff] %v4778_v22  ;;  %v4784_v38 = vpop.f32.mrb[23].mxu0  ;;  %v4786_v7 = vpop.f32.mrb[23].mxu1  ;;  %3940 = vpow2.f32 %v547_v5  ;;  %v483_v27 = vmul.f32 %v406_v0, %v4716_v23  ;;  %v486_v41 = vmul.f32 %v406_v0, %v4721_v24  ;;  %v485_v63 = vmul.f32 %v406_v0, %v4726_v25 }
 0x285   :  { %6009 = vst [vmem:[#allocation21_spill] sm:$0xff] %v4784_v38  ;;  %6010 = vst [vmem:[#allocation22_spill] sm:$0xff] %v4786_v7  ;;  %v4791_v8 = vpop.eup %3932  ;;  %3942 = vpow2.f32 %v553_v10  ;;  %v4794_v44 = vmul.f32 %v4627_v3, %v1597_v32  ;;  %v4797_v17 = vmul.f32 %v1597_v32, %v4631_v49  ;;  %v4800_v29 = vmul.f32 %v4635_v52, %v1597_v32 }
 0x286   :  { %v551_v37 = vmul.f32 1.442695, %v483_v27  ;;  %v557_v43 = vmul.f32 1.442695, %v486_v41  ;;  %v555_v5 = vmul.f32 1.442695, %v485_v63  ;;  %v4803_v7 = vmul.f32 %v1597_v32, %v4639_v6 }
 0x287   :  { %v488_v0 = vmul.f32 %v410_v34, %v4703_v51  ;;  %v1601_v22 = vrot.slane %v1537_v11, %v4258_v13  ;;  %v487_v10 = vmul.f32 %v410_v34, %v4716_v23  ;;  %v490_v3 = vmul.f32 %v410_v34, %v4721_v24  ;;  %v4809_v38 = vpop.f32.mrb[24].mxu0  ;;  %v4811_v49 = vpop.f32.mrb[24].mxu1 }
 0x288   :  { %6011 = vst [vmem:[#allocation23_spill] sm:$0xff] %v4809_v38  ;;  %6012 = vst [vmem:[#allocation24_spill] sm:$0xff] %v4811_v49  ;;  %3944 = vpow2.f32 %v551_v37  ;;  %v489_v52 = vmul.f32 %v410_v34, %v4726_v25  ;;  %v492_v27 = vmul.f32 %v4753_v60, %v4703_v51  ;;  %v1605_v6 = vrot.slane %v1539_v35, %v4258_v13  ;;  %v4817_v32 = vpop.f32.mrb[25].mxu0  ;;  %v4819_v41 = vpop.f32.mrb[25].mxu1 }
 0x289   :  { %6013 = vst [vmem:[#allocation25_spill] sm:$0xff] %v4817_v32  ;;  %6014 = vst [vmem:[#allocation26_spill] sm:$0xff] %v4819_v41  ;;  %3946 = vpow2.f32 %v557_v43  ;;  %v561_v11 = vmul.f32 1.442695, %v488_v0  ;;  %v4822_v63 = vmul.f32 %v4643_v55, %v1601_v22  ;;  %v559_v38 = vmul.f32 1.442695, %v487_v10 }
 0x28a   :  { %3948 = vpow2.f32 %v555_v5  ;;  %v4825_v37 = vmul.f32 %v1601_v22, %v4647_v57  ;;  %v565_v34 = vmul.f32 1.442695, %v490_v3  ;;  %v4828_v49 = vmul.f32 %v4651_v61, %v1601_v22 }
 0x28b   :  { %v4830_v14 = vpop.f32.mrb[26].mxu0  ;;  %v4832_v35 = vpop.f32.mrb[26].mxu1  ;;  %3950 = vpow2.f32 %v561_v11  ;;  %v563_v43 = vmul.f32 1.442695, %v489_v52  ;;  %v4835_v0 = vmul.f32 %v1601_v22, %v4658_v1  ;;  %v569_v55 = vmul.f32 1.442695, %v492_v27 }
 0x28c   :  { %6015 = vst [vmem:[#allocation27_spill] sm:$0xff] %v4830_v14  ;;  %6016 = vst [vmem:[#allocation28_spill] sm:$0xff] %v4832_v35  ;;  %v3935_v32 = vpop.eup %3934  ;;  %v4837_v10 = vpop.f32.mrb[27].mxu0  ;;  %3952 = vpow2.f32 %v559_v38  ;;  %v4842_v61 = vmul.f32 %v4669_v12, %v1605_v6  ;;  %v491_v35 = vmul.f32 %v4753_v60, %v4716_v23  ;;  %v4847_v1 = vmul.f32 %v1605_v6, %v4673_v15 }
 0x28d   :  { %6017 = vst [vmem:[#allocation29_spill] sm:$0xff] %v4837_v10  ;;  %v4839_v5 = vpop.f32.mrb[27].mxu1  ;;  %v3937_v57 = vpop.eup %3936  ;;  %v1735_v3 = vmul.f32 0.0, %v3935_v32  ;;  %3954 = vpow2.f32 %v565_v34  ;;  %v494_v22 = vmul.f32 %v4753_v60, %v4721_v24 }
 0x28e   :  { %6018 = vst [vmem:[#allocation30_spill] sm:$0xff] %v4839_v5  ;;  %v3939_v41 = vpop.eup %3938  ;;  %v1734_v11 = vmul.f32 0.0, %v3937_v57  ;;  %3956 = vpow2.f32 %v563_v43  ;;  %v567_v38 = vmul.f32 1.442695, %v491_v35  ;;  %v4864_v35 = vmul.f32 %v4681_v30, %v1605_v6 }
 0x28f   :  { %v3941_v52 = vpop.eup %3940  ;;  %v1739_v27 = vadd.f32 %v1735_v3, %v4768_v21  ;;  %v1737_v32 = vmul.f32 0.0, %v3939_v41  ;;  %v4852_v12 = vpop.f32.mrb[28].mxu0  ;;  %3958 = vpow2.f32 %v569_v55  ;;  %v573_v15 = vmul.f32 1.442695, %v494_v22 }
 0x290   :  { %v4854_v5 = vpop.f32.mrb[28].mxu1  ;;  %v3943_v10 = vpop.eup %3942  ;;  %v1738_v57 = vadd.f32 %v1734_v11, %v4771_v18  ;;  %v1736_v34 = vmul.f32 0.0, %v3941_v52  ;;  %3960 = vpow2.f32 %v567_v38  ;;  %v493_v43 = vmul.f32 %v4753_v60, %v4726_v25 }
 0x291   :  { %6019 = vst [vmem:[#allocation31_spill] sm:$0xff] %v4854_v5  ;;  %v4857_v14 = vpop.f32.mrb[29].mxu0  ;;  %v4859_v2 = vpop.f32.mrb[29].mxu1  ;;  %1743 = vst.msk [vmem:[#allocation2 + $0x8] sm:$0xff] %vm68_vm0, %v1739_v27  ;;  %v1741_v21 = vadd.f32 %v1737_v32, %v4774_v28  ;;  %v1747_v41 = vmul.f32 %v3943_v10, %v1739_v27  ;;  %3962 = vpow2.f32 %v573_v15  ;;  %v4871_v55 = vmul.f32 %v1605_v6, %v4687_v19 }
 0x292   :  { %6020 = vst [vmem:[#allocation32_spill] sm:$0xff] %v4859_v2  ;;  %1742 = vst.msk [vmem:[#allocation2] sm:$0xff] %vm68_vm0, %v1738_v57  ;;  %v1740_v18 = vadd.f32 %v1736_v34, %v4781_v46  ;;  %v3945_v3 = vpop.eup %3944  ;;  %v496_v30 = vmul.f32 %v4740_v36, %v4703_v51  ;;  %v4879_v10 = vrot.slane %v4756_v20, %v4258_v13  ;;  %v571_v22 = vmul.f32 1.442695, %v493_v43 }
 0x293   :  { %1745 = vst.msk [vmem:[#allocation2 + $0x18] sm:$0xff] %vm68_vm0, %v1741_v21  ;;  %v1751_v28 = vadd.f32 %v1747_v41, %v4794_v44  ;;  %v495_v46 = vmul.f32 %v4740_v36, %v4716_v23  ;;  %v4883_v11 = vpop.f32.mrb[30].mxu0  ;;  %v4885_v60 = vpop.f32.mrb[30].mxu1  ;;  %v1746_v6 = vmul.f32 %v3945_v3, %v1738_v57  ;;  %v498_v44 = vmul.f32 %v4740_v36, %v4721_v24 }
 0x294   :  { %6021 = vst [vmem:[#allocation33_spill] sm:$0xff] %v4885_v60  ;;  %v3947_v19 = vpop.eup %3946  ;;  %1744 = vst.msk [vmem:[#allocation2 + $0x10] sm:$0xff] %vm68_vm0, %v1740_v18  ;;  %v497_v52 = vmul.f32 %v4740_v36, %v4726_v25  ;;  %v4892_v27 = vpop.f32.mrb[31].mxu0  ;;  %v577_v15 = vmul.f32 1.442695, %v496_v30  ;;  %v4899_v41 = vmul.f32 %v4705_v59, %v4879_v10  ;;  %3964 = vpow2.f32 %v571_v22 }
 0x295   :  { %v4894_v32 = vpop.f32.mrb[31].mxu1  ;;  %v3949_v38 = vpop.eup %3948  ;;  %1756 = vst.msk [vmem:[#allocation2 + $0x28] sm:$0xff] %vm68_vm0, %v1751_v28  ;;  %v1749_v34 = vmul.f32 %v3947_v19, %v1741_v21  ;;  %v575_v57 = vmul.f32 1.442695, %v495_v46  ;;  %v1750_v3 = vadd.f32 %v1746_v6, %v4797_v17  ;;  %v4904_v36 = vmul.f32 %v4879_v10, %v4728_v26 }
 0x296   :  { %6022 = vst [vmem:[#allocation34_spill] sm:$0xff] %v4894_v32  ;;  %v3951_v43 = vpop.eup %3950  ;;  %v1748_v60 = vmul.f32 %v3949_v38, %v1740_v18  ;;  %3966 = vpow2.f32 %v577_v15  ;;  %v581_v21 = vmul.f32 1.442695, %v498_v44  ;;  %v4915_v26 = vmul.f32 %v4748_v16, %v4879_v10 }
 0x297   :  { %v3953_v32 = vpop.eup %3952  ;;  %v1753_v2 = vadd.f32 %v1749_v34, %v4800_v29  ;;  %v1760_v5 = vmul.f32 %v3951_v43, %v1751_v28  ;;  %v4907_v30 = vpop.f32.mrb[32].mxu0  ;;  %1755 = vst.msk [vmem:[#allocation2 + $0x20] sm:$0xff] %vm68_vm0, %v1750_v3  ;;  %3968 = vpow2.f32 %v575_v57  ;;  %v579_v57 = vmul.f32 1.442695, %v497_v52 }
 0x298   :  { %v4909_v59 = vpop.f32.mrb[32].mxu1  ;;  %v3955_v46 = vpop.eup %3954  ;;  %v2583_v19 = vld [vmem:[#allocation2 + $0x8] sm:$0xff]  ;;  %v1752_v17 = vadd.f32 %v1748_v60, %v4803_v7  ;;  %v1759_v18 = vmul.f32 %v3953_v32, %v1750_v3  ;;  %3970 = vpow2.f32 %v581_v21 }
 0x299   :  { %v4917_v29 = vpop.f32.mrb[33].mxu0  ;;  %v4919_v28 = vpop.f32.mrb[33].mxu1  ;;  %v2647_v22 = vmul.f32 %v4612_v39, %v2583_v19  ;;  %v2582_v44 = vld [vmem:[#allocation2] sm:$0xff]  ;;  %1758 = vst.msk [vmem:[#allocation2 + $0x38] sm:$0xff] %vm68_vm0, %v1753_v2  ;;  %v1764_v38 = vadd.f32 %v1760_v5, %v4822_v63  ;;  %v1762_v34 = vmul.f32 %v3955_v46, %v1753_v2  ;;  %3972 = vpow2.f32 %v579_v57 }
 0x29a   :  { %v3957_v6 = vpop.eup %3956  ;;  %v2646_v60 = vmul.f32 %v2582_v44, %v4616_v40  ;;  %v2585_v32 = vld [vmem:[#allocation2 + $0x18] sm:$0xff]  ;;  %1757 = vst.msk [vmem:[#allocation2 + $0x30] sm:$0xff] %vm68_vm0, %v1752_v17  ;;  %v1763_v16 = vadd.f32 %v1759_v18, %v4825_v37  ;;  %v4970_v57 = vrot.slane %v4759_v47, %v4258_v13 }
 0x29b   :  { %v3959_v7 = vpop.eup %3958  ;;  %v1761_v15 = vmul.f32 %v3957_v6, %v1752_v17  ;;  %v2711_v39 = vsel %vm68_vm0, %v2647_v22, 0.0  ;;  %v2649_v3 = vmul.f32 %v4620_v42, %v2585_v32  ;;  %v2584_v19 = vld [vmem:[#allocation2 + $0x10] sm:$0xff]  ;;  %1769 = vst.msk [vmem:[#allocation2 + $0x48] sm:$0xff] %vm68_vm0, %v1764_v38  ;;  %v1766_v2 = vadd.f32 %v1762_v34, %v4828_v49  ;;  %v4931_v5 = vpop.f32.mrb[34].mxu0 }
 0x29c   :  { %v3961_v43 = vpop.eup %3960  ;;  %v1773_v63 = vmul.f32 %v3959_v7, %v1764_v38  ;;  %v4933_v40 = vpop.f32.mrb[34].mxu1  ;;  %v2710_v37 = vsel %vm68_vm0, %v2646_v60, 0.0  ;;  %v2648_v52 = vmul.f32 %v2584_v19, %v4624_v45  ;;  %v2587_v46 = vld [vmem:[#allocation2 + $0x28] sm:$0xff]  ;;  %1768 = vst.msk [vmem:[#allocation2 + $0x40] sm:$0xff] %vm68_vm0, %v1763_v16  ;;  %v294_v49 = vmul.f32 0.6931472, %v4791_v8 }
 0x29d   :  { %v3963_v21 = vpop.eup %3962  ;;  %v1765_v42 = vadd.f32 %v1761_v15, %v4835_v0  ;;  %v1772_v17 = vmul.f32 %v3961_v43, %v1763_v16  ;;  %v4939_v18 = vpop.f32.mrb[35].mxu0  ;;  %v2712_v22 = vadd.f32 %v2711_v39, %v2710_v37  ;;  %v2651_v44 = vmul.f32 %v4629_v48, %v2587_v46  ;;  %1771 = vst.msk [vmem:[#allocation2 + $0x58] sm:$0xff] %vm68_vm0, %v1766_v2 }
 0x29e   :  { %v4941_v6 = vpop.f32.mrb[35].mxu1  ;;  %v1777_v38 = vadd.f32 %v1773_v63, %v4842_v61  ;;  %v4949_v45 = vrot.slane %v4734_v4, %v4258_v13  ;;  %v2713_v0 = vsel %vm68_vm0, %v2648_v52, 0.0  ;;  %v1775_v7 = vmul.f32 %v3963_v21, %v1766_v2  ;;  %v2586_v32 = vld [vmem:[#allocation2 + $0x20] sm:$0xff]  ;;  %v3965_v15 = vpop.eup %3964 }
 0x29f   :  { %1770 = vst.msk [vmem:[#allocation2 + $0x50] sm:$0xff] %vm68_vm0, %v1765_v42  ;;  %v1776_v34 = vadd.f32 %v1772_v17, %v4847_v1  ;;  %v2715_v8 = vsel %vm68_vm0, %v2649_v3, 0.0  ;;  %v2714_v60 = vadd.f32 %v2713_v0, %v2712_v22  ;;  %v4958_v48 = vmul.f32 %v4879_v10, %v4761_v9  ;;  %v4960_v61 = vpop.f32.mrb[36].mxu0  ;;  %v4962_v16 = vpop.f32.mrb[36].mxu1 }
 0x2a0   :  { %1782 = vst.msk [vmem:[#allocation2 + $0x68] sm:$0xff] %vm68_vm0, %v1777_v38  ;;  %6023 = vst [vmem:[#allocation35_spill] sm:$0xff] %v4962_v16  ;;  %v2724_v43 = vsel %vm68_vm0, %v2651_v44, 0.0  ;;  %v2650_v1 = vmul.f32 %v2586_v32, %v4633_v50  ;;  %v2589_v39 = vld [vmem:[#allocation2 + $0x38] sm:$0xff]  ;;  %v1779_v3 = vadd.f32 %v1775_v7, %v4864_v35  ;;  %v4972_v9 = vpop.f32.mrb[37].mxu0  ;;  %v4974_v10 = vpop.f32.mrb[37].mxu1  ;;  %v1774_v21 = vmul.f32 %v3965_v15, %v1765_v42 }
 0x2a1   :  { %1781 = vst.msk [vmem:[#allocation2 + $0x60] sm:$0xff] %vm68_vm0, %v1776_v34  ;;  %6024 = vst [vmem:[#allocation36_spill] sm:$0xff] %v4974_v10  ;;  %v3967_v19 = vpop.eup %3966  ;;  %v4977_v2 = vadd.f32 %v2715_v8, %v2714_v60  ;;  %v2653_v50 = vmul.f32 %v4637_v53, %v2589_v39  ;;  %v2588_v63 = vld [vmem:[#allocation2 + $0x30] sm:$0xff]  ;;  %v4985_v22 = vmul.f32 %v4776_v33, %v4970_v57 }
 0x2a2   :  { %v3969_v37 = vpop.eup %3968  ;;  %v2723_v35 = vsel %vm68_vm0, %v2650_v1, 0.0  ;;  %v2652_v52 = vmul.f32 %v2588_v63, %v4641_v54  ;;  %v2591_v46 = vld [vmem:[#allocation2 + $0x48] sm:$0xff]  ;;  %1784 = vst.msk [vmem:[#allocation2 + $0x78] sm:$0xff] %vm68_vm0, %v1779_v3  ;;  %v1786_v17 = vmul.f32 %v3967_v19, %v1777_v38  ;;  %v4988_v0 = vsel %vm282_vm6, %v4608_v31, %v294_v49 }
 0x2a3   :  { %v3971_v44 = vpop.eup %3970  ;;  %v2725_v53 = vadd.f32 %v2724_v43, %v2723_v35  ;;  %v2655_v42 = vmul.f32 %v4645_v56, %v2591_v46  ;;  %v2590_v7 = vld [vmem:[#allocation2 + $0x40] sm:$0xff]  ;;  %v500_v8 = vmul.f32 %v4949_v45, %v4703_v51  ;;  %v4993_v54 = vpop.f32.mrb[38].mxu0  ;;  %v1778_v15 = vadd.f32 %v1774_v21, %v4871_v55 }
 0x2a4   :  { %v4995_v60 = vpop.f32.mrb[38].mxu1  ;;  %v2726_v38 = vsel %vm68_vm0, %v2652_v52, 0.0  ;;  %v2654_v33 = vmul.f32 %v2590_v7, %v4649_v58  ;;  %v2593_v32 = vld [vmem:[#allocation2 + $0x58] sm:$0xff]  ;;  %v5001_v31 = vadd.f32 %v1786_v17, %v4899_v41  ;;  %v5003_v49 = vpop.f32.mrb[39].mxu0  ;;  %v2728_v43 = vsel %vm68_vm0, %v2653_v50, 0.0  ;;  %v6027_v35 = vld [vmem:[#allocation8_spill] sm:$0xff] }
 0x2a5   :  { %6025 = vst [vmem:[#allocation37_spill] sm:$0xff] %v4995_v60  ;;  %v5005_v56 = vpop.f32.mrb[39].mxu1  ;;  %v2727_v1 = vadd.f32 %v2726_v38, %v2725_v53  ;;  %v2737_v39 = vsel %vm68_vm0, %v2655_v42, 0.0  ;;  %v2657_v19 = vmul.f32 %v4653_v62, %v2593_v32  ;;  %1783 = vst.msk [vmem:[#allocation2 + $0x70] sm:$0xff] %vm68_vm0, %v1778_v15  ;;  %v1785_v41 = vmul.f32 %v3969_v37, %v1776_v34 }
 0x2a6   :  { %6026 = vst [vmem:[#allocation38_spill] sm:$0xff] %v5005_v56  ;;  %v2592_v63 = vld [vmem:[#allocation2 + $0x50] sm:$0xff]  ;;  %v2736_v58 = vsel %vm68_vm0, %v2654_v33, 0.0  ;;  %1795 = vst.msk [vmem:[#allocation2 + $0x88] sm:$0xff] %vm68_vm0, %v5001_v31  ;;  %v1788_v21 = vmul.f32 %v3971_v44, %v1779_v3  ;;  %v585_v53 = vmul.f32 1.442695, %v500_v8  ;;  %v499_v62 = vmul.f32 %v4949_v45, %v4716_v23  ;;  %v3973_v44 = vpop.eup %3972 }
 0x2a7   :  { %v2656_v52 = vmul.f32 %v2592_v63, %v6027_v35  ;;  %v2595_v55 = vld [vmem:[#allocation2 + $0x68] sm:$0xff]  ;;  %v5015_v46 = vadd.f32 %v2728_v43, %v2727_v1  ;;  %v2738_v50 = vadd.f32 %v2737_v39, %v2736_v58  ;;  %v5019_v42 = vpop.f32.mrb[40].mxu0  ;;  %v5021_v7 = vpop.f32.mrb[40].mxu1  ;;  %v6029_v33 = vld [vmem:[#allocation11_spill] sm:$0xff]  ;;  %v6030_v63 = vld [vmem:[#allocation12_spill] sm:$0xff]  ;;  %v5027_v34 = vadd.f32 %v1785_v41, %v4904_v36 }
 0x2a8   :  { %v2594_v17 = vld [vmem:[#allocation2 + $0x60] sm:$0xff]  ;;  %6028 = vst [vmem:[#allocation8_spill] sm:$0xff] %v5021_v7  ;;  %v2659_v32 = vmul.f32 %v6029_v33, %v2595_v55  ;;  %v5029_v3 = vpop.f32.mrb[41].mxu0  ;;  %v5031_v37 = vpop.f32.mrb[41].mxu1  ;;  %v6032_v8 = vld [vmem:[#allocation15_spill] sm:$0xff]  ;;  %v5036_v39 = vadd.f32 %v1788_v21, %v4915_v26  ;;  %v2741_v55 = vsel %vm68_vm0, %v2657_v19, 0.0  ;;  %v1787_v33 = vmul.f32 %v3973_v44, %v1778_v15 }
 0x2a9   :  { %v2739_v38 = vsel %vm68_vm0, %v2656_v52, 0.0  ;;  %v2658_v35 = vmul.f32 %v2594_v17, %v6030_v63  ;;  %6031 = vst [vmem:[#allocation11_spill] sm:$0xff] %v5031_v37  ;;  %v347_v43 = vcombine.high %v6032_v8, %v6032_v8  ;;  %v2597_v41 = vld [vmem:[#allocation2 + $0x78] sm:$0xff]  ;;  %1794 = vst.msk [vmem:[#allocation2 + $0x80] sm:$0xff] %vm68_vm0, %v5027_v34  ;;  %v350_v63 = vcombine.high %v4988_v0, %v4988_v0  ;;  %v6042_v8 = vld [vmem:[#allocation16_spill] sm:$0xff] }
 0x2aa   :  { %v2740_v1 = vadd.f32 %v2739_v38, %v2738_v50  ;;  %v2750_v17 = vsel %vm68_vm0, %v2659_v32, 0.0  ;;  %1797 = vst.msk [vmem:[#allocation2 + $0x98] sm:$0xff] %vm68_vm0, %v5036_v39  ;;  %v5056_v32 = vadd.f32 %v1787_v33, %v4958_v48  ;;  %3974 = vpow2.f32 %v585_v53  ;;  %v6039_v38 = vld [vmem:[#allocation21_spill] sm:$0xff] }
 0x2ab   :  { %v2749_v36 = vsel %vm68_vm0, %v2658_v35, 0.0  ;;  %v5050_v21 = vpop.f32.mrb[42].mxu0  ;;  %v5052_v19 = vpop.f32.mrb[42].mxu1  ;;  %v583_v15 = vmul.f32 1.442695, %v499_v62  ;;  %v5070_v48 = vmul.f32 %v4970_v57, %v6039_v38  ;;  %v5074_v33 = vrot.slane %v347_v43, %v4258_v13  ;;  %v6044_v43 = vld [vmem:[#allocation23_spill] sm:$0xff] }
 0x2ac   :  { %v5046_v50 = vadd.f32 %v2741_v55, %v2740_v1  ;;  %v2751_v26 = vadd.f32 %v2750_v17, %v2749_v36  ;;  %6035 = vst [vmem:[#allocation15_spill] sm:$0xff] %v5052_v19  ;;  %v5058_v35 = vpop.f32.mrb[43].mxu0  ;;  %v5060_v44 = vpop.f32.mrb[43].mxu1  ;;  %v6037_v1 = vld [vmem:[#allocation7_spill] sm:$0xff]  ;;  %v6038_v17 = vld [vmem:[#allocation13_spill] sm:$0xff]  ;;  %v2596_v52 = vld [vmem:[#allocation2 + $0x70] sm:$0xff]  ;;  %v5091_v62 = vmul.f32 %v6044_v43, %v4970_v57 }
 0x2ad   :  { %6036 = vst [vmem:[#allocation39_spill] sm:$0xff] %v5060_v44  ;;  %v5065_v55 = vmul.f32 %v4988_v0, %v6037_v1  ;;  %v2661_v36 = vmul.f32 %v6038_v17, %v2597_v41  ;;  %v2599_v19 = vld [vmem:[#allocation2 + $0x88] sm:$0xff]  ;;  %v6041_v44 = vld [vmem:[#allocation14_spill] sm:$0xff]  ;;  %1796 = vst.msk [vmem:[#allocation2 + $0x90] sm:$0xff] %vm68_vm0, %v5056_v32  ;;  %v502_v41 = vmul.f32 %v4949_v45, %v4721_v24  ;;  %3976 = vpow2.f32 %v583_v15 }
 0x2ae   :  { %6034 = vst [vmem:[#allocation12_spill] sm:$0xff] %v5046_v50  ;;  %v2660_v37 = vmul.f32 %v2596_v52, %v6041_v44  ;;  %v2663_v58 = vmul.f32 %v6042_v8, %v2599_v19  ;;  %v6043_v1 = vld [vmem:[#allocation6_spill] sm:$0xff]  ;;  %v1538_v44 = vcombine.high %v4756_v20, %v4756_v20  ;;  %v6050_v20 = vld [vmem:[#allocation17_spill] sm:$0xff] }
 0x2af   :  { %v5084_v17 = vrot.slane %v4988_v0, %v6043_v1  ;;  %v5087_v38 = vrot.slane %v350_v63, %v6043_v1  ;;  %v5093_v52 = vpop.f32.mrb[44].mxu0  ;;  %v5095_v19 = vpop.f32.mrb[44].mxu1  ;;  %v589_v53 = vmul.f32 1.442695, %v502_v41  ;;  %v501_v0 = vmul.f32 %v4949_v45, %v4726_v25 }
 0x2b0   :  { %6045 = vst [vmem:[#allocation7_spill] sm:$0xff] %v5093_v52  ;;  %6046 = vst [vmem:[#allocation13_spill] sm:$0xff] %v5095_v19  ;;  %v2752_v8 = vsel %vm68_vm0, %v2660_v37, 0.0  ;;  %v5102_v63 = vpop.f32.mrb[45].mxu0  ;;  %v5104_v15 = vpop.f32.mrb[45].mxu1  ;;  %v2754_v43 = vsel %vm68_vm0, %v2661_v36, 0.0  ;;  %v504_v45 = vmul.f32 %v5074_v33, %v4703_v51 }
 0x2b1   :  { %6047 = vst [vmem:[#allocation21_spill] sm:$0xff] %v5102_v63  ;;  %6048 = vst [vmem:[#allocation14_spill] sm:$0xff] %v5104_v15  ;;  %v2753_v7 = vadd.f32 %v2752_v8, %v2751_v26  ;;  %v2763_v56 = vsel %vm68_vm0, %v2663_v58, 0.0  ;;  %v2598_v60 = vld [vmem:[#allocation2 + $0x80] sm:$0xff]  ;;  %v6049_v19 = vld [vmem:[#allocation25_spill] sm:$0xff]  ;;  %3978 = vpow2.f32 %v589_v53  ;;  %v365_v15 = vcombine.high %v5084_v17, %v5084_v17 }
 0x2b2   :  { %v5110_v10 = vmul.f32 %v4970_v57, %v6049_v19  ;;  %v2662_v37 = vmul.f32 %v2598_v60, %v6050_v20  ;;  %v2601_v41 = vld [vmem:[#allocation2 + $0x98] sm:$0xff]  ;;  %v587_v16 = vmul.f32 1.442695, %v501_v0  ;;  %v5119_v26 = vrot.slane %v5084_v17, %v6043_v1 }
 0x2b3   :  { %v349_v58 = vcombine.high %v4734_v4, %v4734_v4  ;;  %v5123_v57 = vadd.f32 %v2754_v43, %v2753_v7  ;;  %v5125_v36 = vpop.f32.mrb[46].mxu0  ;;  %v5127_v60 = vpop.f32.mrb[46].mxu1  ;;  %v593_v19 = vmul.f32 1.442695, %v504_v45  ;;  %v1617_v8 = vrot.slane %v1538_v44, %v4258_v13  ;;  %v6056_v43 = vld [vmem:[#allocation18_spill] sm:$0xff]  ;;  %v6057_v44 = vld [vmem:[#allocation19_spill] sm:$0xff] }
 0x2b4   :  { %6052 = vst [vmem:[#allocation6_spill] sm:$0xff] %v5125_v36  ;;  %6053 = vst [vmem:[#allocation23_spill] sm:$0xff] %v5127_v60  ;;  %v2762_v53 = vsel %vm68_vm0, %v2662_v37, 0.0  ;;  %3980 = vpow2.f32 %v587_v16  ;;  %v5131_v0 = vpop.f32.mrb[47].mxu0  ;;  %v5133_v20 = vpop.f32.mrb[47].mxu1  ;;  %v1541_v17 = vcombine.high %v5065_v55, %v5065_v55  ;;  %v5139_v4 = vrot.slane %v5065_v55, %v6043_v1 }
 0x2b5   :  { %6051 = vst [vmem:[#allocation16_spill] sm:$0xff] %v5123_v57  ;;  %6054 = vst [vmem:[#allocation25_spill] sm:$0xff] %v5131_v0  ;;  %v2764_v7 = vadd.f32 %v2763_v56, %v2762_v53  ;;  %v2665_v60 = vmul.f32 %v6056_v43, %v2601_v41  ;;  %v2600_v57 = vld [vmem:[#allocation2 + $0x90] sm:$0xff]  ;;  %v3975_v37 = vpop.eup %3974  ;;  %v366_v16 = vcombine.high %v5087_v38, %v5087_v38  ;;  %3982 = vpow2.f32 %v593_v19  ;;  %v6058_v0 = vld [vmem:[#allocation27_spill] sm:$0xff] }
 0x2b6   :  { %6055 = vst [vmem:[#allocation17_spill] sm:$0xff] %v5133_v20  ;;  %v2664_v45 = vmul.f32 %v2600_v57, %v6057_v44  ;;  %v5146_v20 = vmul.f32 %v6058_v0, %v1617_v8  ;;  %v5149_v36 = vrot.slane %v349_v58, %v4258_v13  ;;  %v1540_v55 = vcombine.high %v4759_v47, %v4759_v47  ;;  %v6061_v19 = vld [vmem:[#allocation29_spill] sm:$0xff] }
 0x2b7   :  { %v1799_v56 = vmul.f32 %v3975_v37, %v5001_v31  ;;  %v503_v41 = vmul.f32 %v5074_v33, %v4716_v23  ;;  %v5156_v53 = vpop.f32.mrb[48].mxu0  ;;  %v5158_v43 = vpop.f32.mrb[48].mxu1  ;;  %v5162_v0 = vmul.f32 %v1617_v8, %v6061_v19  ;;  %v506_v58 = vmul.f32 %v5074_v33, %v4721_v24 }
 0x2b8   :  { %6059 = vst [vmem:[#allocation18_spill] sm:$0xff] %v5156_v53  ;;  %6060 = vst [vmem:[#allocation19_spill] sm:$0xff] %v5158_v43  ;;  %v2765_v57 = vsel %vm68_vm0, %v2664_v45, 0.0  ;;  %v5167_v44 = vmul.f32 %v4852_v12, %v1617_v8  ;;  %v5169_v47 = vpop.f32.mrb[49].mxu0  ;;  %v5171_v31 = vpop.f32.mrb[49].mxu1  ;;  %v5175_v53 = vrot.slane %v5087_v38, %v6043_v1  ;;  %v2767_v45 = vsel %vm68_vm0, %v2665_v60, 0.0 }
 0x2b9   :  { %6062 = vst [vmem:[#allocation27_spill] sm:$0xff] %v5169_v47  ;;  %6063 = vst [vmem:[#allocation29_spill] sm:$0xff] %v5171_v31  ;;  %v3977_v37 = vpop.eup %3976  ;;  %v2766_v43 = vadd.f32 %v2765_v57, %v2764_v7  ;;  %v1803_v19 = vadd.f32 %v1799_v56, %v4985_v22  ;;  %v591_v50 = vmul.f32 1.442695, %v503_v41  ;;  %v597_v52 = vmul.f32 1.442695, %v506_v58 }
 0x2ba   :  { %v1798_v63 = vmul.f32 %v3977_v37, %v5027_v34  ;;  %v505_v12 = vmul.f32 %v5074_v33, %v4726_v25  ;;  %v5183_v47 = vrot.slane %v365_v15, %v6043_v1  ;;  %v5189_v38 = vmul.f32 %v1617_v8, %v4857_v14 }
 0x2bb   :  { %v5185_v31 = vadd.f32 %v2767_v45, %v2766_v43  ;;  %1808 = vst.msk [vmem:[#allocation2 + $0xa8] sm:$0xff] %vm68_vm0, %v1803_v19  ;;  %v508_v22 = vmul.f32 %v5149_v36, %v4703_v51  ;;  %v5193_v60 = vpop.f32.mrb[50].mxu0  ;;  %v5195_v34 = vpop.f32.mrb[50].mxu1  ;;  %3984 = vpow2.f32 %v591_v50  ;;  %v1621_v56 = vrot.slane %v1540_v55, %v4258_v13 }
 0x2bc   :  { %6065 = vst [vmem:[#allocation41_spill] sm:$0xff] %v5195_v34  ;;  %v3979_v7 = vpop.eup %3978  ;;  %v5198_v33 = vadd.f32 %v1798_v63, %v5070_v48  ;;  %v595_v15 = vmul.f32 1.442695, %v505_v12  ;;  %v5201_v41 = vpop.f32.mrb[51].mxu0  ;;  %v5209_v8 = vrot.slane %v5119_v26, %v4258_v13  ;;  %3986 = vpow2.f32 %v597_v52 }
 0x2bd   :  { %6064 = vst [vmem:[#allocation40_spill] sm:$0xff] %v5185_v31  ;;  %v5203_v43 = vpop.f32.mrb[51].mxu1  ;;  %v1801_v57 = vmul.f32 %v3979_v7, %v5036_v39  ;;  %v5213_v50 = vrot.slane %v1541_v17, %v6043_v1  ;;  %v601_v63 = vmul.f32 1.442695, %v508_v22  ;;  %v5218_v55 = vmul.f32 %v4883_v11, %v1621_v56 }
 0x2be   :  { %6066 = vst [vmem:[#allocation42_spill] sm:$0xff] %v5203_v43  ;;  %v3981_v48 = vpop.eup %3980  ;;  %1807 = vst.msk [vmem:[#allocation2 + $0xa0] sm:$0xff] %vm68_vm0, %v5198_v33  ;;  %v507_v58 = vmul.f32 %v5149_v36, %v4716_v23  ;;  %v5224_v37 = vrot.slane %v5139_v4, %v6043_v1  ;;  %3988 = vpow2.f32 %v595_v15  ;;  %v5233_v22 = vmul.f32 %v1621_v56, %v4892_v27 }
 0x2bf   :  { %v1805_v39 = vadd.f32 %v1801_v57, %v5091_v62  ;;  %v1800_v52 = vmul.f32 %v3981_v48, %v5056_v32  ;;  %v5228_v17 = vpop.f32.mrb[52].mxu0  ;;  %v5230_v45 = vpop.f32.mrb[52].mxu1  ;;  %3990 = vpow2.f32 %v601_v63  ;;  %v510_v7 = vmul.f32 %v5149_v36, %v4721_v24 }
 0x2c0   :  { %6067 = vst [vmem:[#allocation43_spill] sm:$0xff] %v5230_v45  ;;  %v3983_v12 = vpop.eup %3982  ;;  %v599_v11 = vmul.f32 1.442695, %v507_v58  ;;  %v5237_v14 = vpop.f32.mrb[53].mxu0  ;;  %v5242_v32 = vrot.slane %v366_v16, %v6043_v1  ;;  %v1556_v62 = vcombine.high %v5139_v4, %v5139_v4  ;;  %v5249_v63 = vmul.f32 %v4907_v30, %v1621_v56 }
 0x2c1   :  { %6068 = vst [vmem:[#allocation44_spill] sm:$0xff] %v5237_v14  ;;  %v5239_v43 = vpop.f32.mrb[53].mxu1  ;;  %1810 = vst.msk [vmem:[#allocation2 + $0xb8] sm:$0xff] %vm68_vm0, %v1805_v39  ;;  %v1804_v15 = vadd.f32 %v1800_v52, %v5110_v10  ;;  %v1812_v57 = vmul.f32 %v3983_v12, %v1803_v19  ;;  %v605_v48 = vmul.f32 1.442695, %v510_v7  ;;  %v509_v58 = vmul.f32 %v5149_v36, %v4726_v25 }
 0x2c2   :  { %6069 = vst [vmem:[#allocation45_spill] sm:$0xff] %v5239_v43  ;;  %v2603_v27 = vld [vmem:[#allocation2 + $0xa8] sm:$0xff]  ;;  %3992 = vpow2.f32 %v599_v11  ;;  %v6070_v43 = vld [vmem:[#allocation20_spill] sm:$0xff]  ;;  %v5259_v10 = vmul.f32 %v1621_v56, %v4917_v29  ;;  %v512_v36 = vmul.f32 %v5209_v8, %v4703_v51  ;;  %v1625_v12 = vrot.slane %v5224_v37, %v4258_v13 }
 0x2c3   :  { %v2667_v45 = vmul.f32 %v6070_v43, %v2603_v27  ;;  %1809 = vst.msk [vmem:[#allocation2 + $0xb0] sm:$0xff] %vm68_vm0, %v1804_v15  ;;  %v1816_v4 = vadd.f32 %v1812_v57, %v5146_v20  ;;  %v5261_v19 = vpop.f32.mrb[54].mxu0  ;;  %v5263_v52 = vpop.f32.mrb[54].mxu1  ;;  %3994 = vpow2.f32 %v605_v48  ;;  %v603_v30 = vmul.f32 1.442695, %v509_v58  ;;  %v6075_v48 = vld [vmem:[#allocation22_spill] sm:$0xff] }
 0x2c4   :  { %6071 = vst [vmem:[#allocation20_spill] sm:$0xff] %v5261_v19  ;;  %6072 = vst [vmem:[#allocation46_spill] sm:$0xff] %v5263_v52  ;;  %v5269_v43 = vpop.f32.mrb[55].mxu0  ;;  %v5271_v11 = vpop.f32.mrb[55].mxu1  ;;  %v511_v7 = vmul.f32 %v5209_v8, %v4716_v23  ;;  %v514_v57 = vmul.f32 %v5209_v8, %v4721_v24  ;;  %v609_v16 = vmul.f32 1.442695, %v512_v36 }
 0x2c5   :  { %6073 = vst [vmem:[#allocation47_spill] sm:$0xff] %v5269_v43  ;;  %6074 = vst [vmem:[#allocation48_spill] sm:$0xff] %v5271_v11  ;;  %v2776_v20 = vsel %vm68_vm0, %v2667_v45, 0.0  ;;  %v2602_v56 = vld [vmem:[#allocation2 + $0xa0] sm:$0xff]  ;;  %v3985_v27 = vpop.eup %3984  ;;  %3996 = vpow2.f32 %v603_v30  ;;  %v5283_v11 = vmul.f32 %v4931_v5, %v1625_v12  ;;  %v5287_v45 = vrot.slane %v5183_v47, %v4258_v13 }
 0x2c6   :  { %1821 = vst.msk [vmem:[#allocation2 + $0xc8] sm:$0xff] %vm68_vm0, %v1816_v4  ;;  %v2666_v58 = vmul.f32 %v2602_v56, %v6075_v48  ;;  %v3987_v29 = vpop.eup %3986  ;;  %v1811_v52 = vmul.f32 %v3985_v27, %v5198_v33  ;;  %v607_v34 = vmul.f32 1.442695, %v511_v7  ;;  %v5291_v43 = vmul.f32 %v1625_v12, %v4939_v18  ;;  %v6091_v18 = vld [vmem:[#allocation31_spill] sm:$0xff] }
 0x2c7   :  { %v5293_v24 = vpop.f32.mrb[56].mxu0  ;;  %v5295_v19 = vpop.f32.mrb[56].mxu1  ;;  %v1814_v5 = vmul.f32 %v3987_v29, %v1805_v39  ;;  %3998 = vpow2.f32 %v609_v16  ;;  %v613_v56 = vmul.f32 1.442695, %v514_v57  ;;  %v5303_v33 = vrot.slane %v1556_v62, %v6043_v1  ;;  %v6080_v29 = vld [vmem:[#allocation24_spill] sm:$0xff] }
 0x2c8   :  { %6076 = vst [vmem:[#allocation22_spill] sm:$0xff] %v5293_v24  ;;  %6077 = vst [vmem:[#allocation49_spill] sm:$0xff] %v5295_v19  ;;  %v2775_v30 = vsel %vm68_vm0, %v2666_v58, 0.0  ;;  %v2605_v36 = vld [vmem:[#allocation2 + $0xb8] sm:$0xff]  ;;  %v5298_v48 = vpop.f32.mrb[57].mxu0  ;;  %v5300_v31 = vpop.f32.mrb[57].mxu1  ;;  %v1815_v27 = vadd.f32 %v1811_v52, %v5162_v0  ;;  %4000 = vpow2.f32 %v607_v34  ;;  %v5309_v16 = vmul.f32 %v4960_v61, %v1625_v12 }
 0x2c9   :  { %6078 = vst [vmem:[#allocation50_spill] sm:$0xff] %v5298_v48  ;;  %6079 = vst [vmem:[#allocation51_spill] sm:$0xff] %v5300_v31  ;;  %v3989_v14 = vpop.eup %3988  ;;  %v2777_v7 = vadd.f32 %v2776_v20, %v2775_v30  ;;  %v1818_v58 = vadd.f32 %v1814_v5, %v5167_v44  ;;  %v2669_v57 = vmul.f32 %v6080_v29, %v2605_v36  ;;  %v6081_v31 = vld [vmem:[#allocation26_spill] sm:$0xff]  ;;  %4002 = vpow2.f32 %v613_v56 }
 0x2ca   :  { %v3991_v19 = vpop.eup %3990  ;;  %v2604_v24 = vld [vmem:[#allocation2 + $0xb0] sm:$0xff]  ;;  %v1813_v39 = vmul.f32 %v3989_v14, %v1804_v15  ;;  %1820 = vst.msk [vmem:[#allocation2 + $0xc0] sm:$0xff] %vm68_vm0, %v1815_v27  ;;  %v513_v61 = vmul.f32 %v5209_v8, %v4726_v25  ;;  %v5323_v34 = vmul.f32 %v1625_v12, %v4972_v9 }
 0x2cb   :  { %v2668_v48 = vmul.f32 %v2604_v24, %v6081_v31  ;;  %v1825_v62 = vmul.f32 %v3991_v19, %v1816_v4  ;;  %v5314_v20 = vpop.f32.mrb[58].mxu0  ;;  %v5316_v0 = vpop.f32.mrb[58].mxu1  ;;  %1823 = vst.msk [vmem:[#allocation2 + $0xd8] sm:$0xff] %vm68_vm0, %v1818_v58  ;;  %v516_v31 = vmul.f32 %v5287_v45, %v4703_v51  ;;  %v6084_v19 = vld [vmem:[#allocation28_spill] sm:$0xff]  ;;  %v1629_v51 = vrot.slane %v5303_v33, %v4258_v13 }
 0x2cc   :  { %6082 = vst [vmem:[#allocation24_spill] sm:$0xff] %v5316_v0  ;;  %v3993_v52 = vpop.eup %3992  ;;  %v1817_v44 = vadd.f32 %v1813_v39, %v5189_v38  ;;  %v5327_v14 = vpop.f32.mrb[59].mxu0  ;;  %v611_v25 = vmul.f32 1.442695, %v513_v61  ;;  %v2780_v8 = vsel %vm68_vm0, %v2669_v57, 0.0 }
 0x2cd   :  { %v2607_v30 = vld [vmem:[#allocation2 + $0xc8] sm:$0xff]  ;;  %v5329_v15 = vpop.f32.mrb[59].mxu1  ;;  %v2778_v4 = vsel %vm68_vm0, %v2668_v48, 0.0  ;;  %v1829_v36 = vadd.f32 %v1825_v62, %v5218_v55  ;;  %v1824_v38 = vmul.f32 %v3993_v52, %v1815_v27  ;;  %v3995_v5 = vpop.eup %3994  ;;  %v617_v9 = vmul.f32 1.442695, %v516_v31 }
 0x2ce   :  { %6083 = vst [vmem:[#allocation26_spill] sm:$0xff] %v5329_v15  ;;  %v2671_v24 = vmul.f32 %v6084_v19, %v2607_v30  ;;  %v2779_v56 = vadd.f32 %v2778_v4, %v2777_v7  ;;  %1822 = vst.msk [vmem:[#allocation2 + $0xd0] sm:$0xff] %vm68_vm0, %v1817_v44  ;;  %v1827_v48 = vmul.f32 %v3995_v5, %v1818_v58  ;;  %4004 = vpow2.f32 %v611_v25  ;;  %v6093_v15 = vld [vmem:[#allocation33_spill] sm:$0xff] }
 0x2cf   :  { %1834 = vst.msk [vmem:[#allocation2 + $0xe8] sm:$0xff] %vm68_vm0, %v1829_v36  ;;  %v1828_v12 = vadd.f32 %v1824_v38, %v5233_v22  ;;  %v515_v55 = vmul.f32 %v5287_v45, %v4716_v23  ;;  %v5342_v27 = vpop.f32.mrb[60].mxu0  ;;  %v5344_v7 = vpop.f32.mrb[60].mxu1  ;;  %v5349_v62 = vmul.f32 %v4993_v54, %v1629_v51  ;;  %v5352_v57 = vmul.f32 %v1629_v51, %v5003_v49  ;;  %v5364_v54 = vld [vmem:[%s5979_s6 + $0x58] sm:$0xff] }
 0x2d0   :  { %6085 = vst [vmem:[#allocation28_spill] sm:$0xff] %v5344_v7  ;;  %v3997_v39 = vpop.eup %3996  ;;  %v5346_v29 = vadd.f32 %v2780_v8, %v2779_v56  ;;  %v5354_v52 = vpop.f32.mrb[61].mxu0  ;;  %v1831_v23 = vadd.f32 %v1827_v48, %v5249_v63  ;;  %4006 = vpow2.f32 %v617_v9  ;;  %v2789_v31 = vsel %vm68_vm0, %v2671_v24, 0.0  ;;  %v5374_v63 = vld [vmem:[%s5979_s6 + $0x50] sm:$0xff] }
 0x2d1   :  { %v5356_v22 = vpop.f32.mrb[61].mxu1  ;;  %1833 = vst.msk [vmem:[#allocation2 + $0xe0] sm:$0xff] %vm68_vm0, %v1828_v12  ;;  %v1826_v58 = vmul.f32 %v3997_v39, %v1817_v44  ;;  %v615_v30 = vmul.f32 1.442695, %v515_v55  ;;  %v3999_v61 = vpop.eup %3998  ;;  %v2606_v4 = vld [vmem:[#allocation2 + $0xc0] sm:$0xff]  ;;  %v518_v49 = vmul.f32 %v5364_v54, %v5287_v45  ;;  %v5369_v19 = vmul.f32 %v5019_v42, %v1629_v51  ;;  %v6087_v24 = vld [vmem:[#allocation30_spill] sm:$0xff] }
 0x2d2   :  { %6086 = vst [vmem:[#allocation52_spill] sm:$0xff] %v5356_v22  ;;  %v517_v44 = vmul.f32 %v5374_v63, %v5287_v45  ;;  %v2670_v38 = vmul.f32 %v2606_v4, %v6087_v24  ;;  %v2609_v5 = vld [vmem:[#allocation2 + $0xd8] sm:$0xff]  ;;  %1836 = vst.msk [vmem:[#allocation2 + $0xf8] sm:$0xff] %vm68_vm0, %v1831_v23  ;;  %v1838_v25 = vmul.f32 %v3999_v61, %v1829_v36  ;;  %v4001_v8 = vpop.eup %4000  ;;  %v6092_v22 = vld [vmem:[#allocation32_spill] sm:$0xff] }
 0x2d3   :  { %v1830_v56 = vadd.f32 %v1826_v58, %v5259_v10  ;;  %4008 = vpow2.f32 %v615_v30  ;;  %v5381_v9 = vpop.f32.mrb[62].mxu0  ;;  %v5383_v42 = vpop.f32.mrb[62].mxu1  ;;  %v6089_v48 = vcombine.high %v5119_v26, %v5119_v26  ;;  %v5393_v45 = vrot.slane %v5175_v53, %v4258_v13 }
 0x2d4   :  { %6088 = vst [vmem:[#allocation30_spill] sm:$0xff] %v5383_v42  ;;  %v621_v39 = vmul.f32 1.442695, %v518_v49  ;;  %v619_v4 = vmul.f32 1.442695, %v517_v44  ;;  %v5395_v10 = vpop.f32.mrb[63].mxu0  ;;  %v4003_v58 = vpop.eup %4002  ;;  %v1842_v26 = vadd.f32 %v1838_v25, %v5283_v11  ;;  %v1837_v24 = vmul.f32 %v4001_v8, %v1828_v12 }
 0x2d5   :  { %v5389_v55 = vrot.slane %v6089_v48, %v4258_v13  ;;  %v5397_v36 = vpop.f32.mrb[63].mxu1  ;;  %v2788_v30 = vsel %vm68_vm0, %v2670_v38, 0.0  ;;  %v2608_v61 = vld [vmem:[#allocation2 + $0xd0] sm:$0xff]  ;;  %1835 = vst.msk [vmem:[#allocation2 + $0xf0] sm:$0xff] %vm68_vm0, %v1830_v56  ;;  %v5403_v48 = vmul.f32 %v1629_v51, %v5029_v3  ;;  %v2673_v42 = vmul.f32 %v6091_v18, %v2609_v5 }
 0x2d6   :  { %6090 = vst [vmem:[#allocation53_spill] sm:$0xff] %v5397_v36  ;;  %v2790_v44 = vadd.f32 %v2789_v31, %v2788_v30  ;;  %v2672_v36 = vmul.f32 %v2608_v61, %v6092_v22  ;;  %v2611_v7 = vld [vmem:[#allocation2 + $0xe8] sm:$0xff]  ;;  %1847 = vst.msk [vmem:[#allocation2 + $0x108] sm:$0xff] %vm68_vm0, %v1842_v26  ;;  %v1841_v0 = vadd.f32 %v1837_v24, %v5291_v43  ;;  %4010 = vpow2.f32 %v621_v39  ;;  %v6097_v25 = vld [vmem:[#allocation34_spill] sm:$0xff] }
 0x2d7   :  { %v2675_v38 = vmul.f32 %v6093_v15, %v2611_v7  ;;  %v1840_v11 = vmul.f32 %v4003_v58, %v1831_v23  ;;  %v5412_v12 = vpop.f32.mrb[64].mxu0  ;;  %v5414_v3 = vpop.f32.mrb[64].mxu1  ;;  %v6095_v51 = vrot.slane %v4977_v2, 4  ;;  %4012 = vpow2.f32 %v619_v4  ;;  %v5425_v15 = vld [vmem:[%s5979_s6 + $0x48] sm:$0xff] }
 0x2d8   :  { %6094 = vst [vmem:[#allocation31_spill] sm:$0xff] %v5414_v3  ;;  %v2791_v18 = vsel %vm68_vm0, %v2672_v36, 0.0  ;;  %v2610_v22 = vld [vmem:[#allocation2 + $0xe0] sm:$0xff]  ;;  %v520_v43 = vmul.f32 %v5425_v15, %v5389_v55  ;;  %v5429_v7 = vpop.f32.mrb[65].mxu0  ;;  %v5431_v23 = vpop.f32.mrb[65].mxu1  ;;  %1846 = vst.msk [vmem:[#allocation2 + $0x100] sm:$0xff] %vm68_vm0, %v1841_v0  ;;  %v1586_v24 = vcombine.high %v5224_v37, %v5224_v37  ;;  %v6098_v37 = vcombine.high %v5183_v47, %v5183_v47 }
 0x2d9   :  { %v5419_v31 = vadd.f32 %v6095_v51, %v4977_v2  ;;  %6096 = vst [vmem:[#allocation32_spill] sm:$0xff] %v5431_v23  ;;  %v2792_v5 = vadd.f32 %v2791_v18, %v2790_v44  ;;  %v2802_v2 = vsel %vm68_vm0, %v2675_v38, 0.0  ;;  %v2674_v8 = vmul.f32 %v2610_v22, %v6097_v25  ;;  %v4005_v4 = vpop.eup %4004  ;;  %v2613_v30 = vld [vmem:[#allocation2 + $0xf8] sm:$0xff] }
 0x2da   :  { %v1844_v39 = vadd.f32 %v1840_v11, %v5309_v16  ;;  %v2730_v36 = vrot.slane %v5015_v46, 4  ;;  %v2793_v58 = vsel %vm68_vm0, %v2673_v42, 0.0  ;;  %v625_v61 = vmul.f32 1.442695, %v520_v43  ;;  %v4007_v51 = vpop.eup %4006  ;;  %v5448_v16 = vld [vmem:[%s5979_s6 + $0x40] sm:$0xff] }
 0x2db   :  { %v5441_v44 = vadd.f32 %v2793_v58, %v2792_v5  ;;  %v2801_v38 = vsel %vm68_vm0, %v2674_v8, 0.0  ;;  %v1839_v18 = vmul.f32 %v4005_v4, %v1830_v56  ;;  %v519_v42 = vmul.f32 %v5448_v16, %v5389_v55  ;;  %v5452_v11 = vpop.f32.mrb[66].mxu0 }
 0x2dc   :  { %1849 = vst.msk [vmem:[#allocation2 + $0x118] sm:$0xff] %vm68_vm0, %v1844_v39  ;;  %v5458_v22 = vrot.slane %v6098_v37, %v4258_v13  ;;  %v2803_v43 = vadd.f32 %v2802_v2, %v2801_v38  ;;  %v2612_v5 = vld [vmem:[#allocation2 + $0xf0] sm:$0xff]  ;;  %v1851_v25 = vmul.f32 %v4007_v51, %v1842_v26  ;;  %4014 = vpow2.f32 %v625_v61  ;;  %v5460_v56 = vpop.f32.mrb[67].mxu0 }
 0x2dd   :  { %6099 = vst [vmem:[#allocation33_spill] sm:$0xff] %v5460_v56  ;;  %v4009_v8 = vpop.eup %4008  ;;  %v5464_v4 = vrot.slane %v5242_v32, %v4258_v13  ;;  %v2677_v58 = vmul.f32 %v4909_v59, %v2613_v30  ;;  %v2676_v49 = vmul.f32 %v2612_v5, %v4919_v28  ;;  %v1843_v23 = vadd.f32 %v1839_v18, %v5323_v34  ;;  %v2615_v37 = vld [vmem:[#allocation2 + $0x108] sm:$0xff] }
 0x2de   :  { %v2719_v47 = vrot.slane %v5419_v31, 2  ;;  %v1855_v2 = vadd.f32 %v1851_v25, %v5349_v62  ;;  %v1850_v26 = vmul.f32 %v4009_v8, %v1841_v0  ;;  %v1633_v61 = vrot.slane %v1586_v24, %v4258_v13 }
 0x2df   :  { %v2731_v51 = vadd.f32 %v2730_v36, %v5015_v46  ;;  %v2804_v38 = vsel %vm68_vm0, %v2676_v49, 0.0  ;;  %v2679_v3 = vmul.f32 %v4933_v40, %v2615_v37  ;;  %1848 = vst.msk [vmem:[#allocation2 + $0x110] sm:$0xff] %vm68_vm0, %v1843_v23  ;;  %v623_v59 = vmul.f32 1.442695, %v519_v42  ;;  %v2614_v30 = vld [vmem:[#allocation2 + $0x100] sm:$0xff] }
 0x2e0   :  { %v2805_v28 = vadd.f32 %v2804_v38, %v2803_v43  ;;  %1860 = vst.msk [vmem:[#allocation2 + $0x128] sm:$0xff] %vm68_vm0, %v1855_v2  ;;  %v1854_v34 = vadd.f32 %v1850_v26, %v5352_v57  ;;  %v1711_v62 = vmul.f32 %v5050_v21, %v1633_v61  ;;  %v5480_v0 = vmul.f32 %v1633_v61, %v5058_v35  ;;  %v4011_v24 = vpop.eup %4010  ;;  %v6100_v57 = vld [vmem:[#allocation7_spill] sm:$0xff] }
 0x2e1   :  { %v2806_v46 = vsel %vm68_vm0, %v2677_v58, 0.0  ;;  %v2815_v49 = vsel %vm68_vm0, %v2679_v3, 0.0  ;;  %v2678_v40 = vmul.f32 %v2614_v30, %v4941_v6  ;;  %4016 = vpow2.f32 %v623_v59  ;;  %v4013_v36 = vpop.eup %4012  ;;  %v6104_v30 = vld [vmem:[#allocation35_spill] sm:$0xff] }
 0x2e2   :  { %v5485_v18 = vadd.f32 %v2806_v46, %v2805_v28  ;;  %1859 = vst.msk [vmem:[#allocation2 + $0x120] sm:$0xff] %vm68_vm0, %v1854_v34  ;;  %v1853_v42 = vmul.f32 %v4011_v24, %v1844_v39  ;;  %v522_v21 = vmul.f32 %v5364_v54, %v5389_v55  ;;  %v5491_v35 = vmul.f32 %v6100_v57, %v1633_v61  ;;  %v6105_v46 = vld [vmem:[#allocation21_spill] sm:$0xff] }
 0x2e3   :  { %v6101_v43 = vcombine.high %v5175_v53, %v5175_v53  ;;  %v2720_v6 = vadd.f32 %v2719_v47, %v5419_v31  ;;  %v2814_v5 = vsel %vm68_vm0, %v2678_v40, 0.0  ;;  %v2617_v25 = vld [vmem:[#allocation2 + $0x118] sm:$0xff]  ;;  %v1852_v8 = vmul.f32 %v4013_v36, %v1843_v23  ;;  %v6103_v53 = vld [vmem:[#allocation12_spill] sm:$0xff] }
 0x2e4   :  { %v2732_v58 = vrot.slane %v2731_v51, 2  ;;  %v2816_v39 = vadd.f32 %v2815_v49, %v2814_v5  ;;  %v5502_v37 = vadd.f32 %v1853_v42, %v5369_v19  ;;  %v629_v26 = vmul.f32 1.442695, %v522_v21 }
 0x2e5   :  { %v5497_v3 = vrot.slane %v6101_v43, %v4258_v13  ;;  %v6102_v38 = vcombine.high %v5242_v32, %v5242_v32  ;;  %v2743_v28 = vrot.slane %v6103_v53, 4  ;;  %v5512_v31 = vadd.f32 %v1852_v8, %v5403_v48  ;;  %v6106_v48 = vld [vmem:[#allocation36_spill] sm:$0xff]  ;;  %v6107_v43 = vld [vmem:[#allocation37_spill] sm:$0xff] }
 0x2e6   :  { %v521_v23 = vmul.f32 %v5374_v63, %v5389_v55  ;;  %v4015_v47 = vpop.eup %4014  ;;  %v2681_v24 = vmul.f32 %v6104_v30, %v2617_v25  ;;  %v2616_v19 = vld [vmem:[#allocation2 + $0x110] sm:$0xff]  ;;  %1862 = vst.msk [vmem:[#allocation2 + $0x138] sm:$0xff] %vm68_vm0, %v5502_v37  ;;  %4018 = vpow2.f32 %v629_v26  ;;  %v5520_v32 = vmul.f32 %v1633_v61, %v6105_v46 }
 0x2e7   :  { %v5508_v59 = vrot.slane %v6102_v38, %v4258_v13  ;;  %v524_v49 = vmul.f32 %v5425_v15, %v5458_v22  ;;  %v2721_v40 = vrot.slane %v2720_v6, 1  ;;  %v2680_v36 = vmul.f32 %v2616_v19, %v6106_v48  ;;  %v2619_v42 = vld [vmem:[#allocation2 + $0x128] sm:$0xff]  ;;  %1861 = vst.msk [vmem:[#allocation2 + $0x130] sm:$0xff] %vm68_vm0, %v5512_v31 }
 0x2e8   :  { %v1864_v55 = vmul.f32 %v4015_v47, %v1855_v2  ;;  %v627_v21 = vmul.f32 1.442695, %v521_v23  ;;  %v2733_v57 = vadd.f32 %v2732_v58, %v2731_v51  ;;  %v2683_v5 = vmul.f32 %v6107_v43, %v2619_v42  ;;  %v6108_v58 = vld [vmem:[#allocation38_spill] sm:$0xff] }
 0x2e9   :  { %v633_v25 = vmul.f32 1.442695, %v524_v49  ;;  %v1588_v61 = vcombine.high %v5303_v33, %v5303_v33  ;;  %v5531_v8 = vadd.f32 %v2743_v28, %v6103_v53  ;;  %v2817_v26 = vsel %vm68_vm0, %v2680_v36, 0.0  ;;  %v2618_v38 = vld [vmem:[#allocation2 + $0x120] sm:$0xff]  ;;  %v6109_v36 = vld [vmem:[#allocation6_spill] sm:$0xff] }
 0x2ea   :  { %v5534_v30 = vadd.f32 %v1864_v55, %v1711_v62  ;;  %4020 = vpow2.f32 %v627_v21  ;;  %v2819_v19 = vsel %vm68_vm0, %v2681_v24, 0.0  ;;  %v2818_v2 = vadd.f32 %v2817_v26, %v2816_v39  ;;  %v6110_v21 = vld [vmem:[#allocation25_spill] sm:$0xff]  ;;  %v6112_v26 = vld [vmem:[#allocation8_spill] sm:$0xff] }
 0x2eb   :  { %v2828_v51 = vsel %vm68_vm0, %v2683_v5, 0.0  ;;  %v2682_v23 = vmul.f32 %v2618_v38, %v6108_v58  ;;  %v4017_v47 = vpop.eup %4016  ;;  %4022 = vpow2.f32 %v633_v25  ;;  %v1637_v33 = vrot.slane %v1588_v61, %v4258_v13  ;;  %v6111_v25 = vld [vmem:[#allocation16_spill] sm:$0xff] }
 0x2ec   :  { %1873 = vst.msk [vmem:[#allocation2 + $0x148] sm:$0xff] %vm68_vm0, %v5534_v30  ;;  %v523_v53 = vmul.f32 %v5448_v16, %v5458_v22  ;;  %v526_v62 = vmul.f32 %v5364_v54, %v5458_v22  ;;  %v2734_v28 = vrot.slane %v2733_v57, 1  ;;  %v5546_v24 = vadd.f32 %v2819_v19, %v2818_v2  ;;  %v6113_v2 = vld [vmem:[#allocation11_spill] sm:$0xff] }
 0x2ed   :  { %v2827_v39 = vsel %vm68_vm0, %v2682_v23, 0.0  ;;  %v1863_v46 = vmul.f32 %v4017_v47, %v1854_v34  ;;  %v2621_v48 = vld [vmem:[#allocation2 + $0x138] sm:$0xff]  ;;  %v1715_v42 = vmul.f32 %v6109_v36, %v1637_v33  ;;  %v5551_v43 = vmul.f32 %v1637_v33, %v6110_v21 }
 0x2ee   :  { %v2829_v49 = vadd.f32 %v2828_v51, %v2827_v39  ;;  %v631_v55 = vmul.f32 1.442695, %v523_v53  ;;  %v2722_v5 = vadd.f32 %v2721_v40, %v2720_v6  ;;  %v2756_v61 = vrot.slane %v6111_v25, 4  ;;  %v2620_v58 = vld [vmem:[#allocation2 + $0x130] sm:$0xff]  ;;  %v6115_v40 = vld [vmem:[#allocation27_spill] sm:$0xff] }
 0x2ef   :  { %v2685_v38 = vmul.f32 %v6112_v26, %v2621_v48  ;;  %v1867_v19 = vadd.f32 %v1863_v46, %v5480_v0  ;;  %v2684_v56 = vmul.f32 %v2620_v58, %v6113_v2  ;;  %v637_v34 = vmul.f32 1.442695, %v526_v62  ;;  %v6114_v51 = vld [vmem:[#allocation18_spill] sm:$0xff]  ;;  %v6116_v2 = vld [vmem:[#allocation15_spill] sm:$0xff] }
 0x2f0   :  { %4024 = vpow2.f32 %v631_v55  ;;  %v5558_v23 = vmul.f32 %v6114_v51, %v1637_v33  ;;  %v4019_v47 = vpop.eup %4018  ;;  %v2735_v53 = vadd.f32 %v2734_v28, %v2733_v57  ;;  %v2745_v39 = vrot.slane %v5531_v8, 2 }
 0x2f1   :  { %1872 = vst.msk [vmem:[#allocation2 + $0x140] sm:$0xff] %vm68_vm0, %v1867_v19  ;;  %v525_v6 = vmul.f32 %v5374_v63, %v5458_v22  ;;  %v5565_v48 = vmul.f32 %v1637_v33, %v6115_v40  ;;  %v2830_v0 = vsel %vm68_vm0, %v2684_v56, 0.0  ;;  %v1866_v46 = vmul.f32 %v4019_v47, %v5502_v37 }
 0x2f2   :  { %4026 = vpow2.f32 %v637_v34  ;;  %v528_v62 = vmul.f32 %v5425_v15, %v5393_v45  ;;  %v2757_v57 = vadd.f32 %v2756_v61, %v6111_v25  ;;  %v2831_v28 = vadd.f32 %v2830_v0, %v2829_v49  ;;  %v6117_v34 = vld [vmem:[#allocation10_spill] sm:$0xff] }
 0x2f3   :  { %v2623_v36 = vld [vmem:[#allocation2 + $0x148] sm:$0xff]  ;;  %v635_v55 = vmul.f32 1.442695, %v525_v6  ;;  %v5574_v21 = vrot.slane %v5213_v50, %v6043_v1  ;;  %v2832_v33 = vsel %vm68_vm0, %v2685_v38, 0.0  ;;  %v1870_v56 = vadd.f32 %v1866_v46, %v5491_v35 }
 0x2f4   :  { %v4021_v22 = vpop.eup %4020  ;;  %v641_v26 = vmul.f32 1.442695, %v528_v62  ;;  %v527_v37 = vmul.f32 %v5448_v16, %v5393_v45  ;;  %v5580_v58 = vadd.f32 %v2832_v33, %v2831_v28  ;;  %v2687_v25 = vmul.f32 %v6116_v2, %v2623_v36 }
 0x2f5   :  { %v1865_v49 = vmul.f32 %v4021_v22, %v5512_v31  ;;  %4028 = vpow2.f32 %v635_v55  ;;  %v4023_v61 = vpop.eup %4022  ;;  %v5585_v51 = vadd.f32 %v6117_v34, %v2722_v5  ;;  %1875 = vst.msk [vmem:[#allocation2 + $0x158] sm:$0xff] %vm68_vm0, %v1870_v56  ;;  %v1641_v35 = vrot.slane %v5574_v21, %v4258_v13  ;;  %v6119_v55 = vld [vmem:[#allocation39_spill] sm:$0xff] }
 0x2f6   :  { %4030 = vpow2.f32 %v641_v26  ;;  %v639_v38 = vmul.f32 1.442695, %v527_v37  ;;  %v6118_v47 = vrot.slane %v6117_v34, 1  ;;  %v5595_v40 = vadd.f32 %v2745_v39, %v5531_v8  ;;  %v6121_v37 = vld [vmem:[#allocation40_spill] sm:$0xff] }
 0x2f7   :  { %v1869_v31 = vadd.f32 %v1865_v49, %v5520_v32  ;;  %v1877_v0 = vmul.f32 %v4023_v61, %v5534_v30  ;;  %v2758_v5 = vrot.slane %v2757_v57, 2  ;;  %v1719_v62 = vmul.f32 %v5193_v60, %v1641_v35 }
 0x2f8   :  { %v5592_v6 = vadd.f32 %v6118_v47, %v2735_v53  ;;  %v2622_v46 = vld [vmem:[#allocation2 + $0x140] sm:$0xff]  ;;  %v5601_v28 = vmul.f32 %v1641_v35, %v5201_v41  ;;  %v530_v36 = vmul.f32 %v5364_v54, %v5393_v45  ;;  %v2841_v53 = vsel %vm68_vm0, %v2687_v25, 0.0 }
 0x2f9   :  { %v2686_v22 = vmul.f32 %v2622_v46, %v6119_v55  ;;  %1874 = vst.msk [vmem:[#allocation2 + $0x150] sm:$0xff] %vm68_vm0, %v1869_v31  ;;  %v1881_v8 = vadd.f32 %v1877_v0, %v1715_v42  ;;  %4032 = vpow2.f32 %v639_v38  ;;  %v5609_v39 = vmul.f32 %v5228_v17, %v1641_v35  ;;  %v6120_v41 = vld [vmem:[#allocation44_spill] sm:$0xff] }
 0x2fa   :  { %v4025_v32 = vpop.eup %4024  ;;  %v645_v30 = vmul.f32 1.442695, %v530_v36  ;;  %v529_v60 = vmul.f32 %v5374_v63, %v5393_v45  ;;  %v5614_v33 = vmul.f32 %v1641_v35, %v6120_v41  ;;  %v2747_v26 = vrot.slane %v5595_v40, 1 }
 0x2fb   :  { %v2769_v2 = vrot.slane %v6121_v37, 4  ;;  %v2840_v25 = vsel %vm68_vm0, %v2686_v22, 0.0  ;;  %1886 = vst.msk [vmem:[#allocation2 + $0x168] sm:$0xff] %vm68_vm0, %v1881_v8  ;;  %v1876_v42 = vmul.f32 %v4025_v32, %v1867_v19  ;;  %v532_v38 = vmul.f32 %v5425_v15, %v5464_v4  ;;  %v6122_v22 = vld [vmem:[#allocation13_spill] sm:$0xff] }
 0x2fc   :  { %v4027_v49 = vpop.eup %4026  ;;  %v2842_v61 = vadd.f32 %v2841_v53, %v2840_v25  ;;  %4034 = vpow2.f32 %v645_v30  ;;  %v643_v17 = vmul.f32 1.442695, %v529_v60  ;;  %v2782_v45 = vrot.slane %v5346_v29, 4  ;;  %v2625_v35 = vld [vmem:[#allocation2 + $0x158] sm:$0xff] }
 0x2fd   :  { %v1880_v47 = vadd.f32 %v1876_v42, %v5551_v43  ;;  %v1879_v0 = vmul.f32 %v4027_v49, %v1870_v56  ;;  %v1557_v46 = vcombine.high %v5213_v50, %v5213_v50  ;;  %v5626_v36 = vadd.f32 %v2758_v5, %v2757_v57  ;;  %v6123_v42 = vld [vmem:[#allocation14_spill] sm:$0xff] }
 0x2fe   :  { %4036 = vpow2.f32 %v643_v17  ;;  %v649_v19 = vmul.f32 1.442695, %v532_v38  ;;  %v531_v53 = vmul.f32 %v5448_v16, %v5464_v4  ;;  %v2689_v32 = vmul.f32 %v6122_v22, %v2625_v35  ;;  %v6124_v35 = vld [vmem:[#allocation23_spill] sm:$0xff] }
 0x2ff   :  { %v4029_v55 = vpop.eup %4028  ;;  %1885 = vst.msk [vmem:[#allocation2 + $0x160] sm:$0xff] %vm68_vm0, %v1880_v47  ;;  %v1883_v30 = vadd.f32 %v1879_v0, %v5558_v23  ;;  %v5634_v43 = vrot.slane %v1557_v46, %v6043_v1  ;;  %v534_v50 = vmul.f32 %v5364_v54, %v5464_v4  ;;  %v5639_v56 = vadd.f32 %v2769_v2, %v6121_v37 }
 0x300   :  { %v4031_v57 = vpop.eup %4030  ;;  %v2624_v5 = vld [vmem:[#allocation2 + $0x150] sm:$0xff]  ;;  %v1878_v60 = vmul.f32 %v4029_v55, %v1869_v31  ;;  %4038 = vpow2.f32 %v649_v19  ;;  %v647_v41 = vmul.f32 1.442695, %v531_v53  ;;  %v5642_v25 = vadd.f32 %v2782_v45, %v5346_v29  ;;  %v6125_v53 = vld [vmem:[#allocation20_spill] sm:$0xff] }
 0x301   :  { %v2688_v49 = vmul.f32 %v2624_v5, %v6123_v42  ;;  %1888 = vst.msk [vmem:[#allocation2 + $0x178] sm:$0xff] %vm68_vm0, %v1883_v30  ;;  %v1890_v1 = vmul.f32 %v4031_v57, %v1881_v8  ;;  %v1645_v23 = vrot.slane %v5634_v43, %v4258_v13  ;;  %v653_v37 = vmul.f32 1.442695, %v534_v50 }
 0x302   :  { %v2627_v17 = vld [vmem:[#allocation2 + $0x168] sm:$0xff]  ;;  %v1882_v38 = vadd.f32 %v1878_v60, %v5565_v48  ;;  %4040 = vpow2.f32 %v647_v41  ;;  %v533_v31 = vmul.f32 %v5374_v63, %v5464_v4  ;;  %v2845_v29 = vsel %vm68_vm0, %v2689_v32, 0.0  ;;  %v6126_v48 = vld [vmem:[#allocation47_spill] sm:$0xff]  ;;  %v6127_v4 = vld [vmem:[#allocation22_spill] sm:$0xff] }
 0x303   :  { %v4033_v2 = vpop.eup %4032  ;;  %v2843_v45 = vsel %vm68_vm0, %v2688_v49, 0.0  ;;  %v2691_v0 = vmul.f32 %v6124_v35, %v2627_v17  ;;  %v1894_v46 = vadd.f32 %v1890_v1, %v1719_v62  ;;  %v1723_v55 = vmul.f32 %v6125_v53, %v1645_v23  ;;  %v6129_v49 = vld [vmem:[#allocation17_spill] sm:$0xff] }
 0x304   :  { %v2844_v8 = vadd.f32 %v2843_v45, %v2842_v61  ;;  %1887 = vst.msk [vmem:[#allocation2 + $0x170] sm:$0xff] %vm68_vm0, %v1882_v38  ;;  %v1889_v19 = vmul.f32 %v4033_v2, %v1880_v47  ;;  %v1722_v22 = vmul.f32 %v1645_v23, %v6126_v48  ;;  %4042 = vpow2.f32 %v653_v37  ;;  %v6128_v47 = vld [vmem:[#allocation50_spill] sm:$0xff] }
 0x305   :  { %v2854_v50 = vsel %vm68_vm0, %v2691_v0, 0.0  ;;  %1899 = vst.msk [vmem:[#allocation2 + $0x188] sm:$0xff] %vm68_vm0, %v1894_v46  ;;  %v5660_v32 = vmul.f32 %v6127_v4, %v1645_v23  ;;  %v651_v57 = vmul.f32 1.442695, %v533_v31  ;;  %v5666_v41 = vmul.f32 %v1645_v23, %v6128_v47  ;;  %v6130_v4 = vld [vmem:[#allocation19_spill] sm:$0xff] }
 0x306   :  { %v4035_v5 = vpop.eup %4034  ;;  %v5662_v60 = vadd.f32 %v2845_v29, %v2844_v8  ;;  %v2626_v62 = vld [vmem:[#allocation2 + $0x160] sm:$0xff]  ;;  %v1893_v61 = vadd.f32 %v1889_v19, %v5601_v28  ;;  %v536_v42 = vmul.f32 %v5425_v15, %v5497_v3  ;;  %v1587_v37 = vcombine.high %v5574_v21, %v5574_v21 }
 0x307   :  { %v2690_v1 = vmul.f32 %v2626_v62, %v6129_v49  ;;  %v1892_v17 = vmul.f32 %v4035_v5, %v1883_v30  ;;  %4044 = vpow2.f32 %v651_v57  ;;  %v2771_v2 = vrot.slane %v5639_v56, 2 }
 0x308   :  { %v4037_v31 = vpop.eup %4036  ;;  %v2795_v29 = vrot.slane %v5441_v44, 4  ;;  %v2629_v45 = vld [vmem:[#allocation2 + $0x178] sm:$0xff]  ;;  %1898 = vst.msk [vmem:[#allocation2 + $0x180] sm:$0xff] %vm68_vm0, %v1893_v61  ;;  %v657_v28 = vmul.f32 1.442695, %v536_v42  ;;  %v535_v23 = vmul.f32 %v5448_v16, %v5497_v3  ;;  %v2784_v35 = vrot.slane %v5642_v25, 2 }
 0x309   :  { %v2853_v30 = vsel %vm68_vm0, %v2690_v1, 0.0  ;;  %v1896_v0 = vadd.f32 %v1892_v17, %v5609_v39  ;;  %v1891_v8 = vmul.f32 %v4037_v31, %v1882_v38  ;;  %v1649_v53 = vrot.slane %v1587_v37, %v4258_v13  ;;  %v6131_v38 = vld [vmem:[#allocation29_spill] sm:$0xff] }
 0x30a   :  { %v4039_v21 = vpop.eup %4038  ;;  %v2855_v19 = vadd.f32 %v2854_v50, %v2853_v30  ;;  %4046 = vpow2.f32 %v657_v28  ;;  %v538_v48 = vmul.f32 %v5364_v54, %v5497_v3  ;;  %v2693_v57 = vmul.f32 %v6130_v4, %v2629_v45  ;;  %v6132_v31 = vld [vmem:[#allocation41_spill] sm:$0xff]  ;;  %v6133_v4 = vld [vmem:[#allocation42_spill] sm:$0xff] }
 0x30b   :  { %v2628_v5 = vld [vmem:[#allocation2 + $0x170] sm:$0xff]  ;;  %1901 = vst.msk [vmem:[#allocation2 + $0x198] sm:$0xff] %vm68_vm0, %v1896_v0  ;;  %v1895_v62 = vadd.f32 %v1891_v8, %v5614_v33  ;;  %v1903_v47 = vmul.f32 %v4039_v21, %v1894_v46  ;;  %v655_v42 = vmul.f32 1.442695, %v535_v23  ;;  %v5688_v39 = vadd.f32 %v2795_v29, %v5441_v44 }
 0x30c   :  { %v4041_v49 = vpop.eup %4040  ;;  %v2692_v50 = vmul.f32 %v2628_v5, %v6131_v38  ;;  %v2631_v1 = vld [vmem:[#allocation2 + $0x188] sm:$0xff]  ;;  %v1727_v17 = vmul.f32 %v5314_v20, %v1649_v53  ;;  %v5693_v37 = vmul.f32 %v1649_v53, %v5327_v14  ;;  %v2808_v46 = vrot.slane %v5485_v18, 4 }
 0x30d   :  { %v2695_v45 = vmul.f32 %v6132_v31, %v2631_v1  ;;  %1900 = vst.msk [vmem:[#allocation2 + $0x190] sm:$0xff] %vm68_vm0, %v1895_v62  ;;  %v1907_v28 = vadd.f32 %v1903_v47, %v1723_v55  ;;  %v1902_v33 = vmul.f32 %v4041_v49, %v1893_v61  ;;  %4048 = vpow2.f32 %v655_v42 }
 0x30e   :  { %v2856_v44 = vsel %vm68_vm0, %v2692_v50, 0.0  ;;  %v661_v29 = vmul.f32 1.442695, %v538_v48  ;;  %v5700_v23 = vmul.f32 %v5342_v27, %v1649_v53  ;;  %v4043_v30 = vpop.eup %4042  ;;  %v2858_v20 = vsel %vm68_vm0, %v2693_v57, 0.0 }
 0x30f   :  { %v2857_v14 = vadd.f32 %v2856_v44, %v2855_v19  ;;  %v2630_v8 = vld [vmem:[#allocation2 + $0x180] sm:$0xff]  ;;  %1912 = vst.msk [vmem:[#allocation2 + $0x1a8] sm:$0xff] %vm68_vm0, %v1907_v28  ;;  %v1906_v21 = vadd.f32 %v1902_v33, %v1722_v22  ;;  %v537_v55 = vmul.f32 %v5374_v63, %v5497_v3  ;;  %v2867_v61 = vsel %vm68_vm0, %v2695_v45, 0.0 }
 0x310   :  { %v2694_v5 = vmul.f32 %v2630_v8, %v6133_v4  ;;  %v1905_v47 = vmul.f32 %v4043_v30, %v1896_v0  ;;  %4050 = vpow2.f32 %v661_v29  ;;  %v5712_v19 = vmul.f32 %v1649_v53, %v5354_v52 }
 0x311   :  { %v4045_v48 = vpop.eup %4044  ;;  %v5708_v27 = vadd.f32 %v2858_v20, %v2857_v14  ;;  %1911 = vst.msk [vmem:[#allocation2 + $0x1a0] sm:$0xff] %vm68_vm0, %v1906_v21  ;;  %v659_v57 = vmul.f32 1.442695, %v537_v55  ;;  %v540_v22 = vmul.f32 %v5425_v15, %v5508_v59  ;;  %v2760_v3 = vrot.slane %v5626_v36, 1  ;;  %v6136_v14 = vld [vmem:[#allocation46_spill] sm:$0xff] }
 0x312   :  { %v2866_v42 = vsel %vm68_vm0, %v2694_v5, 0.0  ;;  %v2633_v49 = vld [vmem:[#allocation2 + $0x198] sm:$0xff]  ;;  %v1909_v0 = vadd.f32 %v1905_v47, %v5660_v32  ;;  %v1904_v38 = vmul.f32 %v4045_v48, %v1895_v62  ;;  %v5720_v50 = vadd.f32 %v2771_v2, %v5639_v56  ;;  %v6137_v48 = vld [vmem:[#allocation48_spill] sm:$0xff] }
 0x313   :  { %v5723_v1 = vadd.f32 %v2784_v35, %v5642_v25  ;;  %v2868_v31 = vadd.f32 %v2867_v61, %v2866_v42  ;;  %4052 = vpow2.f32 %v659_v57  ;;  %v2797_v53 = vrot.slane %v5688_v39, 2  ;;  %v6134_v2 = vld [vmem:[#allocation43_spill] sm:$0xff]  ;;  %v6135_v35 = vld [vmem:[#allocation45_spill] sm:$0xff] }
 0x314   :  { %v4047_v52 = vpop.eup %4046  ;;  %v2632_v15 = vld [vmem:[#allocation2 + $0x190] sm:$0xff]  ;;  %1914 = vst.msk [vmem:[#allocation2 + $0x1b8] sm:$0xff] %vm68_vm0, %v1909_v0  ;;  %v1908_v45 = vadd.f32 %v1904_v38, %v5666_v41  ;;  %v665_v33 = vmul.f32 1.442695, %v540_v22  ;;  %v1589_v32 = vcombine.high %v5634_v43, %v5634_v43  ;;  %v5731_v56 = vadd.f32 %v2808_v46, %v5485_v18 }
 0x315   :  { %v2697_v25 = vmul.f32 %v6134_v2, %v2633_v49  ;;  %v2696_v62 = vmul.f32 %v2632_v15, %v6135_v35  ;;  %v1916_v44 = vmul.f32 %v4047_v52, %v1907_v28  ;;  %v539_v41 = vmul.f32 %v5448_v16, %v5508_v59 }
 0x316   :  { %v2635_v29 = vld [vmem:[#allocation2 + $0x1a8] sm:$0xff]  ;;  %1913 = vst.msk [vmem:[#allocation2 + $0x1b0] sm:$0xff] %vm68_vm0, %v1908_v45  ;;  %4054 = vpow2.f32 %v665_v33  ;;  %v1653_v30 = vrot.slane %v1589_v32, %v4258_v13  ;;  %v542_v43 = vmul.f32 %v5364_v54, %v5508_v59  ;;  %v2821_v18 = vrot.slane %v5546_v24, 4 }
 0x317   :  { %v4049_v20 = vpop.eup %4048  ;;  %v2869_v46 = vsel %vm68_vm0, %v2696_v62, 0.0  ;;  %v2699_v8 = vmul.f32 %v6136_v14, %v2635_v29  ;;  %v1920_v28 = vadd.f32 %v1916_v44, %v1727_v17  ;;  %v663_v13 = vmul.f32 1.442695, %v539_v41  ;;  %v6138_v62 = vld [vmem:[#allocation49_spill] sm:$0xff]  ;;  %v6139_v44 = vld [vmem:[#allocation51_spill] sm:$0xff] }
 0x318   :  { %v2870_v55 = vadd.f32 %v2869_v46, %v2868_v31  ;;  %v2634_v61 = vld [vmem:[#allocation2 + $0x1a0] sm:$0xff]  ;;  %v1915_v4 = vmul.f32 %v4049_v20, %v1906_v21  ;;  %v1731_v5 = vmul.f32 %v5381_v9, %v1653_v30  ;;  %v2871_v47 = vsel %vm68_vm0, %v2697_v25, 0.0 }
 0x319   :  { %v2880_v16 = vsel %vm68_vm0, %v2699_v8, 0.0  ;;  %v2698_v54 = vmul.f32 %v2634_v61, %v6137_v48  ;;  %1925 = vst.msk [vmem:[#allocation2 + $0x1c8] sm:$0xff] %vm68_vm0, %v1920_v28  ;;  %v5750_v57 = vmul.f32 %v1653_v30, %v5395_v10  ;;  %4056 = vpow2.f32 %v663_v13 }
 0x31a   :  { %v4051_v22 = vpop.eup %4050  ;;  %v2872_v42 = vadd.f32 %v2871_v47, %v2870_v55  ;;  %v1919_v17 = vadd.f32 %v1915_v4, %v5693_v37  ;;  %v669_v21 = vmul.f32 1.442695, %v542_v43  ;;  %v2834_v9 = vrot.slane %v5580_v58, 4 }
 0x31b   :  { %v2879_v49 = vsel %vm68_vm0, %v2698_v54, 0.0  ;;  %v2637_v38 = vld [vmem:[#allocation2 + $0x1b8] sm:$0xff]  ;;  %v1918_v31 = vmul.f32 %v4051_v22, %v1909_v0  ;;  %v5756_v52 = vmul.f32 %v5412_v12, %v1653_v30  ;;  %v2810_v15 = vrot.slane %v5731_v56, 2 }
 0x31c   :  { %v2822_v10 = vadd.f32 %v2821_v18, %v5546_v24  ;;  %v2847_v33 = vrot.slane %v5662_v60, 4  ;;  %v2881_v32 = vadd.f32 %v2880_v16, %v2879_v49  ;;  %1924 = vst.msk [vmem:[#allocation2 + $0x1c0] sm:$0xff] %vm68_vm0, %v1919_v17  ;;  %4058 = vpow2.f32 %v669_v21  ;;  %v6140_v18 = vld [vmem:[#allocation33_spill] sm:$0xff] }
 0x31d   :  { %v4053_v37 = vpop.eup %4052  ;;  %v2636_v2 = vld [vmem:[#allocation2 + $0x1b0] sm:$0xff]  ;;  %v1922_v25 = vadd.f32 %v1918_v31, %v5700_v23  ;;  %v541_v0 = vmul.f32 %v5374_v63, %v5508_v59  ;;  %v5766_v12 = vmul.f32 %v1653_v30, %v5429_v7  ;;  %v2860_v35 = vrot.slane %v5708_v27, 4 }
 0x31e   :  { %v2701_v24 = vmul.f32 %v6138_v62, %v2637_v38  ;;  %v2700_v29 = vmul.f32 %v2636_v2, %v6139_v44  ;;  %v1917_v41 = vmul.f32 %v4053_v37, %v1908_v45  ;;  %v2835_v43 = vadd.f32 %v2834_v9, %v5580_v58  ;;  %v6141_v45 = vld [vmem:[#allocation24_spill] sm:$0xff]  ;;  %v6142_v38 = vld [vmem:[#allocation26_spill] sm:$0xff] }
 0x31f   :  { %1927 = vst.msk [vmem:[#allocation2 + $0x1d8] sm:$0xff] %vm68_vm0, %v1922_v25  ;;  %v667_v20 = vmul.f32 1.442695, %v541_v0  ;;  %v3064_v23 = vsub.f32 0.0, %v5452_v11  ;;  %v3063_v46 = vsub.f32 0.0, %v6140_v18  ;;  %v2848_v7 = vadd.f32 %v2847_v33, %v5662_v60 }
 0x320   :  { %v4055_v63 = vpop.eup %4054  ;;  %v2873_v59 = vrot.slane %v2872_v42, 4  ;;  %v2882_v30 = vsel %vm68_vm0, %v2700_v29, 0.0  ;;  %v2639_v14 = vld [vmem:[#allocation2 + $0x1c8] sm:$0xff]  ;;  %v1921_v8 = vadd.f32 %v1917_v41, %v5712_v19  ;;  %v2861_v4 = vadd.f32 %v2860_v35, %v5708_v27 }
 0x321   :  { %v2883_v55 = vadd.f32 %v2882_v30, %v2881_v32  ;;  %v2703_v61 = vmul.f32 %v6141_v45, %v2639_v14  ;;  %v1929_v58 = vmul.f32 %v4055_v63, %v1920_v28  ;;  %4060 = vpow2.f32 %v667_v20  ;;  %v6144_v63 = vld [vmem:[#allocation52_spill] sm:$0xff] }
 0x322   :  { %v2884_v13 = vsel %vm68_vm0, %v2701_v24, 0.0  ;;  %1926 = vst.msk [vmem:[#allocation2 + $0x1d0] sm:$0xff] %vm68_vm0, %v1921_v8  ;;  %v3067_v47 = vmul.f32 1.442695, %v3064_v23  ;;  %v3065_v16 = vmul.f32 1.442695, %v3063_v46  ;;  %v2874_v19 = vadd.f32 %v2873_v59, %v2872_v42 }
 0x323   :  { %v2823_v60 = vrot.slane %v2822_v10, 2  ;;  %v2836_v48 = vrot.slane %v2835_v43, 2  ;;  %v2885_v54 = vadd.f32 %v2884_v13, %v2883_v55  ;;  %v2638_v22 = vld [vmem:[#allocation2 + $0x1c0] sm:$0xff]  ;;  %v1933_v21 = vadd.f32 %v1929_v58, %v1731_v5  ;;  %v4057_v9 = vpop.eup %4056  ;;  %v6145_v13 = vld [vmem:[#allocation30_spill] sm:$0xff] }
 0x324   :  { %v2893_v49 = vsel %vm68_vm0, %v2703_v61, 0.0  ;;  %v2702_v28 = vmul.f32 %v2638_v22, %v6142_v38  ;;  %4062 = vpow2.f32 %v3067_v47  ;;  %v2849_v31 = vrot.slane %v2848_v7, 2 }
 0x325   :  { %v2886_v27 = vrot.slane %v2885_v54, 4  ;;  %1938 = vst.msk [vmem:[#allocation2 + $0x1e8] sm:$0xff] %vm68_vm0, %v1933_v21  ;;  %v1928_v33 = vmul.f32 %v4057_v9, %v1919_v17  ;;  %4064 = vpow2.f32 %v3065_v16  ;;  %v2773_v32 = vrot.slane %v5720_v50, 1 }
 0x326   :  { %v2798_v37 = vadd.f32 %v2797_v53, %v5688_v39  ;;  %v2862_v5 = vrot.slane %v2861_v4, 2  ;;  %v2892_v42 = vsel %vm68_vm0, %v2702_v28, 0.0  ;;  %v4059_v2 = vpop.eup %4058  ;;  %v2811_v0 = vadd.f32 %v2810_v15, %v5731_v56  ;;  %v2641_v24 = vld [vmem:[#allocation2 + $0x1d8] sm:$0xff] }
 0x327   :  { %v2824_v35 = vadd.f32 %v2823_v60, %v2822_v10  ;;  %v2894_v62 = vadd.f32 %v2893_v49, %v2892_v42  ;;  %v1932_v44 = vadd.f32 %v1928_v33, %v5750_v57  ;;  %v2748_v17 = vadd.f32 %v2747_v26, %v5595_v40  ;;  %v6143_v57 = vld [vmem:[#allocation28_spill] sm:$0xff]  ;;  %v6146_v33 = vld [vmem:[#allocation53_spill] sm:$0xff] }
 0x328   :  { %v2875_v29 = vrot.slane %v2874_v19, 2  ;;  %v2887_v41 = vadd.f32 %v2886_v27, %v2885_v54  ;;  %v1931_v20 = vmul.f32 %v4059_v2, %v1922_v25  ;;  %v2761_v39 = vadd.f32 %v2760_v3, %v5626_v36 }
 0x329   :  { %v2786_v53 = vrot.slane %v5723_v1, 1  ;;  %v2837_v23 = vadd.f32 %v2836_v48, %v2835_v43  ;;  %v2850_v56 = vadd.f32 %v2849_v31, %v2848_v7  ;;  %v2640_v15 = vld [vmem:[#allocation2 + $0x1d0] sm:$0xff]  ;;  %1937 = vst.msk [vmem:[#allocation2 + $0x1e0] sm:$0xff] %vm68_vm0, %v1932_v44  ;;  %v2863_v10 = vadd.f32 %v2862_v5, %v2861_v4 }
 0x32a   :  { %v2705_v46 = vmul.f32 %v6143_v57, %v2641_v24  ;;  %v2704_v59 = vmul.f32 %v2640_v15, %v6144_v63  ;;  %v1935_v40 = vadd.f32 %v1931_v20, %v5756_v52  ;;  %v2774_v25 = vadd.f32 %v2773_v32, %v5720_v50 }
 0x32b   :  { %v4061_v26 = vpop.eup %4060  ;;  %v2799_v30 = vrot.slane %v2798_v37, 1  ;;  %v2812_v14 = vrot.slane %v2811_v0, 1  ;;  %v2825_v36 = vrot.slane %v2824_v35, 1  ;;  %v2876_v3 = vadd.f32 %v2875_v29, %v2874_v19 }
 0x32c   :  { %v2888_v55 = vrot.slane %v2887_v41, 2  ;;  %v2895_v43 = vsel %vm68_vm0, %v2704_v59, 0.0  ;;  %v2643_v7 = vld [vmem:[#allocation2 + $0x1e8] sm:$0xff]  ;;  %1940 = vst.msk [vmem:[#allocation2 + $0x1f8] sm:$0xff] %vm68_vm0, %v1935_v40  ;;  %v1930_v45 = vmul.f32 %v4061_v26, %v1921_v8  ;;  %v2787_v61 = vadd.f32 %v2786_v53, %v5723_v1 }
 0x32d   :  { %v2838_v58 = vrot.slane %v2837_v23, 1  ;;  %v2896_v4 = vadd.f32 %v2895_v43, %v2894_v62  ;;  %v2707_v52 = vmul.f32 %v6145_v13, %v2643_v7  ;;  %v2851_v16 = vrot.slane %v2850_v56, 1  ;;  %v5854_v43 = vld [vmem:[%s5973_s0] sm:$0xff] }
 0x32e   :  { %v4063_v47 = vpop.eup %4062  ;;  %v2864_v50 = vrot.slane %v2863_v10, 1  ;;  %v2897_v60 = vsel %vm68_vm0, %v2705_v46, 0.0  ;;  %v1934_v48 = vadd.f32 %v1930_v45, %v5766_v12  ;;  %v2800_v22 = vadd.f32 %v2799_v30, %v2798_v37  ;;  %v6158_v13 = vld [vmem:[#allocation32_spill] sm:$0xff] }
 0x32f   :  { %v4065_v54 = vpop.eup %4064  ;;  %v2813_v21 = vadd.f32 %v2812_v14, %v2811_v0  ;;  %v2898_v9 = vadd.f32 %v2897_v60, %v2896_v4  ;;  %v3070_v19 = vadd.f32 1.0, %v4063_v47  ;;  %v2826_v49 = vadd.f32 %v2825_v36, %v2824_v35 }
 0x330   :  { %v2877_v8 = vrot.slane %v2876_v3, 1  ;;  %v2889_v38 = vadd.f32 %v2888_v55, %v2887_v41  ;;  %v2642_v1 = vld [vmem:[#allocation2 + $0x1e0] sm:$0xff]  ;;  %1939 = vst.msk [vmem:[#allocation2 + $0x1f0] sm:$0xff] %vm68_vm0, %v1934_v48  ;;  %v3069_v28 = vadd.f32 1.0, %v4065_v54  ;;  %v2906_v27 = vsel %vm68_vm0, %v2707_v52, 0.0 }
 0x331   :  { %v2899_v31 = vrot.slane %v2898_v9, 4  ;;  %v2706_v32 = vmul.f32 %v2642_v1, %v6146_v33  ;;  %4066 = vrcp.f32 %v3070_v19  ;;  %v2839_v5 = vadd.f32 %v2838_v58, %v2837_v23  ;;  %v6157_v58 = vld [vmem:[#allocation31_spill] sm:$0xff] }
 0x332   :  { %v2852_v12 = vadd.f32 %v2851_v16, %v2850_v56  ;;  %v2865_v42 = vadd.f32 %v2864_v50, %v2863_v10  ;;  %4068 = vrcp.f32 %v3069_v28  ;;  %v6147_v37 = vrot.slane %v6117_v34, 2  ;;  %v6152_v56 = vld [vmem:[#allocation9_spill] sm:$0xff] }
 0x333   :  { %v6148_v0 = vrot.slane %v6117_v34, 3  ;;  %v2900_v62 = vadd.f32 %v2899_v31, %v2898_v9  ;;  %v2905_v24 = vsel %vm68_vm0, %v2706_v32, 0.0  ;;  %v6149_v44 = vrot.slane %v6117_v34, 4  ;;  %v2645_v46 = vld [vmem:[#allocation2 + $0x1f8] sm:$0xff]  ;;  %v5871_v9 = vld [vmem:[%s5973_s0 + $0x8] sm:$0xff]  ;;  %s4104_s0 = smov [#allocation3]  }
 0x334   :  { %v5815_v2 = vadd.f32 %v6147_v37, %v2748_v17  ;;  %v6150_v41 = vrot.slane %v6117_v34, 5  ;;  %v6151_v53 = vrot.slane %v6117_v34, 6  ;;  %v2907_v17 = vadd.f32 %v2906_v27, %v2905_v24  ;;  %s3308_s1 = sshll.u32 %s4104_s0, 4  ;;  %s3309_s1 = int_to_ptr.vmem [resolvable:$true] %s3308_s1 }
 0x335   :  { %v5819_v35 = vadd.f32 %v6148_v0, %v2761_v39  ;;  %v5824_v29 = vadd.f32 %v6149_v44, %v2774_v25  ;;  %v5835_v15 = vadd.f32 %v6152_v56, %v2826_v49  ;;  %v2878_v39 = vadd.f32 %v2877_v8, %v2876_v3  ;;  %s4077_s24 = scalar_lea.vmem %s3309_s1, 256  ;;  %p4082_p1 = scmp.lt.s32.totalorder %s3309_s1, %s3309_s1 }
 0x336   :  { %v5828_v20 = vadd.f32 %v6150_v41, %v2787_v61  ;;  %v5832_v23 = vadd.f32 %v6151_v53, %v2800_v22  ;;  %v2890_v10 = vrot.slane %v2889_v38, 1  ;;  %v2901_v57 = vrot.slane %v2900_v62, 2  ;;  %p4078_p0 = scmp.ne.s32.totalorder %s3309_s1, %s4077_s24  ;;  %p4083_p2 = scmp.lt.s32.totalorder %s4077_s24, %s4077_s24 }
 0x337   :  { %v6153_v63 = vrot.slane %v6152_v56, 1  ;;  %v6154_v40 = vrot.slane %v6152_v56, 2  ;;  %v6155_v25 = vrot.slane %v6152_v56, 3  ;;  %v6156_v14 = vrot.slane %v6117_v34, 7  ;;  %v2644_v3 = vld [vmem:[#allocation2 + $0x1f0] sm:$0xff] }
 0x338   :  { %v2902_v55 = vadd.f32 %v2901_v57, %v2900_v62  ;;  %v3125_v7 = vrot.slane %v5854_v43, 1  ;;  %v3126_v45 = vrot.slane %v5854_v43, 2  ;;  %v3127_v61 = vrot.slane %v5854_v43, 3  ;;  %p4084_p3 = por %p4083_p2, %p4082_p1 }
 0x339   :  { %v5839_v59 = vadd.f32 %v6153_v63, %v2839_v5  ;;  %v5843_v26 = vadd.f32 %v6154_v40, %v2852_v12  ;;  %v5847_v30 = vadd.f32 %v6155_v25, %v2865_v42  ;;  %v2963_v36 = vadd.f32 %v6156_v14, %v2813_v21 }
 0x33a   :  { %v2709_v4 = vmul.f32 %v6157_v58, %v2645_v46  ;;  %v2708_v52 = vmul.f32 %v2644_v3, %v6158_v13  ;;  %v3128_v34 = vrot.slane %v5854_v43, 4  ;;  %v3129_v47 = vrot.slane %v5854_v43, 5  ;;  %p4085_p4 = pnand %p4084_p3, %p4078_p0 }
 0x33b   :  { %v6159_v16 = vrot.slane %v6152_v56, 4  ;;  %v2891_v60 = vadd.f32 %v2890_v10, %v2889_v38  ;;  %v2903_v48 = vrot.slane %v2902_v55, 1  ;;  %v3130_v54 = vrot.slane %v5854_v43, 6  ;;  %v4067_v8 = vpop.eup %4066 }
 0x33c   :  { %v2908_v22 = vsel %vm68_vm0, %v2708_v52, 0.0  ;;  %v3131_v21 = vrot.slane %v5854_v43, 7  ;;  %v3132_v19 = vrot.slane %v5871_v9, 1  ;;  %v3133_v49 = vrot.slane %v5871_v9, 2  ;;  %v4069_v27 = vpop.eup %4068 }
 0x33d   :  { %v2968_v50 = vadd.f32 %v6159_v16, %v2878_v39  ;;  %v2904_v1 = vadd.f32 %v2903_v48, %v2902_v55  ;;  %v2909_v28 = vadd.f32 %v2908_v22, %v2907_v17  ;;  %v3134_v38 = vrot.slane %v5871_v9, 3 }
 0x33e   :  { %v3135_v31 = vrot.slane %v5871_v9, 4  ;;  %v2910_v33 = vsel %vm68_vm0, %v2709_v4, 0.0  ;;  %v5879_v32 = vmul.f32 %v4067_v8, %v5452_v11  ;;  %v3136_v5 = vrot.slane %v5871_v9, 5 }
 0x33f   :  { %v3137_v12 = vrot.slane %v5871_v9, 6  ;;  %v6160_v42 = vrot.slane %v6152_v56, 5  ;;  %v2911_v0 = vadd.f32 %v2910_v33, %v2909_v28  ;;  %v3075_v62 = vmul.f32 %v4069_v27, %v6140_v18 }
 0x340   :  { %v3138_v24 = vrot.slane %v5871_v9, 7  ;;  %v6161_v44 = vrot.slane %v6152_v56, 6  ;;  %v3086_v53 = vrot.slane %v5879_v32, 1  ;;  %v3087_v11 = vrot.slane %v5879_v32, 2 }
 0x341   :  { %v2969_v37 = vadd.f32 %v6160_v42, %v2891_v60  ;;  %v3088_v17 = vrot.slane %v5879_v32, 3  ;;  %v2912_v39 = vrot.slane %v2911_v0, 4  ;;  %v3079_v10 = vrot.slane %v3075_v62, 1 }
 0x342   :  { %v2970_v41 = vadd.f32 %v6161_v44, %v2904_v1  ;;  %v3080_v57 = vrot.slane %v3075_v62, 2  ;;  %v3081_v46 = vrot.slane %v3075_v62, 3  ;;  %v3082_v63 = vrot.slane %v3075_v62, 4 }
 0x343   :  { %v3083_v40 = vrot.slane %v3075_v62, 5  ;;  %v3084_v25 = vrot.slane %v3075_v62, 6  ;;  %v3085_v14 = vrot.slane %v3075_v62, 7  ;;  %v2913_v18 = vadd.f32 %v2912_v39, %v2911_v0 }
 0x344   :  { %v3089_v55 = vrot.slane %v5879_v32, 4  ;;  %v3090_v3 = vrot.slane %v5879_v32, 5  ;;  %v3091_v58 = vrot.slane %v5879_v32, 6  ;;  %v3109_v4 = vmul.f32 %v3075_v62, %v5585_v51 }
 0x345   :  { %v3110_v13 = vmul.f32 %v3079_v10, %v5592_v6  ;;  %v3111_v52 = vmul.f32 %v3080_v57, %v5815_v2  ;;  %v3112_v16 = vmul.f32 %v3081_v46, %v5819_v35  ;;  %v2914_v60 = vrot.slane %v2913_v18, 2 }
 0x346   :  { %v3113_v48 = vmul.f32 %v3082_v63, %v5824_v29  ;;  %v3114_v22 = vmul.f32 %v3083_v40, %v5828_v20  ;;  %v3115_v8 = vmul.f32 %v3084_v25, %v5832_v23  ;;  %v3116_v1 = vmul.f32 %v3085_v14, %v2963_v36 }
 0x347   :  { %v3117_v28 = vmul.f32 %v5879_v32, %v5835_v15  ;;  %v3118_v51 = vmul.f32 %v3086_v53, %v5839_v59  ;;  %v3119_v6 = vmul.f32 %v3087_v11, %v5843_v26  ;;  %v2915_v2 = vadd.f32 %v2914_v60, %v2913_v18  ;;  %v4076_v60 = vld [vmem:[%s5977_s4] ss:$0 sm:$0xff] }
 0x348   :  { %v3120_v35 = vmul.f32 %v3088_v17, %v5847_v30  ;;  %v3121_v27 = vmul.f32 %v3089_v55, %v2968_v50  ;;  %v3122_v33 = vmul.f32 %v3090_v3, %v2969_v37  ;;  %v3123_v29 = vmul.f32 %v3091_v58, %v2970_v41 }
 0x349   :  { %v3156_v20 = vadd.f32 %v3125_v7, %v3110_v13  ;;  %v3157_v23 = vadd.f32 %v3126_v45, %v3111_v52  ;;  %v2916_v15 = vrot.slane %v2915_v2, 1  ;;  %v3092_v59 = vrot.slane %v5879_v32, 7 }
 0x34a   :  { %v3155_v26 = vadd.f32 %v5854_v43, %v3109_v4  ;;  %v3158_v30 = vadd.f32 %v3127_v61, %v3112_v16  ;;  %v3159_v36 = vadd.f32 %v3128_v34, %v3113_v48  ;;  %v3160_v50 = vadd.f32 %v3129_v47, %v3114_v22 }
 0x34b   :  { %v3164_v7 = vadd.f32 %v3132_v19, %v3118_v51  ;;  %v2917_v45 = vadd.f32 %v2916_v15, %v2915_v2  ;;  %v3161_v42 = vadd.f32 %v3130_v54, %v3115_v8  ;;  %v3162_v32 = vadd.f32 %v3131_v21, %v3116_v1 }
 0x34c   :  { %v3165_v37 = vadd.f32 %v3133_v49, %v3119_v6  ;;  %v3163_v61 = vadd.f32 %v5871_v9, %v3117_v28  ;;  %v3166_v34 = vadd.f32 %v3134_v38, %v3120_v35  ;;  %v3187_v0 = vrot.slane %v3156_v20, 7 }
 0x34d   :  { %v3190_v47 = vrot.slane %v3157_v23, 6  ;;  %v6162_v62 = vrot.slane %v6152_v56, 7  ;;  %v3167_v44 = vadd.f32 %v3135_v31, %v3121_v27  ;;  %v3168_v43 = vadd.f32 %v3136_v5, %v3122_v33 }
 0x34e   :  { %v3169_v54 = vadd.f32 %v3137_v12, %v3123_v29  ;;  %v3189_v21 = vsel %vm3188_vm7, %v3187_v0, %v3155_v26  ;;  %v3193_v49 = vrot.slane %v3158_v30, 5  ;;  %v3196_v41 = vrot.slane %v3159_v36, 4 }
 0x34f   :  { %v2971_v19 = vadd.f32 %v6162_v62, %v2917_v45  ;;  %v3208_v53 = vrot.slane %v3164_v7, 7  ;;  %v3192_v11 = vsel %vm3191_vm8, %v3190_v47, %v3189_v21  ;;  %v3199_v17 = vrot.slane %v3160_v50, 3 }
 0x350   :  { %v3210_v56 = vrot.slane %v3165_v37, 6  ;;  %v3195_v39 = vsel %vm3194_vm9, %v3193_v49, %v3192_v11  ;;  %v3202_v10 = vrot.slane %v3161_v42, 2  ;;  %v3212_v57 = vrot.slane %v3166_v34, 5 }
 0x351   :  { %v3124_v38 = vmul.f32 %v3092_v59, %v2971_v19  ;;  %v3209_v31 = vsel %vm3188_vm7, %v3208_v53, %v3163_v61  ;;  %v3198_v12 = vsel %vm3197_vm10, %v3196_v41, %v3195_v39  ;;  %v3214_v63 = vrot.slane %v3167_v44, 4 }
 0x352   :  { %v3211_v46 = vsel %vm3191_vm8, %v3210_v56, %v3209_v31  ;;  %v3201_v40 = vsel %vm3200_vm11, %v3199_v17, %v3198_v12  ;;  %v3205_v25 = vrot.slane %v3162_v32, 1  ;;  %v3216_v18 = vrot.slane %v3168_v43, 3 }
 0x353   :  { %v3170_v5 = vadd.f32 %v3138_v24, %v3124_v38  ;;  %v3213_v14 = vsel %vm3194_vm9, %v3212_v57, %v3211_v46  ;;  %v3204_v55 = vsel %vm3203_vm12, %v3202_v10, %v3201_v40  ;;  %v3218_v58 = vrot.slane %v3169_v54, 2 }
 0x354   :  { %v3215_v3 = vsel %vm3197_vm10, %v3214_v63, %v3213_v14  ;;  %v3207_v4 = vsel %vm3206_vm13, %v3205_v25, %v3204_v55 }
 0x355   :  { %v3217_v9 = vsel %vm3200_vm11, %v3216_v18, %v3215_v3  ;;  %v3220_v24 = vrot.slane %v3170_v5, 1  ;;  %3865 = vmatprep.mubr.msk.f32.mxu1 %vm68_vm0, %v3207_v4 }
 0x356   :  { %v3219_v13 = vsel %vm3203_vm12, %v3218_v58, %v3217_v9 }
 0x357   :  { %v3221_v52 = vsel %vm3206_vm13, %v3220_v24, %v3219_v13 }
 0x358   :  { %3866 = vmatmul.mubr.msk.f32.vlgmr.msra.gmra.mrb[66].mxu1 %vm68_vm0, %v3221_v52 }
 0x42b   :  { %v3867_v16 = vpop.f32.mrb[66].mxu1 }
 0x42c   :  { %v3298_v48 = vadd.f32 %v4076_v60, %v3867_v16  ;;  %v3292_v22 = vpop.f32.mrb[67].mxu1 }
 0x42d   :  { %v3293_v8 = vadd.f32 %v4076_v60, %v3292_v22 }
 0x42e   :  { %3302 = vst.msk [vmem:[#allocation3 + $0x8] sm:$0xff] %vm68_vm0, %v3298_v48 }
 0x42f   :  { %3301 = vst.msk [vmem:[#allocation3] sm:$0xff] %vm68_vm0, %v3293_v8 }
 0x430   :  { %4088 = shalt.err (!%p4085_p4)
}
 0x431   :  { %s4089_s2 = scalar_lea.hbm %s5980_s7, 256 }
 0x432   :  { %p4090_p5 = scmp.ne.s32.totalorder %s5980_s7, %s4089_s2  ;;  %p4093_p6 = scmp.lt.u32.totalorder %s4089_s2, %s5980_s7 }
 0x434   :  { %p4095_p7 = pnand %p4093_p6, %p4090_p5 }
 0x436   :  { %4098 = shalt.err (!%p4095_p7)
}
 0x437   :  { %s4105_s29 = smov 128   ;;  %s4106_s30 = smov 8  }
 0x438   :  { %3314 = dma.vmem_to_hbm [thread:$0]  %s3309_s1, 256, %s5980_s7, [#allocation4], %s4105_s29, %s4105_s29, %s4106_s30  }
 0x439   :  { %4099 = dma.done.wait [#allocation4], 256  }
 0x43a   :  { %4100 = vsyncadd [#allocation4], 4294967040 }
 0x43b   :  { %3318 = vsyncpa [#allocation4], 1 }

</bundles_post_ra>
